<compile_context>
chip_gen: v7x
topology: tpu7x:2x2x1
jax: 0.10.0
libtpu: 0.0.40
codegen_flags: <defaults>
</compile_context>

<pallas_src>
import functools

import jax
import jax.numpy as jnp
from jax.experimental import pallas as pl
from jax.experimental.pallas import tpu as pltpu

_LANE = 128
_SUBLANE = 8


def _normpool_kernel(x_ref, o_ref, r_ref, r2_ref, s_ref, ss_ref, *, k, p):
    """One block of B planes laid out (H, W, B); lane axis carries the planes."""
    H, W, B = x_ref.shape
    Ho = H + 2 * p - k + 1
    Wo = W + 2 * p - k + 1
    n = k * k

    # Cast + center + square exactly once.  Centering about the per-plane mean
    # keeps the one-pass variance numerically stable for offset inputs; the
    # window std is shift-invariant so c is simply added back to the mean.
    x = x_ref[...].astype(jnp.float32)                         # (H, W, B)
    c = jnp.mean(jnp.mean(x, axis=0, keepdims=True), axis=1, keepdims=True)
    y = x - c
    y2 = y * y

    # ---- vertical pass: reflected sliding k-sum along H (leading axis) ----
    # r[i] = sum_d ypad[i + d]; each tap's interior is one shifted slice of y,
    # the reflected boundary rows are O(k*p) single-row adds (no padded copy).
    r_ref[...] = jnp.zeros_like(r_ref)
    r2_ref[...] = jnp.zeros_like(r2_ref)
    for d in range(k):
        lo = max(0, p - d)                   # first output row hitting interior
        hi = min(Ho, p + H - d)              # one past the last such row
        if hi > lo:
            r_ref[lo:hi, :, :] += y[lo + d - p:hi + d - p, :, :]
            r2_ref[lo:hi, :, :] += y2[lo + d - p:hi + d - p, :, :]
        for i in range(0, lo):               # reflected top rows (q = i+d < p)
            src = p - i - d
            r_ref[i:i + 1, :, :] += y[src:src + 1, :, :]
            r2_ref[i:i + 1, :, :] += y2[src:src + 1, :, :]
        for i in range(max(hi, 0), Ho):      # reflected bottom rows (q >= p+H)
            src = 2 * H + p - 2 - i - d
            r_ref[i:i + 1, :, :] += y[src:src + 1, :, :]
            r2_ref[i:i + 1, :, :] += y2[src:src + 1, :, :]

    r = r_ref[...]                           # (Ho, W, B)
    r2 = r2_ref[...]

    # ---- horizontal pass: reflected sliding k-sum along W (sublane axis) ----
    s_ref[...] = jnp.zeros_like(s_ref)
    ss_ref[...] = jnp.zeros_like(ss_ref)
    for d in range(k):
        lo = max(0, p - d)
        hi = min(Wo, p + W - d)
        if hi > lo:
            s_ref[:, lo:hi, :] += r[:, lo + d - p:hi + d - p, :]
            ss_ref[:, lo:hi, :] += r2[:, lo + d - p:hi + d - p, :]
        for j in range(0, lo):               # reflected left columns
            src = p - j - d
            s_ref[:, j:j + 1, :] += r[:, src:src + 1, :]
            ss_ref[:, j:j + 1, :] += r2[:, src:src + 1, :]
        for j in range(max(hi, 0), Wo):      # reflected right columns
            src = 2 * W + p - 2 - j - d
            s_ref[:, j:j + 1, :] += r[:, src:src + 1, :]
            ss_ref[:, j:j + 1, :] += r2[:, src:src + 1, :]

    s = s_ref[...]                           # (Ho, Wo, B): window sum of y
    ss = ss_ref[...]                         # window sum of y^2
    mean_y = s * (1.0 / n)
    # One-pass unbiased variance (ddof=1) on centered data; clamp tiny negatives.
    var = jnp.maximum(ss - s * mean_y, 0.0) * (1.0 / (n - 1))
    o_ref[...] = (mean_y + c - jnp.sqrt(var)).astype(o_ref.dtype)


def _round_up(v, m):
    return (v + m - 1) // m * m


def _block_vmem_bytes(H, W, Ho, Wo, b, itemsize):
    """Approximate VMEM working set of one b-plane block, incl. (8,128) padding."""
    lanes = _round_up(b, _LANE)

    def slab(rows, cols, isz):
        return rows * _round_up(cols, _SUBLANE) * lanes * isz

    return (2 * slab(H, W, itemsize)         # double-buffered input block
            + 2 * slab(Ho, Wo, itemsize)     # double-buffered output block
            + 2 * slab(H, W, 4)              # centered y and y*y (f32 values)
            + 2 * slab(Ho, W, 4)             # r / r2 scratch
            + 2 * slab(Ho, Wo, 4)            # s / ss scratch
            + 1 * slab(Ho, Wo, 4))           # elementwise temporaries headroom


def _choose_plane_block(NC, bytes_for, budget):
    """Lane-axis block size: NC itself when small, otherwise a multiple of 128
    that fits the VMEM budget, keeps >=4 grid steps when NC permits, and
    preferably divides NC so the last grid step is not padded waste."""
    if NC <= _LANE:
        return NC
    b = _LANE                                 # minimum lane-valid block
    while b + _LANE <= NC and bytes_for(b + _LANE) <= budget:
        b += _LANE
    cap = max(_LANE, ((NC // 4) // _LANE) * _LANE)   # aim for >= 4 grid steps
    b = min(b, cap)
    for cand in range(b, _LANE - 1, -_LANE):          # prefer divisors of NC
        if NC % cand == 0:
            return cand
    return b


def norm_pool_2d(x, kernel_size=3, stride=1, padding=1):
    """NormPool2d forward. x: (N, C, H, W). Returns (N, C, Ho, Wo) = mean - std."""
    assert stride == 1, "kernel implements the module default stride=1"
    k = int(kernel_size)
    p = int(padding)
    assert k > 1, "kernel_size=1 makes unbiased std (ddof=1) undefined"
    N, C, H, W = x.shape
    assert p < H and p < W, "reflect padding requires padding < spatial dims"

    Ho = H + 2 * p - k + 1
    Wo = W + 2 * p - k + 1
    NC = N * C
    itemsize = x.dtype.itemsize

    # Lane-dense layout: planes on the lane (last) axis, window shifts on the
    # leading/sublane axes.  The transposes are wrapper-side layout plumbing.
    xt = jnp.transpose(x, (2, 3, 0, 1)).reshape(H, W, NC)

    # Generation-aware VMEM sizing (v7x: 64 MiB/TC, v5e/v6e: 128 MiB).
    try:
        vmem_cap = int(pltpu.get_tpu_info().vmem_capacity_bytes)
    except Exception:
        vmem_cap = 64 * 1024 * 1024           # conservative fallback (v7x-safe)
    budget = vmem_cap // 2                    # target block working set
    vmem_limit = max(32 * 1024 * 1024,
                     min(int(vmem_cap * 0.85), 110 * 1024 * 1024))

    bytes_for = lambda b: _block_vmem_bytes(H, W, Ho, Wo, b, itemsize)
    B = _choose_plane_block(NC, bytes_for, budget)
    grid = pl.cdiv(NC, B)
    # TODO(synk): if bytes_for(B) still exceeds the budget (huge H*W, tiny NC),
    #             H-halo tiling with an overlapping index_map would be needed.

    kernel = functools.partial(_normpool_kernel, k=k, p=p)
    out = pl.pallas_call(
        kernel,
        out_shape=jax.ShapeDtypeStruct((Ho, Wo, NC), x.dtype),
        grid=(grid,),
        in_specs=[pl.BlockSpec((H, W, B), lambda i: (0, 0, i))],
        out_specs=pl.BlockSpec((Ho, Wo, B), lambda i: (0, 0, i)),
        scratch_shapes=[
            pltpu.VMEM((Ho, W, B), jnp.float32),    # r   (vertical sum of y)
            pltpu.VMEM((Ho, W, B), jnp.float32),    # r2  (vertical sum of y^2)
            pltpu.VMEM((Ho, Wo, B), jnp.float32),   # s   (window sum of y)
            pltpu.VMEM((Ho, Wo, B), jnp.float32),   # ss  (window sum of y^2)
        ],
        compiler_params=pltpu.CompilerParams(
            dimension_semantics=("parallel",),
            vmem_limit_bytes=vmem_limit,
        ),
    )(xt)
    return jnp.transpose(out.reshape(Ho, Wo, N, C), (2, 3, 0, 1))


def _reference(x, kernel_size=3, padding=1):
    """Pure-JAX reference mirroring the PyTorch forward (sanity check)."""
    k = kernel_size
    p = padding
    N, C, H, W = x.shape
    xp = jnp.pad(x, ((0, 0), (0, 0), (p, p), (p, p)), mode="reflect")
    Ho, Wo = H + 2 * p - k + 1, W + 2 * p - k + 1
    patches = jnp.stack(
        [xp[:, :, di:di + Ho, dj:dj + Wo] for di in range(k) for dj in range(k)],
        axis=-1,
    )
    mean = patches.mean(axis=-1)
    std = patches.std(axis=-1, ddof=1)  # unbiased, like torch.std
    return mean - std


if __name__ == "__main__":
    key = jax.random.PRNGKey(0)
    x = jax.random.normal(key, (2, 4, 16, 16), dtype=jnp.float32)

    out = norm_pool_2d(x, kernel_size=3, stride=1, padding=1)
    out = jax.block_until_ready(out)

    ref = _reference(x)
    assert out.shape == (2, 4, 16, 16)
    assert jnp.allclose(out, ref, atol=1e-5, rtol=1e-5), "mismatch vs reference"

    print("KERNEL_OK")
</pallas_src>

<mosaic_0001>
module attributes {stable_mosaic.version = 11 : i64} {
  func.func @_normpool_kernel(%arg0: i32, %arg1: memref<16x16x8xf32, #tpu.memory_space<vmem>>, %arg2: memref<16x16x8xf32, #tpu.memory_space<vmem>>, %arg3: memref<16x16x8xf32, #tpu.memory_space<vmem>>, %arg4: memref<16x16x8xf32, #tpu.memory_space<vmem>>, %arg5: memref<16x16x8xf32, #tpu.memory_space<vmem>>, %arg6: memref<16x16x8xf32, #tpu.memory_space<vmem>>) attributes {dimension_semantics = [#tpu.dimension_semantics<parallel>], iteration_bounds = array<i64: 1>, scalar_prefetch = 0 : i64, scratch_operands = 4 : i64, tpu.core_type = #tpu.core_type<tc>, window_params = [{transform_indices = @transform_0, window_bounds = array<i64: 16, 16, 8>}, {transform_indices = @transform_1, window_bounds = array<i64: 16, 16, 8>}]} {
    %c0 = arith.constant 0 : index
    %c0_0 = arith.constant 0 : index
    %c0_1 = arith.constant 0 : index
    %0 = vector.load %arg1[%c0, %c0_0, %c0_1] : memref<16x16x8xf32, #tpu.memory_space<vmem>>, vector<16x16x8xf32>
    %cst = arith.constant dense<0.000000e+00> : vector<16x8xf32>
    %1 = vector.multi_reduction <add>, %0, %cst [0] : vector<16x16x8xf32> to vector<16x8xf32>
    %2 = vector.shape_cast %1 : vector<16x8xf32> to vector<1x16x8xf32>
    %cst_2 = arith.constant 1.600000e+01 : f32
    %3 = vector.broadcast %cst_2 : f32 to vector<1x16x8xf32>
    %4 = arith.divf %2, %3 : vector<1x16x8xf32>
    %cst_3 = arith.constant dense<0.000000e+00> : vector<1x8xf32>
    %5 = vector.multi_reduction <add>, %4, %cst_3 [1] : vector<1x16x8xf32> to vector<1x8xf32>
    %6 = vector.shape_cast %5 : vector<1x8xf32> to vector<1x1x8xf32>
    %cst_4 = arith.constant 1.600000e+01 : f32
    %7 = vector.broadcast %cst_4 : f32 to vector<1x1x8xf32>
    %8 = arith.divf %6, %7 : vector<1x1x8xf32>
    %9 = vector.broadcast %8 : vector<1x1x8xf32> to vector<16x16x8xf32>
    %10 = arith.subf %0, %9 : vector<16x16x8xf32>
    %11 = arith.mulf %10, %10 : vector<16x16x8xf32>
    %cst_5 = arith.constant 0.000000e+00 : f32
    %12 = vector.broadcast %cst_5 : f32 to vector<16x16x8xf32>
    %c0_6 = arith.constant 0 : index
    %c0_7 = arith.constant 0 : index
    %c0_8 = arith.constant 0 : index
    %13 = vector.load %arg3[%c0_6, %c0_7, %c0_8] : memref<16x16x8xf32, #tpu.memory_space<vmem>>, vector<16x16x8xf32>
    tpu.vector_store %arg3[%c0_6, %c0_7, %c0_8], %12 {strides = array<i32>} : memref<16x16x8xf32, #tpu.memory_space<vmem>>, vector<16x16x8xf32>,
    %cst_9 = arith.constant 0.000000e+00 : f32
    %14 = vector.broadcast %cst_9 : f32 to vector<16x16x8xf32>
    %c0_10 = arith.constant 0 : index
    %c0_11 = arith.constant 0 : index
    %c0_12 = arith.constant 0 : index
    %15 = vector.load %arg4[%c0_10, %c0_11, %c0_12] : memref<16x16x8xf32, #tpu.memory_space<vmem>>, vector<16x16x8xf32>
    tpu.vector_store %arg4[%c0_10, %c0_11, %c0_12], %14 {strides = array<i32>} : memref<16x16x8xf32, #tpu.memory_space<vmem>>, vector<16x16x8xf32>,
    %c1 = arith.constant 1 : index
    %c0_13 = arith.constant 0 : index
    %c0_14 = arith.constant 0 : index
    %16 = vector.load %arg3[%c1, %c0_13, %c0_14] : memref<16x16x8xf32, #tpu.memory_space<vmem>>, vector<15x16x8xf32>
    %17 = vector.extract_strided_slice %10 {offsets = [0, 0, 0], sizes = [15, 16, 8], strides = [1, 1, 1]} : vector<16x16x8xf32> to vector<15x16x8xf32>
    %18 = arith.addf %16, %17 : vector<15x16x8xf32>
    %c1_15 = arith.constant 1 : index
    %c0_16 = arith.constant 0 : index
    %c0_17 = arith.constant 0 : index
    %19 = vector.load %arg3[%c1_15, %c0_16, %c0_17] : memref<16x16x8xf32, #tpu.memory_space<vmem>>, vector<15x16x8xf32>
    tpu.vector_store %arg3[%c1_15, %c0_16, %c0_17], %18 {strides = array<i32>} : memref<16x16x8xf32, #tpu.memory_space<vmem>>, vector<15x16x8xf32>,
    %c1_18 = arith.constant 1 : index
    %c0_19 = arith.constant 0 : index
    %c0_20 = arith.constant 0 : index
    %20 = vector.load %arg4[%c1_18, %c0_19, %c0_20] : memref<16x16x8xf32, #tpu.memory_space<vmem>>, vector<15x16x8xf32>
    %21 = vector.extract_strided_slice %11 {offsets = [0, 0, 0], sizes = [15, 16, 8], strides = [1, 1, 1]} : vector<16x16x8xf32> to vector<15x16x8xf32>
    %22 = arith.addf %20, %21 : vector<15x16x8xf32>
    %c1_21 = arith.constant 1 : index
    %c0_22 = arith.constant 0 : index
    %c0_23 = arith.constant 0 : index
    %23 = vector.load %arg4[%c1_21, %c0_22, %c0_23] : memref<16x16x8xf32, #tpu.memory_space<vmem>>, vector<15x16x8xf32>
    tpu.vector_store %arg4[%c1_21, %c0_22, %c0_23], %22 {strides = array<i32>} : memref<16x16x8xf32, #tpu.memory_space<vmem>>, vector<15x16x8xf32>,
    %c0_24 = arith.constant 0 : index
    %c0_25 = arith.constant 0 : index
    %c0_26 = arith.constant 0 : index
    %24 = vector.load %arg3[%c0_24, %c0_25, %c0_26] : memref<16x16x8xf32, #tpu.memory_space<vmem>>, vector<1x16x8xf32>
    %25 = vector.extract_strided_slice %10 {offsets = [1, 0, 0], sizes = [1, 16, 8], strides = [1, 1, 1]} : vector<16x16x8xf32> to vector<1x16x8xf32>
    %26 = arith.addf %24, %25 : vector<1x16x8xf32>
    %c0_27 = arith.constant 0 : index
    %c0_28 = arith.constant 0 : index
    %c0_29 = arith.constant 0 : index
    %27 = vector.load %arg3[%c0_27, %c0_28, %c0_29] : memref<16x16x8xf32, #tpu.memory_space<vmem>>, vector<1x16x8xf32>
    tpu.vector_store %arg3[%c0_27, %c0_28, %c0_29], %26 {strides = array<i32>} : memref<16x16x8xf32, #tpu.memory_space<vmem>>, vector<1x16x8xf32>,
    %c0_30 = arith.constant 0 : index
    %c0_31 = arith.constant 0 : index
    %c0_32 = arith.constant 0 : index
    %28 = vector.load %arg4[%c0_30, %c0_31, %c0_32] : memref<16x16x8xf32, #tpu.memory_space<vmem>>, vector<1x16x8xf32>
    %29 = vector.extract_strided_slice %11 {offsets = [1, 0, 0], sizes = [1, 16, 8], strides = [1, 1, 1]} : vector<16x16x8xf32> to vector<1x16x8xf32>
    %30 = arith.addf %28, %29 : vector<1x16x8xf32>
    %c0_33 = arith.constant 0 : index
    %c0_34 = arith.constant 0 : index
    %c0_35 = arith.constant 0 : index
    %31 = vector.load %arg4[%c0_33, %c0_34, %c0_35] : memref<16x16x8xf32, #tpu.memory_space<vmem>>, vector<1x16x8xf32>
    tpu.vector_store %arg4[%c0_33, %c0_34, %c0_35], %30 {strides = array<i32>} : memref<16x16x8xf32, #tpu.memory_space<vmem>>, vector<1x16x8xf32>,
    %c0_36 = arith.constant 0 : index
    %c0_37 = arith.constant 0 : index
    %c0_38 = arith.constant 0 : index
    %32 = vector.load %arg3[%c0_36, %c0_37, %c0_38] : memref<16x16x8xf32, #tpu.memory_space<vmem>>, vector<16x16x8xf32>
    %33 = arith.addf %32, %10 : vector<16x16x8xf32>
    %c0_39 = arith.constant 0 : index
    %c0_40 = arith.constant 0 : index
    %c0_41 = arith.constant 0 : index
    %34 = vector.load %arg3[%c0_39, %c0_40, %c0_41] : memref<16x16x8xf32, #tpu.memory_space<vmem>>, vector<16x16x8xf32>
    tpu.vector_store %arg3[%c0_39, %c0_40, %c0_41], %33 {strides = array<i32>} : memref<16x16x8xf32, #tpu.memory_space<vmem>>, vector<16x16x8xf32>,
    %c0_42 = arith.constant 0 : index
    %c0_43 = arith.constant 0 : index
    %c0_44 = arith.constant 0 : index
    %35 = vector.load %arg4[%c0_42, %c0_43, %c0_44] : memref<16x16x8xf32, #tpu.memory_space<vmem>>, vector<16x16x8xf32>
    %36 = arith.addf %35, %11 : vector<16x16x8xf32>
    %c0_45 = arith.constant 0 : index
    %c0_46 = arith.constant 0 : index
    %c0_47 = arith.constant 0 : index
    %37 = vector.load %arg4[%c0_45, %c0_46, %c0_47] : memref<16x16x8xf32, #tpu.memory_space<vmem>>, vector<16x16x8xf32>
    tpu.vector_store %arg4[%c0_45, %c0_46, %c0_47], %36 {strides = array<i32>} : memref<16x16x8xf32, #tpu.memory_space<vmem>>, vector<16x16x8xf32>,
    %c0_48 = arith.constant 0 : index
    %c0_49 = arith.constant 0 : index
    %c0_50 = arith.constant 0 : index
    %38 = vector.load %arg3[%c0_48, %c0_49, %c0_50] : memref<16x16x8xf32, #tpu.memory_space<vmem>>, vector<15x16x8xf32>
    %39 = vector.extract_strided_slice %10 {offsets = [1, 0, 0], sizes = [15, 16, 8], strides = [1, 1, 1]} : vector<16x16x8xf32> to vector<15x16x8xf32>
    %40 = arith.addf %38, %39 : vector<15x16x8xf32>
    %c0_51 = arith.constant 0 : index
    %c0_52 = arith.constant 0 : index
    %c0_53 = arith.constant 0 : index
    %41 = vector.load %arg3[%c0_51, %c0_52, %c0_53] : memref<16x16x8xf32, #tpu.memory_space<vmem>>, vector<15x16x8xf32>
    tpu.vector_store %arg3[%c0_51, %c0_52, %c0_53], %40 {strides = array<i32>} : memref<16x16x8xf32, #tpu.memory_space<vmem>>, vector<15x16x8xf32>,
    %c0_54 = arith.constant 0 : index
    %c0_55 = arith.constant 0 : index
    %c0_56 = arith.constant 0 : index
    %42 = vector.load %arg4[%c0_54, %c0_55, %c0_56] : memref<16x16x8xf32, #tpu.memory_space<vmem>>, vector<15x16x8xf32>
    %43 = vector.extract_strided_slice %11 {offsets = [1, 0, 0], sizes = [15, 16, 8], strides = [1, 1, 1]} : vector<16x16x8xf32> to vector<15x16x8xf32>
    %44 = arith.addf %42, %43 : vector<15x16x8xf32>
    %c0_57 = arith.constant 0 : index
    %c0_58 = arith.constant 0 : index
    %c0_59 = arith.constant 0 : index
    %45 = vector.load %arg4[%c0_57, %c0_58, %c0_59] : memref<16x16x8xf32, #tpu.memory_space<vmem>>, vector<15x16x8xf32>
    tpu.vector_store %arg4[%c0_57, %c0_58, %c0_59], %44 {strides = array<i32>} : memref<16x16x8xf32, #tpu.memory_space<vmem>>, vector<15x16x8xf32>,
    %c15 = arith.constant 15 : index
    %c0_60 = arith.constant 0 : index
    %c0_61 = arith.constant 0 : index
    %46 = vector.load %arg3[%c15, %c0_60, %c0_61] : memref<16x16x8xf32, #tpu.memory_space<vmem>>, vector<1x16x8xf32>
    %47 = vector.extract_strided_slice %10 {offsets = [14, 0, 0], sizes = [1, 16, 8], strides = [1, 1, 1]} : vector<16x16x8xf32> to vector<1x16x8xf32>
    %48 = arith.addf %46, %47 : vector<1x16x8xf32>
    %c15_62 = arith.constant 15 : index
    %c0_63 = arith.constant 0 : index
    %c0_64 = arith.constant 0 : index
    %49 = vector.load %arg3[%c15_62, %c0_63, %c0_64] : memref<16x16x8xf32, #tpu.memory_space<vmem>>, vector<1x16x8xf32>
    tpu.vector_store %arg3[%c15_62, %c0_63, %c0_64], %48 {strides = array<i32>} : memref<16x16x8xf32, #tpu.memory_space<vmem>>, vector<1x16x8xf32>,
    %c15_65 = arith.constant 15 : index
    %c0_66 = arith.constant 0 : index
    %c0_67 = arith.constant 0 : index
    %50 = vector.load %arg4[%c15_65, %c0_66, %c0_67] : memref<16x16x8xf32, #tpu.memory_space<vmem>>, vector<1x16x8xf32>
    %51 = vector.extract_strided_slice %11 {offsets = [14, 0, 0], sizes = [1, 16, 8], strides = [1, 1, 1]} : vector<16x16x8xf32> to vector<1x16x8xf32>
    %52 = arith.addf %50, %51 : vector<1x16x8xf32>
    %c15_68 = arith.constant 15 : index
    %c0_69 = arith.constant 0 : index
    %c0_70 = arith.constant 0 : index
    %53 = vector.load %arg4[%c15_68, %c0_69, %c0_70] : memref<16x16x8xf32, #tpu.memory_space<vmem>>, vector<1x16x8xf32>
    tpu.vector_store %arg4[%c15_68, %c0_69, %c0_70], %52 {strides = array<i32>} : memref<16x16x8xf32, #tpu.memory_space<vmem>>, vector<1x16x8xf32>,
    %c0_71 = arith.constant 0 : index
    %c0_72 = arith.constant 0 : index
    %c0_73 = arith.constant 0 : index
    %54 = vector.load %arg3[%c0_71, %c0_72, %c0_73] : memref<16x16x8xf32, #tpu.memory_space<vmem>>, vector<16x16x8xf32>
    %c0_74 = arith.constant 0 : index
    %c0_75 = arith.constant 0 : index
    %c0_76 = arith.constant 0 : index
    %55 = vector.load %arg4[%c0_74, %c0_75, %c0_76] : memref<16x16x8xf32, #tpu.memory_space<vmem>>, vector<16x16x8xf32>
    %cst_77 = arith.constant 0.000000e+00 : f32
    %56 = vector.broadcast %cst_77 : f32 to vector<16x16x8xf32>
    %c0_78 = arith.constant 0 : index
    %c0_79 = arith.constant 0 : index
    %c0_80 = arith.constant 0 : index
    %57 = vector.load %arg5[%c0_78, %c0_79, %c0_80] : memref<16x16x8xf32, #tpu.memory_space<vmem>>, vector<16x16x8xf32>
    tpu.vector_store %arg5[%c0_78, %c0_79, %c0_80], %56 {strides = array<i32>} : memref<16x16x8xf32, #tpu.memory_space<vmem>>, vector<16x16x8xf32>,
    %cst_81 = arith.constant 0.000000e+00 : f32
    %58 = vector.broadcast %cst_81 : f32 to vector<16x16x8xf32>
    %c0_82 = arith.constant 0 : index
    %c0_83 = arith.constant 0 : index
    %c0_84 = arith.constant 0 : index
    %59 = vector.load %arg6[%c0_82, %c0_83, %c0_84] : memref<16x16x8xf32, #tpu.memory_space<vmem>>, vector<16x16x8xf32>
    tpu.vector_store %arg6[%c0_82, %c0_83, %c0_84], %58 {strides = array<i32>} : memref<16x16x8xf32, #tpu.memory_space<vmem>>, vector<16x16x8xf32>,
    %c0_85 = arith.constant 0 : index
    %c1_86 = arith.constant 1 : index
    %c0_87 = arith.constant 0 : index
    %60 = vector.load %arg5[%c0_85, %c1_86, %c0_87] : memref<16x16x8xf32, #tpu.memory_space<vmem>>, vector<16x15x8xf32>
    %61 = vector.extract_strided_slice %54 {offsets = [0, 0, 0], sizes = [16, 15, 8], strides = [1, 1, 1]} : vector<16x16x8xf32> to vector<16x15x8xf32>
    %62 = arith.addf %60, %61 : vector<16x15x8xf32>
    %c0_88 = arith.constant 0 : index
    %c1_89 = arith.constant 1 : index
    %c0_90 = arith.constant 0 : index
    %63 = vector.load %arg5[%c0_88, %c1_89, %c0_90] : memref<16x16x8xf32, #tpu.memory_space<vmem>>, vector<16x15x8xf32>
    tpu.vector_store %arg5[%c0_88, %c1_89, %c0_90], %62 {strides = array<i32>} : memref<16x16x8xf32, #tpu.memory_space<vmem>>, vector<16x15x8xf32>,
    %c0_91 = arith.constant 0 : index
    %c1_92 = arith.constant 1 : index
    %c0_93 = arith.constant 0 : index
    %64 = vector.load %arg6[%c0_91, %c1_92, %c0_93] : memref<16x16x8xf32, #tpu.memory_space<vmem>>, vector<16x15x8xf32>
    %65 = vector.extract_strided_slice %55 {offsets = [0, 0, 0], sizes = [16, 15, 8], strides = [1, 1, 1]} : vector<16x16x8xf32> to vector<16x15x8xf32>
    %66 = arith.addf %64, %65 : vector<16x15x8xf32>
    %c0_94 = arith.constant 0 : index
    %c1_95 = arith.constant 1 : index
    %c0_96 = arith.constant 0 : index
    %67 = vector.load %arg6[%c0_94, %c1_95, %c0_96] : memref<16x16x8xf32, #tpu.memory_space<vmem>>, vector<16x15x8xf32>
    tpu.vector_store %arg6[%c0_94, %c1_95, %c0_96], %66 {strides = array<i32>} : memref<16x16x8xf32, #tpu.memory_space<vmem>>, vector<16x15x8xf32>,
    %c0_97 = arith.constant 0 : index
    %c0_98 = arith.constant 0 : index
    %c0_99 = arith.constant 0 : index
    %68 = vector.load %arg5[%c0_97, %c0_98, %c0_99] : memref<16x16x8xf32, #tpu.memory_space<vmem>>, vector<16x1x8xf32>
    %69 = vector.extract_strided_slice %54 {offsets = [0, 1, 0], sizes = [16, 1, 8], strides = [1, 1, 1]} : vector<16x16x8xf32> to vector<16x1x8xf32>
    %70 = arith.addf %68, %69 : vector<16x1x8xf32>
    %c0_100 = arith.constant 0 : index
    %c0_101 = arith.constant 0 : index
    %c0_102 = arith.constant 0 : index
    %71 = vector.load %arg5[%c0_100, %c0_101, %c0_102] : memref<16x16x8xf32, #tpu.memory_space<vmem>>, vector<16x1x8xf32>
    tpu.vector_store %arg5[%c0_100, %c0_101, %c0_102], %70 {strides = array<i32>} : memref<16x16x8xf32, #tpu.memory_space<vmem>>, vector<16x1x8xf32>,
    %c0_103 = arith.constant 0 : index
    %c0_104 = arith.constant 0 : index
    %c0_105 = arith.constant 0 : index
    %72 = vector.load %arg6[%c0_103, %c0_104, %c0_105] : memref<16x16x8xf32, #tpu.memory_space<vmem>>, vector<16x1x8xf32>
    %73 = vector.extract_strided_slice %55 {offsets = [0, 1, 0], sizes = [16, 1, 8], strides = [1, 1, 1]} : vector<16x16x8xf32> to vector<16x1x8xf32>
    %74 = arith.addf %72, %73 : vector<16x1x8xf32>
    %c0_106 = arith.constant 0 : index
    %c0_107 = arith.constant 0 : index
    %c0_108 = arith.constant 0 : index
    %75 = vector.load %arg6[%c0_106, %c0_107, %c0_108] : memref<16x16x8xf32, #tpu.memory_space<vmem>>, vector<16x1x8xf32>
    tpu.vector_store %arg6[%c0_106, %c0_107, %c0_108], %74 {strides = array<i32>} : memref<16x16x8xf32, #tpu.memory_space<vmem>>, vector<16x1x8xf32>,
    %c0_109 = arith.constant 0 : index
    %c0_110 = arith.constant 0 : index
    %c0_111 = arith.constant 0 : index
    %76 = vector.load %arg5[%c0_109, %c0_110, %c0_111] : memref<16x16x8xf32, #tpu.memory_space<vmem>>, vector<16x16x8xf32>
    %77 = arith.addf %76, %54 : vector<16x16x8xf32>
    %c0_112 = arith.constant 0 : index
    %c0_113 = arith.constant 0 : index
    %c0_114 = arith.constant 0 : index
    %78 = vector.load %arg5[%c0_112, %c0_113, %c0_114] : memref<16x16x8xf32, #tpu.memory_space<vmem>>, vector<16x16x8xf32>
    tpu.vector_store %arg5[%c0_112, %c0_113, %c0_114], %77 {strides = array<i32>} : memref<16x16x8xf32, #tpu.memory_space<vmem>>, vector<16x16x8xf32>,
    %c0_115 = arith.constant 0 : index
    %c0_116 = arith.constant 0 : index
    %c0_117 = arith.constant 0 : index
    %79 = vector.load %arg6[%c0_115, %c0_116, %c0_117] : memref<16x16x8xf32, #tpu.memory_space<vmem>>, vector<16x16x8xf32>
    %80 = arith.addf %79, %55 : vector<16x16x8xf32>
    %c0_118 = arith.constant 0 : index
    %c0_119 = arith.constant 0 : index
    %c0_120 = arith.constant 0 : index
    %81 = vector.load %arg6[%c0_118, %c0_119, %c0_120] : memref<16x16x8xf32, #tpu.memory_space<vmem>>, vector<16x16x8xf32>
    tpu.vector_store %arg6[%c0_118, %c0_119, %c0_120], %80 {strides = array<i32>} : memref<16x16x8xf32, #tpu.memory_space<vmem>>, vector<16x16x8xf32>,
    %c0_121 = arith.constant 0 : index
    %c0_122 = arith.constant 0 : index
    %c0_123 = arith.constant 0 : index
    %82 = vector.load %arg5[%c0_121, %c0_122, %c0_123] : memref<16x16x8xf32, #tpu.memory_space<vmem>>, vector<16x15x8xf32>
    %83 = vector.extract_strided_slice %54 {offsets = [0, 1, 0], sizes = [16, 15, 8], strides = [1, 1, 1]} : vector<16x16x8xf32> to vector<16x15x8xf32>
    %84 = arith.addf %82, %83 : vector<16x15x8xf32>
    %c0_124 = arith.constant 0 : index
    %c0_125 = arith.constant 0 : index
    %c0_126 = arith.constant 0 : index
    %85 = vector.load %arg5[%c0_124, %c0_125, %c0_126] : memref<16x16x8xf32, #tpu.memory_space<vmem>>, vector<16x15x8xf32>
    tpu.vector_store %arg5[%c0_124, %c0_125, %c0_126], %84 {strides = array<i32>} : memref<16x16x8xf32, #tpu.memory_space<vmem>>, vector<16x15x8xf32>,
    %c0_127 = arith.constant 0 : index
    %c0_128 = arith.constant 0 : index
    %c0_129 = arith.constant 0 : index
    %86 = vector.load %arg6[%c0_127, %c0_128, %c0_129] : memref<16x16x8xf32, #tpu.memory_space<vmem>>, vector<16x15x8xf32>
    %87 = vector.extract_strided_slice %55 {offsets = [0, 1, 0], sizes = [16, 15, 8], strides = [1, 1, 1]} : vector<16x16x8xf32> to vector<16x15x8xf32>
    %88 = arith.addf %86, %87 : vector<16x15x8xf32>
    %c0_130 = arith.constant 0 : index
    %c0_131 = arith.constant 0 : index
    %c0_132 = arith.constant 0 : index
    %89 = vector.load %arg6[%c0_130, %c0_131, %c0_132] : memref<16x16x8xf32, #tpu.memory_space<vmem>>, vector<16x15x8xf32>
    tpu.vector_store %arg6[%c0_130, %c0_131, %c0_132], %88 {strides = array<i32>} : memref<16x16x8xf32, #tpu.memory_space<vmem>>, vector<16x15x8xf32>,
    %c0_133 = arith.constant 0 : index
    %c15_134 = arith.constant 15 : index
    %c0_135 = arith.constant 0 : index
    %90 = vector.load %arg5[%c0_133, %c15_134, %c0_135] : memref<16x16x8xf32, #tpu.memory_space<vmem>>, vector<16x1x8xf32>
    %91 = vector.extract_strided_slice %54 {offsets = [0, 14, 0], sizes = [16, 1, 8], strides = [1, 1, 1]} : vector<16x16x8xf32> to vector<16x1x8xf32>
    %92 = arith.addf %90, %91 : vector<16x1x8xf32>
    %c0_136 = arith.constant 0 : index
    %c15_137 = arith.constant 15 : index
    %c0_138 = arith.constant 0 : index
    %93 = vector.load %arg5[%c0_136, %c15_137, %c0_138] : memref<16x16x8xf32, #tpu.memory_space<vmem>>, vector<16x1x8xf32>
    tpu.vector_store %arg5[%c0_136, %c15_137, %c0_138], %92 {strides = array<i32>} : memref<16x16x8xf32, #tpu.memory_space<vmem>>, vector<16x1x8xf32>,
    %c0_139 = arith.constant 0 : index
    %c15_140 = arith.constant 15 : index
    %c0_141 = arith.constant 0 : index
    %94 = vector.load %arg6[%c0_139, %c15_140, %c0_141] : memref<16x16x8xf32, #tpu.memory_space<vmem>>, vector<16x1x8xf32>
    %95 = vector.extract_strided_slice %55 {offsets = [0, 14, 0], sizes = [16, 1, 8], strides = [1, 1, 1]} : vector<16x16x8xf32> to vector<16x1x8xf32>
    %96 = arith.addf %94, %95 : vector<16x1x8xf32>
    %c0_142 = arith.constant 0 : index
    %c15_143 = arith.constant 15 : index
    %c0_144 = arith.constant 0 : index
    %97 = vector.load %arg6[%c0_142, %c15_143, %c0_144] : memref<16x16x8xf32, #tpu.memory_space<vmem>>, vector<16x1x8xf32>
    tpu.vector_store %arg6[%c0_142, %c15_143, %c0_144], %96 {strides = array<i32>} : memref<16x16x8xf32, #tpu.memory_space<vmem>>, vector<16x1x8xf32>,
    %c0_145 = arith.constant 0 : index
    %c0_146 = arith.constant 0 : index
    %c0_147 = arith.constant 0 : index
    %98 = vector.load %arg5[%c0_145, %c0_146, %c0_147] : memref<16x16x8xf32, #tpu.memory_space<vmem>>, vector<16x16x8xf32>
    %c0_148 = arith.constant 0 : index
    %c0_149 = arith.constant 0 : index
    %c0_150 = arith.constant 0 : index
    %99 = vector.load %arg6[%c0_148, %c0_149, %c0_150] : memref<16x16x8xf32, #tpu.memory_space<vmem>>, vector<16x16x8xf32>
    %cst_151 = arith.constant 0.111111112 : f32
    %100 = vector.broadcast %cst_151 : f32 to vector<16x16x8xf32>
    %101 = arith.mulf %98, %100 : vector<16x16x8xf32>
    %102 = arith.mulf %98, %101 : vector<16x16x8xf32>
    %103 = arith.subf %99, %102 : vector<16x16x8xf32>
    %cst_152 = arith.constant 0.000000e+00 : f32
    %104 = vector.broadcast %cst_152 : f32 to vector<16x16x8xf32>
    %105 = arith.maximumf %103, %104 : vector<16x16x8xf32>
    %cst_153 = arith.constant 1.250000e-01 : f32
    %106 = vector.broadcast %cst_153 : f32 to vector<16x16x8xf32>
    %107 = arith.mulf %105, %106 : vector<16x16x8xf32>
    %108 = vector.broadcast %8 : vector<1x1x8xf32> to vector<16x16x8xf32>
    %109 = arith.addf %101, %108 : vector<16x16x8xf32>
    %110 = math.sqrt %107 : vector<16x16x8xf32>
    %111 = arith.subf %109, %110 : vector<16x16x8xf32>
    %c0_154 = arith.constant 0 : index
    %c0_155 = arith.constant 0 : index
    %c0_156 = arith.constant 0 : index
    %112 = vector.load %arg2[%c0_154, %c0_155, %c0_156] : memref<16x16x8xf32, #tpu.memory_space<vmem>>, vector<16x16x8xf32>
    tpu.vector_store %arg2[%c0_154, %c0_155, %c0_156], %111 {strides = array<i32>} : memref<16x16x8xf32, #tpu.memory_space<vmem>>, vector<16x16x8xf32>,
    return
  }
  func.func @transform_0(%arg0: i32) -> (i32, i32, i32) {
    %c0_i32 = arith.constant 0 : i32
    %c0_i32_0 = arith.constant 0 : i32
    %c0_i32_1 = arith.constant 0 : i32
    return %c0_i32, %c0_i32_0, %arg0 : i32, i32, i32
  }
  func.func @transform_1(%arg0: i32) -> (i32, i32, i32) {
    %c0_i32 = arith.constant 0 : i32
    %c0_i32_0 = arith.constant 0 : i32
    %c0_i32_1 = arith.constant 0 : i32
    return %c0_i32, %c0_i32_0, %arg0 : i32, i32, i32
  }
}

</mosaic_0001>

<bundles_post_ra>
// kernel: tpu_custom_call.1
= control target key start
LH: loop header
LB: loop body
LE: loop exit
PB: predicated region body
PF: predicated region fallthrough
CT: control target
= control target key end

     0   :  { %vm40_vm0 = vcmask 64512   ;;  %v2688_v0 = vmov 0.0   ;;  %vm1017_vm1 = vcmask 63488   ;;  %vm1225_vm2 = vcmask 57344   ;;  %s5528_s0 = inlined_call_operand.vmem [shape: f32[16,16,8], index: 0, kind: input, shape index: {}]   ;;  %s5529_s1 = inlined_call_operand.vmem [shape: f32[16,16,8], index: 1, kind: output, shape index: {}]  }
   0x1   :  { %180 = vst.msk [vmem:[#allocation2] sm:$0xff] %vm40_vm0, %v2688_v0  ;;  %181 = vst.msk [vmem:[#allocation2 + $0x8] sm:$0xff] %vm40_vm0, %v2688_v0  ;;  %v2958_v1 = vld [vmem:[%s5528_s0] sm:$0xff]  ;;  %v2963_v2 = vld [vmem:[%s5528_s0 + $0x8] sm:$0xff]  ;;  %vm1578_vm3 = vcmask 1046528  }
   0x2   :  { %182 = vst.msk [vmem:[#allocation2 + $0x10] sm:$0xff] %vm40_vm0, %v2688_v0  ;;  %183 = vst.msk [vmem:[#allocation2 + $0x18] sm:$0xff] %vm40_vm0, %v2688_v0  ;;  %v2968_v3 = vld [vmem:[%s5528_s0 + $0x10] sm:$0xff]  ;;  %v2973_v4 = vld [vmem:[%s5528_s0 + $0x18] sm:$0xff]  ;;  %v41_v7 = vsel %vm40_vm0, %v2958_v1, 0.0  ;;  %v72_v9 = vsel %vm40_vm0, %v2963_v2, 0.0 }
   0x3   :  { %184 = vst.msk [vmem:[#allocation2 + $0x20] sm:$0xff] %vm40_vm0, %v2688_v0  ;;  %185 = vst.msk [vmem:[#allocation2 + $0x28] sm:$0xff] %vm40_vm0, %v2688_v0  ;;  %v2978_v5 = vld [vmem:[%s5528_s0 + $0x20] sm:$0xff]  ;;  %v2983_v6 = vld [vmem:[%s5528_s0 + $0x28] sm:$0xff]  ;;  %v42_v8 = vsel %vm40_vm0, %v2968_v3, 0.0  ;;  %v73_v15 = vsel %vm40_vm0, %v2973_v4, 0.0 }
   0x4   :  { %186 = vst.msk [vmem:[#allocation2 + $0x30] sm:$0xff] %vm40_vm0, %v2688_v0  ;;  %187 = vst.msk [vmem:[#allocation2 + $0x38] sm:$0xff] %vm40_vm0, %v2688_v0  ;;  %v2994_v10 = vld [vmem:[%s5528_s0 + $0x30] sm:$0xff]  ;;  %v2999_v11 = vld [vmem:[%s5528_s0 + $0x38] sm:$0xff]  ;;  %v43_v13 = vadd.f32 %v42_v8, %v41_v7  ;;  %v44_v14 = vsel %vm40_vm0, %v2978_v5, 0.0  ;;  %v75_v16 = vsel %vm40_vm0, %v2983_v6, 0.0  ;;  %v74_v19 = vadd.f32 %v73_v15, %v72_v9 }
   0x5   :  { %188 = vst.msk [vmem:[#allocation2 + $0x40] sm:$0xff] %vm40_vm0, %v2688_v0  ;;  %189 = vst.msk [vmem:[#allocation2 + $0x48] sm:$0xff] %vm40_vm0, %v2688_v0  ;;  %v3004_v12 = vld [vmem:[%s5528_s0 + $0x40] sm:$0xff]  ;;  %v3015_v17 = vld [vmem:[%s5528_s0 + $0x48] sm:$0xff]  ;;  %v46_v18 = vsel %vm40_vm0, %v2994_v10, 0.0  ;;  %v77_v22 = vsel %vm40_vm0, %v2999_v11, 0.0 }
   0x6   :  { %190 = vst.msk [vmem:[#allocation2 + $0x50] sm:$0xff] %vm40_vm0, %v2688_v0  ;;  %191 = vst.msk [vmem:[#allocation2 + $0x58] sm:$0xff] %vm40_vm0, %v2688_v0  ;;  %v3022_v20 = vld [vmem:[%s5528_s0 + $0x50] sm:$0xff]  ;;  %v45_v21 = vadd.f32 %v44_v14, %v43_v13  ;;  %v3029_v23 = vld [vmem:[%s5528_s0 + $0x58] sm:$0xff]  ;;  %v48_v24 = vsel %vm40_vm0, %v3004_v12, 0.0  ;;  %v76_v25 = vadd.f32 %v75_v16, %v74_v19  ;;  %v79_v28 = vsel %vm40_vm0, %v3015_v17, 0.0 }
   0x7   :  { %192 = vst.msk [vmem:[#allocation2 + $0x60] sm:$0xff] %vm40_vm0, %v2688_v0  ;;  %193 = vst.msk [vmem:[#allocation2 + $0x68] sm:$0xff] %vm40_vm0, %v2688_v0  ;;  %v3036_v26 = vld [vmem:[%s5528_s0 + $0x60] sm:$0xff]  ;;  %v3043_v29 = vld [vmem:[%s5528_s0 + $0x68] sm:$0xff]  ;;  %v50_v30 = vsel %vm40_vm0, %v3022_v20, 0.0  ;;  %v81_v34 = vsel %vm40_vm0, %v3029_v23, 0.0 }
   0x8   :  { %194 = vst.msk [vmem:[#allocation2 + $0x70] sm:$0xff] %vm40_vm0, %v2688_v0  ;;  %195 = vst.msk [vmem:[#allocation2 + $0x78] sm:$0xff] %vm40_vm0, %v2688_v0  ;;  %v47_v27 = vadd.f32 %v46_v18, %v45_v21  ;;  %v78_v31 = vadd.f32 %v77_v22, %v76_v25  ;;  %v3050_v32 = vld [vmem:[%s5528_s0 + $0x70] sm:$0xff]  ;;  %v3057_v35 = vld [vmem:[%s5528_s0 + $0x78] sm:$0xff]  ;;  %v52_v36 = vsel %vm40_vm0, %v3036_v26, 0.0  ;;  %v83_v40 = vsel %vm40_vm0, %v3043_v29, 0.0 }
   0x9   :  { %196 = vst.msk [vmem:[#allocation2 + $0x80] sm:$0xff] %vm40_vm0, %v2688_v0  ;;  %197 = vst.msk [vmem:[#allocation2 + $0x88] sm:$0xff] %vm40_vm0, %v2688_v0  ;;  %v3064_v38 = vld [vmem:[%s5528_s0 + $0x80] sm:$0xff]  ;;  %v3071_v41 = vld [vmem:[%s5528_s0 + $0x88] sm:$0xff]  ;;  %v54_v42 = vsel %vm40_vm0, %v3050_v32, 0.0  ;;  %v85_v46 = vsel %vm40_vm0, %v3057_v35, 0.0 }
   0xa   :  { %198 = vst.msk [vmem:[#allocation2 + $0x90] sm:$0xff] %vm40_vm0, %v2688_v0  ;;  %199 = vst.msk [vmem:[#allocation2 + $0x98] sm:$0xff] %vm40_vm0, %v2688_v0  ;;  %v49_v33 = vadd.f32 %v48_v24, %v47_v27  ;;  %v80_v37 = vadd.f32 %v79_v28, %v78_v31  ;;  %v3078_v44 = vld [vmem:[%s5528_s0 + $0x90] sm:$0xff]  ;;  %v3085_v47 = vld [vmem:[%s5528_s0 + $0x98] sm:$0xff]  ;;  %v56_v48 = vsel %vm40_vm0, %v3064_v38, 0.0  ;;  %v87_v52 = vsel %vm40_vm0, %v3071_v41, 0.0 }
   0xb   :  { %200 = vst.msk [vmem:[#allocation2 + $0xa0] sm:$0xff] %vm40_vm0, %v2688_v0  ;;  %201 = vst.msk [vmem:[#allocation2 + $0xa8] sm:$0xff] %vm40_vm0, %v2688_v0  ;;  %v3092_v50 = vld [vmem:[%s5528_s0 + $0xa0] sm:$0xff]  ;;  %v3099_v53 = vld [vmem:[%s5528_s0 + $0xa8] sm:$0xff]  ;;  %v58_v54 = vsel %vm40_vm0, %v3078_v44, 0.0  ;;  %v89_v58 = vsel %vm40_vm0, %v3085_v47, 0.0 }
   0xc   :  { %202 = vst.msk [vmem:[#allocation2 + $0xb0] sm:$0xff] %vm40_vm0, %v2688_v0  ;;  %203 = vst.msk [vmem:[#allocation2 + $0xb8] sm:$0xff] %vm40_vm0, %v2688_v0  ;;  %v51_v39 = vadd.f32 %v50_v30, %v49_v33  ;;  %v82_v43 = vadd.f32 %v81_v34, %v80_v37  ;;  %v3106_v56 = vld [vmem:[%s5528_s0 + $0xb0] sm:$0xff]  ;;  %v3113_v59 = vld [vmem:[%s5528_s0 + $0xb8] sm:$0xff]  ;;  %v60_v60 = vsel %vm40_vm0, %v3092_v50, 0.0 }
   0xd   :  { %204 = vst.msk [vmem:[#allocation2 + $0xc0] sm:$0xff] %vm40_vm0, %v2688_v0  ;;  %205 = vst.msk [vmem:[#allocation2 + $0xc8] sm:$0xff] %vm40_vm0, %v2688_v0  ;;  %v3120_v62 = vld [vmem:[%s5528_s0 + $0xc0] sm:$0xff]  ;;  %v3127_v7 = vld [vmem:[%s5528_s0 + $0xc8] sm:$0xff]  ;;  %v62_v8 = vsel %vm40_vm0, %v3106_v56, 0.0  ;;  %v93_v15 = vsel %vm40_vm0, %v3113_v59, 0.0 }
   0xe   :  { %206 = vst.msk [vmem:[#allocation2 + $0xd0] sm:$0xff] %vm40_vm0, %v2688_v0  ;;  %207 = vst.msk [vmem:[#allocation2 + $0xd8] sm:$0xff] %vm40_vm0, %v2688_v0  ;;  %v53_v45 = vadd.f32 %v52_v36, %v51_v39  ;;  %v84_v49 = vadd.f32 %v83_v40, %v82_v43  ;;  %v3134_v13 = vld [vmem:[%s5528_s0 + $0xd0] sm:$0xff]  ;;  %v3141_v16 = vld [vmem:[%s5528_s0 + $0xd8] sm:$0xff]  ;;  %v64_v18 = vsel %vm40_vm0, %v3120_v62, 0.0  ;;  %v95_v24 = vsel %vm40_vm0, %v3127_v7, 0.0 }
   0xf   :  { %208 = vst.msk [vmem:[#allocation2 + $0xe0] sm:$0xff] %vm40_vm0, %v2688_v0  ;;  %209 = vst.msk [vmem:[#allocation2 + $0xe8] sm:$0xff] %vm40_vm0, %v2688_v0  ;;  %v3148_v21 = vld [vmem:[%s5528_s0 + $0xe0] sm:$0xff]  ;;  %v3155_v25 = vld [vmem:[%s5528_s0 + $0xe8] sm:$0xff]  ;;  %v66_v27 = vsel %vm40_vm0, %v3134_v13, 0.0  ;;  %v97_v33 = vsel %vm40_vm0, %v3141_v16, 0.0 }
  0x10   :  { %210 = vst.msk [vmem:[#allocation2 + $0xf0] sm:$0xff] %vm40_vm0, %v2688_v0  ;;  %211 = vst.msk [vmem:[#allocation2 + $0xf8] sm:$0xff] %vm40_vm0, %v2688_v0  ;;  %v55_v51 = vadd.f32 %v54_v42, %v53_v45  ;;  %v86_v55 = vadd.f32 %v85_v46, %v84_v49  ;;  %v3162_v30 = vld [vmem:[%s5528_s0 + $0xf0] sm:$0xff]  ;;  %v3169_v34 = vld [vmem:[%s5528_s0 + $0xf8] sm:$0xff]  ;;  %v68_v36 = vsel %vm40_vm0, %v3148_v21, 0.0  ;;  %v99_v40 = vsel %vm40_vm0, %v3155_v25, 0.0 }
  0x11   :  { %212 = vst.msk [vmem:[#allocation3] sm:$0xff] %vm40_vm0, %v2688_v0  ;;  %213 = vst.msk [vmem:[#allocation3 + $0x8] sm:$0xff] %vm40_vm0, %v2688_v0  ;;  %v70_v42 = vsel %vm40_vm0, %v3162_v30, 0.0  ;;  %v101_v46 = vsel %vm40_vm0, %v3169_v34, 0.0 }
  0x12   :  { %214 = vst.msk [vmem:[#allocation3 + $0x10] sm:$0xff] %vm40_vm0, %v2688_v0  ;;  %215 = vst.msk [vmem:[#allocation3 + $0x18] sm:$0xff] %vm40_vm0, %v2688_v0  ;;  %v57_v57 = vadd.f32 %v56_v48, %v55_v51  ;;  %v88_v61 = vadd.f32 %v87_v52, %v86_v55 }
  0x13   :  { %216 = vst.msk [vmem:[#allocation3 + $0x20] sm:$0xff] %vm40_vm0, %v2688_v0  ;;  %217 = vst.msk [vmem:[#allocation3 + $0x28] sm:$0xff] %vm40_vm0, %v2688_v0 }
  0x14   :  { %218 = vst.msk [vmem:[#allocation3 + $0x30] sm:$0xff] %vm40_vm0, %v2688_v0  ;;  %219 = vst.msk [vmem:[#allocation3 + $0x38] sm:$0xff] %vm40_vm0, %v2688_v0  ;;  %v59_v63 = vadd.f32 %v58_v54, %v57_v57  ;;  %v90_v9 = vadd.f32 %v89_v58, %v88_v61 }
  0x15   :  { %220 = vst.msk [vmem:[#allocation3 + $0x40] sm:$0xff] %vm40_vm0, %v2688_v0  ;;  %221 = vst.msk [vmem:[#allocation3 + $0x48] sm:$0xff] %vm40_vm0, %v2688_v0 }
  0x16   :  { %222 = vst.msk [vmem:[#allocation3 + $0x50] sm:$0xff] %vm40_vm0, %v2688_v0  ;;  %223 = vst.msk [vmem:[#allocation3 + $0x58] sm:$0xff] %vm40_vm0, %v2688_v0  ;;  %v61_v14 = vadd.f32 %v60_v60, %v59_v63 }
  0x17   :  { %224 = vst.msk [vmem:[#allocation3 + $0x60] sm:$0xff] %vm40_vm0, %v2688_v0  ;;  %225 = vst.msk [vmem:[#allocation3 + $0x68] sm:$0xff] %vm40_vm0, %v2688_v0 }
  0x18   :  { %226 = vst.msk [vmem:[#allocation3 + $0x70] sm:$0xff] %vm40_vm0, %v2688_v0  ;;  %227 = vst.msk [vmem:[#allocation3 + $0x78] sm:$0xff] %vm40_vm0, %v2688_v0  ;;  %v63_v22 = vadd.f32 %v62_v8, %v61_v14 }
  0x19   :  { %228 = vst.msk [vmem:[#allocation3 + $0x80] sm:$0xff] %vm40_vm0, %v2688_v0  ;;  %229 = vst.msk [vmem:[#allocation3 + $0x88] sm:$0xff] %vm40_vm0, %v2688_v0 }
  0x1a   :  { %230 = vst.msk [vmem:[#allocation3 + $0x90] sm:$0xff] %vm40_vm0, %v2688_v0  ;;  %231 = vst.msk [vmem:[#allocation3 + $0x98] sm:$0xff] %vm40_vm0, %v2688_v0  ;;  %v65_v31 = vadd.f32 %v64_v18, %v63_v22  ;;  %v246_v18 = vld [vmem:[#allocation2 + $0x18] sm:$0xff]  ;;  %v248_v22 = vld [vmem:[#allocation2 + $0x28] sm:$0xff] }
  0x1b   :  { %232 = vst.msk [vmem:[#allocation3 + $0xa0] sm:$0xff] %vm40_vm0, %v2688_v0  ;;  %233 = vst.msk [vmem:[#allocation3 + $0xa8] sm:$0xff] %vm40_vm0, %v2688_v0 }
  0x1c   :  { %234 = vst.msk [vmem:[#allocation3 + $0xb0] sm:$0xff] %vm40_vm0, %v2688_v0  ;;  %235 = vst.msk [vmem:[#allocation3 + $0xb8] sm:$0xff] %vm40_vm0, %v2688_v0  ;;  %v67_v39 = vadd.f32 %v66_v27, %v65_v31 }
  0x1d   :  { %236 = vst.msk [vmem:[#allocation3 + $0xc0] sm:$0xff] %vm40_vm0, %v2688_v0  ;;  %237 = vst.msk [vmem:[#allocation3 + $0xc8] sm:$0xff] %vm40_vm0, %v2688_v0 }
  0x1e   :  { %238 = vst.msk [vmem:[#allocation3 + $0xd0] sm:$0xff] %vm40_vm0, %v2688_v0  ;;  %239 = vst.msk [vmem:[#allocation3 + $0xd8] sm:$0xff] %vm40_vm0, %v2688_v0  ;;  %v69_v45 = vadd.f32 %v68_v36, %v67_v39  ;;  %v250_v36 = vld [vmem:[#allocation2 + $0x38] sm:$0xff]  ;;  %v252_v39 = vld [vmem:[#allocation2 + $0x48] sm:$0xff] }
  0x1f   :  { %240 = vst.msk [vmem:[#allocation3 + $0xe0] sm:$0xff] %vm40_vm0, %v2688_v0  ;;  %241 = vst.msk [vmem:[#allocation3 + $0xe8] sm:$0xff] %vm40_vm0, %v2688_v0 }
  0x20   :  { %242 = vst.msk [vmem:[#allocation3 + $0xf0] sm:$0xff] %vm40_vm0, %v2688_v0  ;;  %243 = vst.msk [vmem:[#allocation3 + $0xf8] sm:$0xff] %vm40_vm0, %v2688_v0  ;;  %v71_v49 = vadd.f32 %v70_v42, %v69_v45  ;;  %v253_v45 = vld [vmem:[#allocation2 + $0x50] sm:$0xff] }
  0x21   :  { %888 = vst.msk [vmem:[#allocation4] sm:$0xff] %vm40_vm0, %v2688_v0  ;;  %889 = vst.msk [vmem:[#allocation4 + $0x8] sm:$0xff] %vm40_vm0, %v2688_v0 }
  0x22   :  { %890 = vst.msk [vmem:[#allocation4 + $0x10] sm:$0xff] %vm40_vm0, %v2688_v0  ;;  %891 = vst.msk [vmem:[#allocation4 + $0x18] sm:$0xff] %vm40_vm0, %v2688_v0  ;;  %v104_v52 = vmul.f32 0.0625, %v71_v49 }
  0x23   :  { %892 = vst.msk [vmem:[#allocation4 + $0x20] sm:$0xff] %vm40_vm0, %v2688_v0  ;;  %893 = vst.msk [vmem:[#allocation4 + $0x28] sm:$0xff] %vm40_vm0, %v2688_v0 }
  0x24   :  { %894 = vst.msk [vmem:[#allocation4 + $0x30] sm:$0xff] %vm40_vm0, %v2688_v0  ;;  %895 = vst.msk [vmem:[#allocation4 + $0x38] sm:$0xff] %vm40_vm0, %v2688_v0  ;;  %v106_v55 = vsel %vm40_vm0, %v104_v52, 0.0  ;;  %v257_v52 = vld [vmem:[#allocation2 + $0x70] sm:$0xff] }
  0x25   :  { %896 = vst.msk [vmem:[#allocation4 + $0x40] sm:$0xff] %vm40_vm0, %v2688_v0  ;;  %897 = vst.msk [vmem:[#allocation4 + $0x48] sm:$0xff] %vm40_vm0, %v2688_v0 }
  0x26   :  { %898 = vst.msk [vmem:[#allocation4 + $0x50] sm:$0xff] %vm40_vm0, %v2688_v0  ;;  %899 = vst.msk [vmem:[#allocation4 + $0x58] sm:$0xff] %vm40_vm0, %v2688_v0 }
  0x27   :  { %900 = vst.msk [vmem:[#allocation4 + $0x60] sm:$0xff] %vm40_vm0, %v2688_v0  ;;  %901 = vst.msk [vmem:[#allocation4 + $0x68] sm:$0xff] %vm40_vm0, %v2688_v0 }
  0x28   :  { %902 = vst.msk [vmem:[#allocation4 + $0x70] sm:$0xff] %vm40_vm0, %v2688_v0  ;;  %903 = vst.msk [vmem:[#allocation4 + $0x78] sm:$0xff] %vm40_vm0, %v2688_v0 }
  0x29   :  { %904 = vst.msk [vmem:[#allocation4 + $0x80] sm:$0xff] %vm40_vm0, %v2688_v0  ;;  %905 = vst.msk [vmem:[#allocation4 + $0x88] sm:$0xff] %vm40_vm0, %v2688_v0 }
  0x2a   :  { %906 = vst.msk [vmem:[#allocation4 + $0x90] sm:$0xff] %vm40_vm0, %v2688_v0  ;;  %907 = vst.msk [vmem:[#allocation4 + $0x98] sm:$0xff] %vm40_vm0, %v2688_v0 }
  0x2b   :  { %908 = vst.msk [vmem:[#allocation4 + $0xa0] sm:$0xff] %vm40_vm0, %v2688_v0  ;;  %909 = vst.msk [vmem:[#allocation4 + $0xa8] sm:$0xff] %vm40_vm0, %v2688_v0 }
  0x2c   :  { %910 = vst.msk [vmem:[#allocation4 + $0xb0] sm:$0xff] %vm40_vm0, %v2688_v0  ;;  %911 = vst.msk [vmem:[#allocation4 + $0xb8] sm:$0xff] %vm40_vm0, %v2688_v0 }
  0x2d   :  { %912 = vst.msk [vmem:[#allocation4 + $0xc0] sm:$0xff] %vm40_vm0, %v2688_v0  ;;  %913 = vst.msk [vmem:[#allocation4 + $0xc8] sm:$0xff] %vm40_vm0, %v2688_v0 }
  0x2e   :  { %914 = vst.msk [vmem:[#allocation4 + $0xd0] sm:$0xff] %vm40_vm0, %v2688_v0  ;;  %915 = vst.msk [vmem:[#allocation4 + $0xd8] sm:$0xff] %vm40_vm0, %v2688_v0 }
  0x2f   :  { %916 = vst.msk [vmem:[#allocation4 + $0xe0] sm:$0xff] %vm40_vm0, %v2688_v0  ;;  %917 = vst.msk [vmem:[#allocation4 + $0xe8] sm:$0xff] %vm40_vm0, %v2688_v0 }
  0x30   :  { %918 = vst.msk [vmem:[#allocation4 + $0xf0] sm:$0xff] %vm40_vm0, %v2688_v0  ;;  %919 = vst.msk [vmem:[#allocation4 + $0xf8] sm:$0xff] %vm40_vm0, %v2688_v0 }
  0x31   :  { %920 = vst.msk [vmem:[#allocation5] sm:$0xff] %vm40_vm0, %v2688_v0  ;;  %921 = vst.msk [vmem:[#allocation5 + $0x8] sm:$0xff] %vm40_vm0, %v2688_v0 }
  0x32   :  { %922 = vst.msk [vmem:[#allocation5 + $0x10] sm:$0xff] %vm40_vm0, %v2688_v0  ;;  %923 = vst.msk [vmem:[#allocation5 + $0x18] sm:$0xff] %vm40_vm0, %v2688_v0 }
  0x33   :  { %924 = vst.msk [vmem:[#allocation5 + $0x20] sm:$0xff] %vm40_vm0, %v2688_v0  ;;  %925 = vst.msk [vmem:[#allocation5 + $0x28] sm:$0xff] %vm40_vm0, %v2688_v0 }
  0x34   :  { %926 = vst.msk [vmem:[#allocation5 + $0x30] sm:$0xff] %vm40_vm0, %v2688_v0  ;;  %927 = vst.msk [vmem:[#allocation5 + $0x38] sm:$0xff] %vm40_vm0, %v2688_v0 }
  0x35   :  { %928 = vst.msk [vmem:[#allocation5 + $0x40] sm:$0xff] %vm40_vm0, %v2688_v0  ;;  %929 = vst.msk [vmem:[#allocation5 + $0x48] sm:$0xff] %vm40_vm0, %v2688_v0 }
  0x36   :  { %930 = vst.msk [vmem:[#allocation5 + $0x50] sm:$0xff] %vm40_vm0, %v2688_v0  ;;  %931 = vst.msk [vmem:[#allocation5 + $0x58] sm:$0xff] %vm40_vm0, %v2688_v0 }
  0x37   :  { %932 = vst.msk [vmem:[#allocation5 + $0x60] sm:$0xff] %vm40_vm0, %v2688_v0  ;;  %933 = vst.msk [vmem:[#allocation5 + $0x68] sm:$0xff] %vm40_vm0, %v2688_v0 }
  0x38   :  { %934 = vst.msk [vmem:[#allocation5 + $0x70] sm:$0xff] %vm40_vm0, %v2688_v0  ;;  %935 = vst.msk [vmem:[#allocation5 + $0x78] sm:$0xff] %vm40_vm0, %v2688_v0 }
  0x39   :  { %936 = vst.msk [vmem:[#allocation5 + $0x80] sm:$0xff] %vm40_vm0, %v2688_v0  ;;  %937 = vst.msk [vmem:[#allocation5 + $0x88] sm:$0xff] %vm40_vm0, %v2688_v0 }
  0x3a   :  { %938 = vst.msk [vmem:[#allocation5 + $0x90] sm:$0xff] %vm40_vm0, %v2688_v0  ;;  %939 = vst.msk [vmem:[#allocation5 + $0x98] sm:$0xff] %vm40_vm0, %v2688_v0 }
  0x3b   :  { %940 = vst.msk [vmem:[#allocation5 + $0xa0] sm:$0xff] %vm40_vm0, %v2688_v0  ;;  %941 = vst.msk [vmem:[#allocation5 + $0xa8] sm:$0xff] %vm40_vm0, %v2688_v0 }
  0x3c   :  { %942 = vst.msk [vmem:[#allocation5 + $0xb0] sm:$0xff] %vm40_vm0, %v2688_v0  ;;  %943 = vst.msk [vmem:[#allocation5 + $0xb8] sm:$0xff] %vm40_vm0, %v2688_v0 }
  0x3d   :  { %944 = vst.msk [vmem:[#allocation5 + $0xc0] sm:$0xff] %vm40_vm0, %v2688_v0  ;;  %945 = vst.msk [vmem:[#allocation5 + $0xc8] sm:$0xff] %vm40_vm0, %v2688_v0 }
  0x3e   :  { %946 = vst.msk [vmem:[#allocation5 + $0xd0] sm:$0xff] %vm40_vm0, %v2688_v0  ;;  %947 = vst.msk [vmem:[#allocation5 + $0xd8] sm:$0xff] %vm40_vm0, %v2688_v0 }
  0x3f   :  { %948 = vst.msk [vmem:[#allocation5 + $0xe0] sm:$0xff] %vm40_vm0, %v2688_v0  ;;  %949 = vst.msk [vmem:[#allocation5 + $0xe8] sm:$0xff] %vm40_vm0, %v2688_v0 }
  0x40   :  { %950 = vst.msk [vmem:[#allocation5 + $0xf0] sm:$0xff] %vm40_vm0, %v2688_v0  ;;  %951 = vst.msk [vmem:[#allocation5 + $0xf8] sm:$0xff] %vm40_vm0, %v2688_v0  ;;  %v91_v0 = vsel %vm40_vm0, %v3099_v53, 0.0 }
  0x41   :  { %v92_v19 = vadd.f32 %v91_v0, %v90_v9  ;;  %5682 = vst [vmem:[#allocation6_spill] sm:$0xff] %v3162_v30  ;;  %5683 = vst [vmem:[#allocation7_spill] sm:$0xff] %v3169_v34 }
  0x43   :  { %v94_v28 = vadd.f32 %v93_v15, %v92_v19  ;;  %v245_v15 = vld [vmem:[#allocation2 + $0x10] sm:$0xff]  ;;  %v247_v19 = vld [vmem:[#allocation2 + $0x20] sm:$0xff] }
  0x45   :  { %v96_v37 = vadd.f32 %v95_v24, %v94_v28  ;;  %v249_v24 = vld [vmem:[#allocation2 + $0x30] sm:$0xff] }
  0x47   :  { %v98_v43 = vadd.f32 %v97_v33, %v96_v37  ;;  %v251_v37 = vld [vmem:[#allocation2 + $0x40] sm:$0xff] }
  0x49   :  { %v100_v48 = vadd.f32 %v99_v40, %v98_v43 }
  0x4b   :  { %v102_v51 = vadd.f32 %v101_v46, %v100_v48  ;;  %v254_v46 = vld [vmem:[#allocation2 + $0x58] sm:$0xff] }
  0x4d   :  { %v105_v54 = vmul.f32 0.0625, %v102_v51  ;;  %v256_v51 = vld [vmem:[#allocation2 + $0x68] sm:$0xff] }
  0x4f   :  { %v107_v57 = vsel %vm40_vm0, %v105_v54, 0.0 }
  0x50   :  { %v108_v58 = vadd.f32 %v107_v57, %v106_v55 }
  0x52   :  { %v109_v60 = vrot.slane %v108_v58, 4 }
  0x54   :  { %v110_v61 = vadd.f32 %v109_v60, %v108_v58  ;;  %v258_v60 = vld [vmem:[#allocation2 + $0x78] sm:$0xff] }
  0x56   :  { %v111_v63 = vrot.slane %v110_v61, 2 }
  0x58   :  { %v112_v0 = vadd.f32 %v111_v63, %v110_v61  ;;  %v259_v61 = vld [vmem:[#allocation2 + $0x80] sm:$0xff]  ;;  %v260_v63 = vld [vmem:[#allocation2 + $0x88] sm:$0xff] }
  0x5a   :  { %v113_v8 = vrot.slane %v112_v0, 1 }
  0x5c   :  { %v114_v9 = vadd.f32 %v113_v8, %v112_v0 }
  0x5e   :  { %v3181_v14 = vmul.f32 0.0625, %v114_v9 }
  0x60   :  { %5684 = vst [vmem:[#allocation8_spill] sm:$0xff] %v3181_v14  ;;  %v3185_v27 = vsub.f32 %v2958_v1, %v3181_v14  ;;  %v3189_v28 = vsub.f32 %v2968_v3, %v3181_v14  ;;  %v3193_v31 = vsub.f32 %v2963_v2, %v3181_v14  ;;  %v3197_v33 = vsub.f32 %v2973_v4, %v3181_v14 }
  0x61   :  { %v3201_v40 = vsub.f32 %v2978_v5, %v3181_v14  ;;  %v3205_v1 = vsub.f32 %v2983_v6, %v3181_v14  ;;  %v3209_v3 = vsub.f32 %v2994_v10, %v3181_v14  ;;  %v3213_v2 = vsub.f32 %v2999_v11, %v3181_v14  ;;  %v255_v11 = vld [vmem:[#allocation2 + $0x60] sm:$0xff] }
  0x62   :  { %v275_v4 = vadd.f32 %v245_v15, %v3185_v27  ;;  %v276_v42 = vadd.f32 %v246_v18, %v3193_v31  ;;  %v277_v43 = vadd.f32 %v247_v19, %v3189_v28  ;;  %v278_v5 = vadd.f32 %v248_v22, %v3197_v33  ;;  %v261_v15 = vld [vmem:[#allocation2 + $0x90] sm:$0xff]  ;;  %v262_v18 = vld [vmem:[#allocation2 + $0x98] sm:$0xff] }
  0x63   :  { %v279_v6 = vadd.f32 %v249_v24, %v3201_v40  ;;  %v280_v48 = vadd.f32 %v250_v36, %v3205_v1  ;;  %v281_v10 = vadd.f32 %v251_v37, %v3209_v3  ;;  %v282_v49 = vadd.f32 %v252_v39, %v3213_v2  ;;  %v264_v24 = vld [vmem:[#allocation2 + $0xa8] sm:$0xff]  ;;  %v265_v36 = vld [vmem:[#allocation2 + $0xb0] sm:$0xff] }
  0x64   :  { %305 = vst.msk [vmem:[#allocation2 + $0x10] sm:$0xff] %vm40_vm0, %v275_v4  ;;  %306 = vst.msk [vmem:[#allocation2 + $0x18] sm:$0xff] %vm40_vm0, %v276_v42  ;;  %v3229_v54 = vsub.f32 %v3004_v12, %v3181_v14  ;;  %v3233_v55 = vsub.f32 %v3015_v17, %v3181_v14  ;;  %v3237_v57 = vsub.f32 %v3022_v20, %v3181_v14 }
  0x65   :  { %307 = vst.msk [vmem:[#allocation2 + $0x20] sm:$0xff] %vm40_vm0, %v277_v43  ;;  %308 = vst.msk [vmem:[#allocation2 + $0x28] sm:$0xff] %vm40_vm0, %v278_v5  ;;  %v3241_v58 = vsub.f32 %v3029_v23, %v3181_v14  ;;  %v3249_v12 = vsub.f32 %v3036_v26, %v3181_v14  ;;  %v3253_v17 = vsub.f32 %v3043_v29, %v3181_v14  ;;  %v266_v43 = vld [vmem:[#allocation2 + $0xb8] sm:$0xff]  ;;  %v267_v5 = vld [vmem:[#allocation2 + $0xc0] sm:$0xff] }
  0x66   :  { %309 = vst.msk [vmem:[#allocation2 + $0x30] sm:$0xff] %vm40_vm0, %v279_v6  ;;  %310 = vst.msk [vmem:[#allocation2 + $0x38] sm:$0xff] %vm40_vm0, %v280_v48  ;;  %v3257_v20 = vsub.f32 %v3050_v32, %v3181_v14  ;;  %v3261_v23 = vsub.f32 %v3057_v35, %v3181_v14  ;;  %v283_v0 = vadd.f32 %v253_v45, %v3229_v54  ;;  %v263_v35 = vld [vmem:[#allocation2 + $0xa0] sm:$0xff]  ;;  %v268_v45 = vld [vmem:[#allocation2 + $0xc8] sm:$0xff] }
  0x67   :  { %311 = vst.msk [vmem:[#allocation2 + $0x40] sm:$0xff] %vm40_vm0, %v281_v10  ;;  %312 = vst.msk [vmem:[#allocation2 + $0x48] sm:$0xff] %vm40_vm0, %v282_v49  ;;  %v284_v8 = vadd.f32 %v254_v46, %v3233_v55  ;;  %v285_v9 = vadd.f32 %v255_v11, %v3237_v57  ;;  %v286_v26 = vadd.f32 %v256_v51, %v3241_v58  ;;  %v269_v10 = vld [vmem:[#allocation2 + $0xd0] sm:$0xff]  ;;  %v426_v49 = vld [vmem:[#allocation2] sm:$0xff] }
  0x68   :  { %v287_v29 = vadd.f32 %v257_v52, %v3249_v12  ;;  %v288_v19 = vadd.f32 %v258_v60, %v3253_v17  ;;  %v289_v32 = vadd.f32 %v259_v61, %v3257_v20  ;;  %v290_v22 = vadd.f32 %v260_v63, %v3261_v23  ;;  %313 = vst.msk [vmem:[#allocation2 + $0x50] sm:$0xff] %vm40_vm0, %v283_v0  ;;  %v270_v52 = vld [vmem:[#allocation2 + $0xd8] sm:$0xff]  ;;  %v271_v60 = vld [vmem:[#allocation2 + $0xe0] sm:$0xff]  ;;  %v272_v61 = vld [vmem:[#allocation2 + $0xe8] sm:$0xff] }
  0x69   :  { %314 = vst.msk [vmem:[#allocation2 + $0x58] sm:$0xff] %vm40_vm0, %v284_v8  ;;  %315 = vst.msk [vmem:[#allocation2 + $0x60] sm:$0xff] %vm40_vm0, %v285_v9  ;;  %v3277_v37 = vsub.f32 %v3064_v38, %v3181_v14  ;;  %v3281_v39 = vsub.f32 %v3071_v41, %v3181_v14  ;;  %v3285_v4 = vsub.f32 %v3078_v44, %v3181_v14 }
  0x6a   :  { %316 = vst.msk [vmem:[#allocation2 + $0x68] sm:$0xff] %vm40_vm0, %v286_v26  ;;  %v3289_v42 = vsub.f32 %v3085_v47, %v3181_v14  ;;  %317 = vst.msk [vmem:[#allocation2 + $0x70] sm:$0xff] %vm40_vm0, %v287_v29  ;;  %v3297_v38 = vsub.f32 %v3092_v50, %v3181_v14  ;;  %v3301_v41 = vsub.f32 %v3099_v53, %v3181_v14  ;;  %v427_v53 = vld [vmem:[#allocation2 + $0x8] sm:$0xff]  ;;  %v273_v26 = vld [vmem:[#allocation2 + $0xf0] sm:$0xff] }
  0x6b   :  { %318 = vst.msk [vmem:[#allocation2 + $0x78] sm:$0xff] %vm40_vm0, %v288_v19  ;;  %319 = vst.msk [vmem:[#allocation2 + $0x80] sm:$0xff] %vm40_vm0, %v289_v32  ;;  %v3305_v44 = vsub.f32 %v3106_v56, %v3181_v14  ;;  %v3309_v47 = vsub.f32 %v3113_v59, %v3181_v14  ;;  %v291_v46 = vadd.f32 %v261_v15, %v3277_v37  ;;  %v274_v15 = vld [vmem:[#allocation2 + $0xf8] sm:$0xff] }
  0x6c   :  { %320 = vst.msk [vmem:[#allocation2 + $0x88] sm:$0xff] %vm40_vm0, %v290_v22  ;;  %5685 = vst [vmem:[#allocation9_spill] sm:$0xff] %v3297_v38  ;;  %v292_v6 = vadd.f32 %v262_v18, %v3281_v39  ;;  %v293_v48 = vadd.f32 %v263_v35, %v3285_v4  ;;  %v294_v50 = vadd.f32 %v264_v24, %v3289_v42  ;;  %v336_v22 = vld [vmem:[#allocation3 + $0x10] sm:$0xff]  ;;  %v337_v35 = vld [vmem:[#allocation3 + $0x18] sm:$0xff] }
  0x6d   :  { %5686 = vst [vmem:[#allocation10_spill] sm:$0xff] %v3301_v41  ;;  %5687 = vst [vmem:[#allocation11_spill] sm:$0xff] %v3305_v44  ;;  %v295_v11 = vadd.f32 %v265_v36, %v3297_v38  ;;  %v296_v56 = vadd.f32 %v266_v43, %v3301_v41  ;;  %v297_v51 = vadd.f32 %v267_v5, %v3305_v44  ;;  %v339_v5 = vld [vmem:[#allocation3 + $0x28] sm:$0xff] }
  0x6e   :  { %5688 = vst [vmem:[#allocation12_spill] sm:$0xff] %v3309_v47  ;;  %v298_v59 = vadd.f32 %v268_v45, %v3309_v47  ;;  %321 = vst.msk [vmem:[#allocation2 + $0x90] sm:$0xff] %vm40_vm0, %v291_v46  ;;  %v3325_v63 = vsub.f32 %v3120_v62, %v3181_v14  ;;  %v3329_v0 = vsub.f32 %v3127_v7, %v3181_v14  ;;  %v340_v45 = vld [vmem:[#allocation3 + $0x30] sm:$0xff]  ;;  %v341_v46 = vld [vmem:[#allocation3 + $0x38] sm:$0xff] }
  0x6f   :  { %322 = vst.msk [vmem:[#allocation2 + $0x98] sm:$0xff] %vm40_vm0, %v292_v6  ;;  %323 = vst.msk [vmem:[#allocation2 + $0xa0] sm:$0xff] %vm40_vm0, %v293_v48  ;;  %v3333_v8 = vsub.f32 %v3134_v13, %v3181_v14  ;;  %v3337_v9 = vsub.f32 %v3141_v16, %v3181_v14  ;;  %v3345_v62 = vsub.f32 %v3148_v21, %v3181_v14  ;;  %v338_v21 = vld [vmem:[#allocation3 + $0x20] sm:$0xff] }
  0x70   :  { %324 = vst.msk [vmem:[#allocation2 + $0xa8] sm:$0xff] %vm40_vm0, %v294_v50  ;;  %5689 = vst [vmem:[#allocation13_spill] sm:$0xff] %v3325_v63  ;;  %v3349_v7 = vsub.f32 %v3155_v25, %v3181_v14  ;;  %v428_v13 = vadd.f32 %v426_v49, %v3189_v28  ;;  %v429_v16 = vadd.f32 %v427_v53, %v3197_v33  ;;  %v342_v49 = vld [vmem:[#allocation3 + $0x40] sm:$0xff]  ;;  %v343_v53 = vld [vmem:[#allocation3 + $0x48] sm:$0xff] }
  0x71   :  { %5690 = vst [vmem:[#allocation14_spill] sm:$0xff] %v3329_v0  ;;  %5691 = vst [vmem:[#allocation15_spill] sm:$0xff] %v3333_v8  ;;  %v299_v18 = vadd.f32 %v269_v10, %v3325_v63  ;;  %v300_v29 = vadd.f32 %v270_v52, %v3329_v0  ;;  %v301_v19 = vadd.f32 %v271_v60, %v3333_v8 }
  0x72   :  { %5692 = vst [vmem:[#allocation16_spill] sm:$0xff] %v3337_v9  ;;  %325 = vst.msk [vmem:[#allocation2 + $0xb0] sm:$0xff] %vm40_vm0, %v295_v11  ;;  %v302_v32 = vadd.f32 %v272_v61, %v3337_v9  ;;  %v303_v24 = vadd.f32 %v273_v26, %v3345_v62  ;;  %v304_v25 = vadd.f32 %v274_v15, %v3349_v7  ;;  %v344_v15 = vld [vmem:[#allocation3 + $0x50] sm:$0xff] }
  0x73   :  { %326 = vst.msk [vmem:[#allocation2 + $0xb8] sm:$0xff] %vm40_vm0, %v296_v56  ;;  %327 = vst.msk [vmem:[#allocation2 + $0xc0] sm:$0xff] %vm40_vm0, %v297_v51  ;;  %v3363_v36 = vmul.f32 %v3185_v27, %v3185_v27  ;;  %v3367_v43 = vmul.f32 %v3193_v31, %v3193_v31  ;;  %v3375_v6 = vmul.f32 %v3189_v28, %v3189_v28 }
  0x74   :  { %328 = vst.msk [vmem:[#allocation2 + $0xc8] sm:$0xff] %vm40_vm0, %v298_v59  ;;  %5693 = vst [vmem:[#allocation17_spill] sm:$0xff] %v3345_v62  ;;  %v3379_v48 = vmul.f32 %v3197_v33, %v3197_v33  ;;  %v3383_v50 = vmul.f32 %v3201_v40, %v3201_v40  ;;  %v3387_v10 = vmul.f32 %v3205_v1, %v3205_v1 }
  0x75   :  { %5694 = vst [vmem:[#allocation18_spill] sm:$0xff] %v3349_v7  ;;  %430 = vst.msk [vmem:[#allocation2] sm:$0xff] %vm40_vm0, %v428_v13  ;;  %v366_v11 = vadd.f32 %v336_v22, %v3363_v36  ;;  %v367_v56 = vadd.f32 %v337_v35, %v3367_v43  ;;  %v3395_v51 = vmul.f32 %v3209_v3, %v3209_v3  ;;  %v345_v13 = vld [vmem:[#allocation3 + $0x58] sm:$0xff]  ;;  %v347_v22 = vld [vmem:[#allocation3 + $0x68] sm:$0xff] }
  0x76   :  { %431 = vst.msk [vmem:[#allocation2 + $0x8] sm:$0xff] %vm40_vm0, %v429_v16  ;;  %5695 = vst [vmem:[#allocation19_spill] sm:$0xff] %v3363_v36  ;;  %v3399_v59 = vmul.f32 %v3213_v2, %v3213_v2  ;;  %v368_v52 = vadd.f32 %v338_v21, %v3375_v6  ;;  %v369_v60 = vadd.f32 %v339_v5, %v3379_v48  ;;  %v346_v16 = vld [vmem:[#allocation3 + $0x60] sm:$0xff]  ;;  %v348_v35 = vld [vmem:[#allocation3 + $0x70] sm:$0xff] }
  0x77   :  { %5696 = vst [vmem:[#allocation20_spill] sm:$0xff] %v3367_v43  ;;  %329 = vst.msk [vmem:[#allocation2 + $0xd0] sm:$0xff] %vm40_vm0, %v299_v18  ;;  %v370_v61 = vadd.f32 %v340_v45, %v3383_v50  ;;  %v371_v26 = vadd.f32 %v341_v46, %v3387_v10  ;;  %v372_v18 = vadd.f32 %v342_v49, %v3395_v51  ;;  %v349_v21 = vld [vmem:[#allocation3 + $0x78] sm:$0xff]  ;;  %v350_v46 = vld [vmem:[#allocation3 + $0x80] sm:$0xff] }
  0x78   :  { %330 = vst.msk [vmem:[#allocation2 + $0xd8] sm:$0xff] %vm40_vm0, %v300_v29  ;;  %331 = vst.msk [vmem:[#allocation2 + $0xe0] sm:$0xff] %vm40_vm0, %v301_v19  ;;  %v373_v29 = vadd.f32 %v343_v53, %v3399_v59  ;;  %v3411_v19 = vmul.f32 %v3229_v54, %v3229_v54  ;;  %v3431_v5 = vmul.f32 %v3249_v12, %v3249_v12  ;;  %v351_v49 = vld [vmem:[#allocation3 + $0x88] sm:$0xff]  ;;  %v441_v43 = vld [vmem:[#allocation2 + $0x18] sm:$0xff] }
  0x79   :  { %332 = vst.msk [vmem:[#allocation2 + $0xe8] sm:$0xff] %vm40_vm0, %v302_v32  ;;  %5697 = vst [vmem:[#allocation21_spill] sm:$0xff] %v3375_v6  ;;  %v3415_v32 = vmul.f32 %v3233_v55, %v3233_v55  ;;  %v3435_v45 = vmul.f32 %v3253_v17, %v3253_v17 }
  0x7a   :  { %5698 = vst [vmem:[#allocation22_spill] sm:$0xff] %v3379_v48  ;;  %5699 = vst [vmem:[#allocation23_spill] sm:$0xff] %v3383_v50  ;;  %v374_v53 = vadd.f32 %v344_v15, %v3411_v19  ;;  %v353_v15 = vld [vmem:[#allocation3 + $0x98] sm:$0xff]  ;;  %v432_v50 = vld [vmem:[#allocation3] sm:$0xff] }
  0x7b   :  { %5700 = vst [vmem:[#allocation24_spill] sm:$0xff] %v3387_v10  ;;  %333 = vst.msk [vmem:[#allocation2 + $0xf0] sm:$0xff] %vm40_vm0, %v303_v24  ;;  %v3423_v24 = vmul.f32 %v3237_v57, %v3237_v57  ;;  %v365_v10 = vld [vmem:[#allocation3 + $0xf8] sm:$0xff]  ;;  %v434_v30 = vadd.f32 %v432_v50, %v3375_v6 }
  0x7c   :  { %334 = vst.msk [vmem:[#allocation2 + $0xf8] sm:$0xff] %vm40_vm0, %v304_v25  ;;  %5701 = vst [vmem:[#allocation25_spill] sm:$0xff] %v3395_v51  ;;  %v3427_v25 = vmul.f32 %v3241_v58, %v3241_v58  ;;  %v364_v51 = vld [vmem:[#allocation3 + $0xf0] sm:$0xff] }
  0x7d   :  { %5702 = vst [vmem:[#allocation26_spill] sm:$0xff] %v3399_v59  ;;  %396 = vst.msk [vmem:[#allocation3 + $0x10] sm:$0xff] %vm40_vm0, %v366_v11  ;;  %v375_v11 = vadd.f32 %v345_v13, %v3415_v32  ;;  %v355_v13 = vld [vmem:[#allocation3 + $0xa8] sm:$0xff] }
  0x7e   :  { %397 = vst.msk [vmem:[#allocation3 + $0x18] sm:$0xff] %vm40_vm0, %v367_v56  ;;  %5703 = vst [vmem:[#allocation27_spill] sm:$0xff] %v3411_v19  ;;  %v3443_v56 = vmul.f32 %v3257_v20, %v3257_v20  ;;  %v354_v19 = vld [vmem:[#allocation3 + $0xa0] sm:$0xff] }
  0x7f   :  { %5704 = vst [vmem:[#allocation28_spill] sm:$0xff] %v3415_v32  ;;  %398 = vst.msk [vmem:[#allocation3 + $0x20] sm:$0xff] %vm40_vm0, %v368_v52  ;;  %v3447_v52 = vmul.f32 %v3261_v23, %v3261_v23 }
  0x80   :  { %399 = vst.msk [vmem:[#allocation3 + $0x28] sm:$0xff] %vm40_vm0, %v369_v60  ;;  %400 = vst.msk [vmem:[#allocation3 + $0x30] sm:$0xff] %vm40_vm0, %v370_v61  ;;  %v352_v60 = vld [vmem:[#allocation3 + $0x90] sm:$0xff]  ;;  %v376_v61 = vadd.f32 %v346_v16, %v3423_v24  ;;  %v380_v32 = vadd.f32 %v350_v46, %v3443_v56  ;;  %v3459_v16 = vmul.f32 %v3277_v37, %v3277_v37 }
  0x81   :  { %401 = vst.msk [vmem:[#allocation3 + $0x38] sm:$0xff] %vm40_vm0, %v371_v26  ;;  %5705 = vst [vmem:[#allocation29_spill] sm:$0xff] %v3423_v24  ;;  %v377_v26 = vadd.f32 %v347_v22, %v3427_v25  ;;  %v381_v59 = vadd.f32 %v351_v49, %v3447_v52  ;;  %v3463_v22 = vmul.f32 %v3281_v39, %v3281_v39  ;;  %v363_v24 = vld [vmem:[#allocation3 + $0xe8] sm:$0xff] }
  0x82   :  { %5706 = vst [vmem:[#allocation30_spill] sm:$0xff] %v3427_v25  ;;  %5707 = vst [vmem:[#allocation31_spill] sm:$0xff] %v3431_v5  ;;  %v3471_v46 = vmul.f32 %v3285_v4, %v3285_v4  ;;  %v3475_v49 = vmul.f32 %v3289_v42, %v3289_v42  ;;  %v362_v25 = vld [vmem:[#allocation3 + $0xe0] sm:$0xff] }
  0x83   :  { %5708 = vst [vmem:[#allocation32_spill] sm:$0xff] %v3435_v45  ;;  %402 = vst.msk [vmem:[#allocation3 + $0x40] sm:$0xff] %vm40_vm0, %v372_v18  ;;  %v378_v18 = vadd.f32 %v348_v35, %v3431_v5  ;;  %v356_v35 = vld [vmem:[#allocation3 + $0xb0] sm:$0xff]  ;;  %v3495_v5 = vmul.f32 %v3309_v47, %v3309_v47  ;;  %v454_v47 = vld [vmem:[#allocation2 + $0x80] sm:$0xff] }
  0x84   :  { %403 = vst.msk [vmem:[#allocation3 + $0x48] sm:$0xff] %vm40_vm0, %v373_v29  ;;  %5709 = vst [vmem:[#allocation33_spill] sm:$0xff] %v3443_v56  ;;  %v379_v29 = vadd.f32 %v349_v21, %v3435_v45  ;;  %v357_v21 = vld [vmem:[#allocation3 + $0xb8] sm:$0xff]  ;;  %v358_v45 = vld [vmem:[#allocation3 + $0xc0] sm:$0xff]  ;;  %v3491_v56 = vmul.f32 %v3305_v44, %v3305_v44 }
  0x85   :  { %5710 = vst [vmem:[#allocation34_spill] sm:$0xff] %v3447_v52  ;;  %404 = vst.msk [vmem:[#allocation3 + $0x50] sm:$0xff] %vm40_vm0, %v374_v53  ;;  %v3479_v53 = vmul.f32 %v3297_v38, %v3297_v38  ;;  %v383_v52 = vadd.f32 %v353_v15, %v3463_v22 }
  0x86   :  { %405 = vst.msk [vmem:[#allocation3 + $0x58] sm:$0xff] %vm40_vm0, %v375_v11  ;;  %5711 = vst [vmem:[#allocation35_spill] sm:$0xff] %v3459_v16  ;;  %v3483_v11 = vmul.f32 %v3301_v41, %v3301_v41  ;;  %v388_v36 = vadd.f32 %v358_v45, %v3491_v56  ;;  %v3519_v45 = vmul.f32 %v3333_v8, %v3333_v8  ;;  %v453_v8 = vld [vmem:[#allocation2 + $0x78] sm:$0xff] }
  0x87   :  { %5712 = vst [vmem:[#allocation36_spill] sm:$0xff] %v3463_v22  ;;  %406 = vst.msk [vmem:[#allocation3 + $0x60] sm:$0xff] %vm40_vm0, %v376_v61  ;;  %v359_v61 = vld [vmem:[#allocation3 + $0xc8] sm:$0xff] }
  0x88   :  { %407 = vst.msk [vmem:[#allocation3 + $0x68] sm:$0xff] %vm40_vm0, %v377_v26  ;;  %408 = vst.msk [vmem:[#allocation3 + $0x70] sm:$0xff] %vm40_vm0, %v378_v18  ;;  %v360_v26 = vld [vmem:[#allocation3 + $0xd0] sm:$0xff]  ;;  %v361_v18 = vld [vmem:[#allocation3 + $0xd8] sm:$0xff]  ;;  %v387_v15 = vadd.f32 %v357_v21, %v3483_v11  ;;  %v389_v34 = vadd.f32 %v359_v61, %v3495_v5  ;;  %v3527_v61 = vmul.f32 %v3345_v62, %v3345_v62 }
  0x89   :  { %409 = vst.msk [vmem:[#allocation3 + $0x78] sm:$0xff] %vm40_vm0, %v379_v29  ;;  %5713 = vst [vmem:[#allocation37_spill] sm:$0xff] %v3471_v46  ;;  %v382_v29 = vadd.f32 %v352_v60, %v3459_v16  ;;  %v386_v60 = vadd.f32 %v356_v35, %v3479_v53  ;;  %v433_v22 = vld [vmem:[#allocation3 + $0x8] sm:$0xff]  ;;  %v440_v16 = vld [vmem:[#allocation2 + $0x10] sm:$0xff] }
  0x8a   :  { %5714 = vst [vmem:[#allocation38_spill] sm:$0xff] %v3475_v49  ;;  %5715 = vst [vmem:[#allocation39_spill] sm:$0xff] %v3479_v53  ;;  %v442_v35 = vld [vmem:[#allocation2 + $0x20] sm:$0xff]  ;;  %v443_v21 = vld [vmem:[#allocation2 + $0x28] sm:$0xff]  ;;  %v435_v14 = vadd.f32 %v433_v22, %v3379_v48 }
  0x8b   :  { %5716 = vst [vmem:[#allocation40_spill] sm:$0xff] %v3483_v11  ;;  %410 = vst.msk [vmem:[#allocation3 + $0x80] sm:$0xff] %vm40_vm0, %v380_v32  ;;  %v384_v32 = vadd.f32 %v354_v19, %v3471_v46  ;;  %v3507_v19 = vmul.f32 %v3325_v63, %v3325_v63  ;;  %v444_v11 = vld [vmem:[#allocation2 + $0x30] sm:$0xff]  ;;  %v445_v53 = vld [vmem:[#allocation2 + $0x38] sm:$0xff] }
  0x8c   :  { %411 = vst.msk [vmem:[#allocation3 + $0x88] sm:$0xff] %vm40_vm0, %v381_v59  ;;  %5717 = vst [vmem:[#allocation41_spill] sm:$0xff] %v3491_v56  ;;  %v385_v59 = vadd.f32 %v355_v13, %v3475_v49  ;;  %v3511_v13 = vmul.f32 %v3329_v0, %v3329_v0  ;;  %v449_v56 = vld [vmem:[#allocation2 + $0x58] sm:$0xff]  ;;  %v451_v62 = vld [vmem:[#allocation2 + $0x68] sm:$0xff]  ;;  %v392_v0 = vadd.f32 %v362_v25, %v3519_v45 }
  0x8d   :  { %5718 = vst [vmem:[#allocation42_spill] sm:$0xff] %v3495_v5  ;;  %412 = vst.msk [vmem:[#allocation3 + $0x90] sm:$0xff] %vm40_vm0, %v382_v29  ;;  %v3531_v29 = vmul.f32 %v3349_v7, %v3349_v7  ;;  %v448_v5 = vld [vmem:[#allocation2 + $0x50] sm:$0xff]  ;;  %v390_v49 = vadd.f32 %v360_v26, %v3507_v19  ;;  %v450_v7 = vld [vmem:[#allocation2 + $0x60] sm:$0xff] }
  0x8e   :  { %413 = vst.msk [vmem:[#allocation3 + $0x98] sm:$0xff] %vm40_vm0, %v383_v52  ;;  %5719 = vst [vmem:[#allocation43_spill] sm:$0xff] %v3507_v19  ;;  %v3523_v52 = vmul.f32 %v3337_v9, %v3337_v9  ;;  %v391_v46 = vadd.f32 %v361_v18, %v3511_v13  ;;  %v452_v9 = vld [vmem:[#allocation2 + $0x70] sm:$0xff]  ;;  %v455_v26 = vld [vmem:[#allocation2 + $0x88] sm:$0xff] }
  0x8f   :  { %414 = vst.msk [vmem:[#allocation3 + $0xa0] sm:$0xff] %vm40_vm0, %v384_v32  ;;  %415 = vst.msk [vmem:[#allocation3 + $0xa8] sm:$0xff] %vm40_vm0, %v385_v59  ;;  %v438_v32 = vld [vmem:[#allocation2] sm:$0xff]  ;;  %v439_v59 = vld [vmem:[#allocation2 + $0x8] sm:$0xff] }
  0x90   :  { %416 = vst.msk [vmem:[#allocation3 + $0xb0] sm:$0xff] %vm40_vm0, %v386_v60  ;;  %417 = vst.msk [vmem:[#allocation3 + $0xb8] sm:$0xff] %vm40_vm0, %v387_v15  ;;  %v446_v60 = vld [vmem:[#allocation2 + $0x40] sm:$0xff]  ;;  %v447_v15 = vld [vmem:[#allocation2 + $0x48] sm:$0xff]  ;;  %v393_v63 = vadd.f32 %v363_v24, %v3523_v52  ;;  %v470_v50 = vadd.f32 %v438_v32, %v3185_v27  ;;  %v471_v25 = vadd.f32 %v439_v59, %v3193_v31 }
  0x91   :  { %418 = vst.msk [vmem:[#allocation3 + $0xc0] sm:$0xff] %vm40_vm0, %v388_v36  ;;  %419 = vst.msk [vmem:[#allocation3 + $0xc8] sm:$0xff] %vm40_vm0, %v389_v34  ;;  %v394_v36 = vadd.f32 %v364_v51, %v3527_v61  ;;  %v395_v34 = vadd.f32 %v365_v10, %v3531_v29  ;;  %v456_v19 = vld [vmem:[#allocation2 + $0x90] sm:$0xff]  ;;  %v472_v24 = vadd.f32 %v440_v16, %v3189_v28  ;;  %v457_v10 = vld [vmem:[#allocation2 + $0x98] sm:$0xff] }
  0x92   :  { %420 = vst.msk [vmem:[#allocation3 + $0xd0] sm:$0xff] %vm40_vm0, %v390_v49  ;;  %421 = vst.msk [vmem:[#allocation3 + $0xd8] sm:$0xff] %vm40_vm0, %v391_v46  ;;  %v473_v51 = vadd.f32 %v441_v43, %v3197_v33  ;;  %v458_v22 = vld [vmem:[#allocation2 + $0xa0] sm:$0xff]  ;;  %v459_v18 = vld [vmem:[#allocation2 + $0xa8] sm:$0xff]  ;;  %v476_v27 = vadd.f32 %v444_v11, %v3209_v3  ;;  %v477_v31 = vadd.f32 %v445_v53, %v3213_v2 }
  0x93   :  { %436 = vst.msk [vmem:[#allocation3] sm:$0xff] %vm40_vm0, %v434_v30  ;;  %437 = vst.msk [vmem:[#allocation3 + $0x8] sm:$0xff] %vm40_vm0, %v435_v14  ;;  %v474_v30 = vadd.f32 %v442_v35, %v3201_v40  ;;  %v475_v14 = vadd.f32 %v443_v21, %v3205_v1  ;;  %v460_v43 = vld [vmem:[#allocation2 + $0xb0] sm:$0xff]  ;;  %v461_v16 = vld [vmem:[#allocation2 + $0xb8] sm:$0xff]  ;;  %v480_v49 = vadd.f32 %v448_v5, %v3237_v57 }
  0x94   :  { %422 = vst.msk [vmem:[#allocation3 + $0xe0] sm:$0xff] %vm40_vm0, %v392_v0  ;;  %423 = vst.msk [vmem:[#allocation3 + $0xe8] sm:$0xff] %vm40_vm0, %v393_v63  ;;  %v462_v46 = vld [vmem:[#allocation2 + $0xc0] sm:$0xff]  ;;  %v478_v63 = vadd.f32 %v446_v60, %v3229_v54  ;;  %v479_v0 = vadd.f32 %v447_v15, %v3233_v55  ;;  %v481_v11 = vadd.f32 %v449_v56, %v3241_v58  ;;  %v463_v53 = vld [vmem:[#allocation2 + $0xc8] sm:$0xff] }
  0x95   :  { %424 = vst.msk [vmem:[#allocation3 + $0xf0] sm:$0xff] %vm40_vm0, %v394_v36  ;;  %425 = vst.msk [vmem:[#allocation3 + $0xf8] sm:$0xff] %vm40_vm0, %v395_v34  ;;  %v464_v35 = vld [vmem:[#allocation2 + $0xd0] sm:$0xff]  ;;  %v465_v21 = vld [vmem:[#allocation2 + $0xd8] sm:$0xff]  ;;  %v482_v32 = vadd.f32 %v450_v7, %v3249_v12  ;;  %v483_v59 = vadd.f32 %v451_v62, %v3253_v17  ;;  %v484_v60 = vadd.f32 %v452_v9, %v3257_v20 }
  0x96   :  { %502 = vst.msk [vmem:[#allocation2] sm:$0xff] %vm40_vm0, %v470_v50  ;;  %503 = vst.msk [vmem:[#allocation2 + $0x8] sm:$0xff] %vm40_vm0, %v471_v25  ;;  %v485_v5 = vadd.f32 %v453_v8, %v3261_v23  ;;  %v466_v56 = vld [vmem:[#allocation2 + $0xe0] sm:$0xff]  ;;  %v467_v15 = vld [vmem:[#allocation2 + $0xe8] sm:$0xff]  ;;  %v486_v34 = vadd.f32 %v454_v47, %v3277_v37  ;;  %v487_v7 = vadd.f32 %v455_v26, %v3281_v39 }
  0x97   :  { %504 = vst.msk [vmem:[#allocation2 + $0x10] sm:$0xff] %vm40_vm0, %v472_v24  ;;  %505 = vst.msk [vmem:[#allocation2 + $0x18] sm:$0xff] %vm40_vm0, %v473_v51  ;;  %v536_v36 = vld [vmem:[#allocation3 + $0x10] sm:$0xff]  ;;  %v488_v62 = vadd.f32 %v456_v19, %v3285_v4  ;;  %v489_v9 = vadd.f32 %v457_v10, %v3289_v42  ;;  %v469_v50 = vld [vmem:[#allocation2 + $0xf8] sm:$0xff]  ;;  %v490_v47 = vadd.f32 %v458_v22, %v3297_v38 }
  0x98   :  { %506 = vst.msk [vmem:[#allocation2 + $0x20] sm:$0xff] %vm40_vm0, %v474_v30  ;;  %507 = vst.msk [vmem:[#allocation2 + $0x28] sm:$0xff] %vm40_vm0, %v475_v14  ;;  %v468_v8 = vld [vmem:[#allocation2 + $0xf0] sm:$0xff]  ;;  %v537_v25 = vld [vmem:[#allocation3 + $0x18] sm:$0xff]  ;;  %v491_v26 = vadd.f32 %v459_v18, %v3301_v41  ;;  %v492_v19 = vadd.f32 %v460_v43, %v3305_v44 }
  0x99   :  { %508 = vst.msk [vmem:[#allocation2 + $0x30] sm:$0xff] %vm40_vm0, %v476_v27  ;;  %509 = vst.msk [vmem:[#allocation2 + $0x38] sm:$0xff] %vm40_vm0, %v477_v31  ;;  %v538_v24 = vld [vmem:[#allocation3 + $0x20] sm:$0xff]  ;;  %v539_v51 = vld [vmem:[#allocation3 + $0x28] sm:$0xff] }
  0x9a   :  { %510 = vst.msk [vmem:[#allocation2 + $0x40] sm:$0xff] %vm40_vm0, %v478_v63  ;;  %511 = vst.msk [vmem:[#allocation2 + $0x48] sm:$0xff] %vm40_vm0, %v479_v0  ;;  %v5720_v10 = vld [vmem:[#allocation12_spill] sm:$0xff]  ;;  %v541_v27 = vld [vmem:[#allocation3 + $0x38] sm:$0xff] }
  0x9b   :  { %512 = vst.msk [vmem:[#allocation2 + $0x50] sm:$0xff] %vm40_vm0, %v480_v49  ;;  %513 = vst.msk [vmem:[#allocation2 + $0x58] sm:$0xff] %vm40_vm0, %v481_v11  ;;  %v493_v30 = vadd.f32 %v461_v16, %v5720_v10  ;;  %v540_v14 = vld [vmem:[#allocation3 + $0x30] sm:$0xff]  ;;  %v542_v31 = vld [vmem:[#allocation3 + $0x40] sm:$0xff] }
  0x9c   :  { %514 = vst.msk [vmem:[#allocation2 + $0x60] sm:$0xff] %vm40_vm0, %v482_v32  ;;  %515 = vst.msk [vmem:[#allocation2 + $0x68] sm:$0xff] %vm40_vm0, %v483_v59  ;;  %v543_v63 = vld [vmem:[#allocation3 + $0x48] sm:$0xff]  ;;  %v5721_v0 = vld [vmem:[#allocation13_spill] sm:$0xff] }
  0x9d   :  { %516 = vst.msk [vmem:[#allocation2 + $0x70] sm:$0xff] %vm40_vm0, %v484_v60  ;;  %517 = vst.msk [vmem:[#allocation2 + $0x78] sm:$0xff] %vm40_vm0, %v485_v5  ;;  %v494_v22 = vadd.f32 %v462_v46, %v5721_v0  ;;  %v5722_v49 = vld [vmem:[#allocation14_spill] sm:$0xff]  ;;  %v5723_v11 = vld [vmem:[#allocation15_spill] sm:$0xff] }
  0x9e   :  { %518 = vst.msk [vmem:[#allocation2 + $0x80] sm:$0xff] %vm40_vm0, %v486_v34  ;;  %519 = vst.msk [vmem:[#allocation2 + $0x88] sm:$0xff] %vm40_vm0, %v487_v7  ;;  %v495_v18 = vadd.f32 %v463_v53, %v5722_v49  ;;  %v496_v43 = vadd.f32 %v464_v35, %v5723_v11  ;;  %v5724_v32 = vld [vmem:[#allocation16_spill] sm:$0xff]  ;;  %v545_v60 = vld [vmem:[#allocation3 + $0x58] sm:$0xff] }
  0x9f   :  { %520 = vst.msk [vmem:[#allocation2 + $0x90] sm:$0xff] %vm40_vm0, %v488_v62  ;;  %521 = vst.msk [vmem:[#allocation2 + $0x98] sm:$0xff] %vm40_vm0, %v489_v9  ;;  %v497_v16 = vadd.f32 %v465_v21, %v5724_v32  ;;  %v544_v59 = vld [vmem:[#allocation3 + $0x50] sm:$0xff]  ;;  %v546_v5 = vld [vmem:[#allocation3 + $0x60] sm:$0xff] }
  0xa0   :  { %v547_v10 = vld [vmem:[#allocation3 + $0x68] sm:$0xff]  ;;  %522 = vst.msk [vmem:[#allocation2 + $0xa0] sm:$0xff] %vm40_vm0, %v490_v47  ;;  %523 = vst.msk [vmem:[#allocation2 + $0xa8] sm:$0xff] %vm40_vm0, %v491_v26  ;;  %v5725_v34 = vld [vmem:[#allocation17_spill] sm:$0xff] }
  0xa1   :  { %524 = vst.msk [vmem:[#allocation2 + $0xb0] sm:$0xff] %vm40_vm0, %v492_v19  ;;  %525 = vst.msk [vmem:[#allocation2 + $0xb8] sm:$0xff] %vm40_vm0, %v493_v30  ;;  %v498_v46 = vadd.f32 %v466_v56, %v5725_v34  ;;  %v5726_v7 = vld [vmem:[#allocation18_spill] sm:$0xff]  ;;  %v5727_v62 = vld [vmem:[#allocation8_spill] sm:$0xff] }
  0xa2   :  { %v499_v53 = vadd.f32 %v467_v15, %v5726_v7  ;;  %v5728_v35 = vld [vmem:[#allocation6_spill] sm:$0xff]  ;;  %v5729_v21 = vld [vmem:[#allocation7_spill] sm:$0xff]  ;;  %v548_v49 = vld [vmem:[#allocation3 + $0x70] sm:$0xff]  ;;  %526 = vst.msk [vmem:[#allocation2 + $0xc0] sm:$0xff] %vm40_vm0, %v494_v22 }
  0xa3   :  { %v3607_v9 = vsub.f32 %v5728_v35, %v5727_v62  ;;  %v3611_v32 = vsub.f32 %v5729_v21, %v5727_v62  ;;  %v534_v11 = vld [vmem:[#allocation3] sm:$0xff]  ;;  %v535_v47 = vld [vmem:[#allocation3 + $0x8] sm:$0xff]  ;;  %v549_v26 = vld [vmem:[#allocation3 + $0x78] sm:$0xff]  ;;  %527 = vst.msk [vmem:[#allocation2 + $0xc8] sm:$0xff] %vm40_vm0, %v495_v18  ;;  %v568_v21 = vadd.f32 %v536_v36, %v3375_v6  ;;  %v569_v62 = vadd.f32 %v537_v25, %v3379_v48 }
  0xa4   :  { %v550_v0 = vld [vmem:[#allocation3 + $0x80] sm:$0xff]  ;;  %v551_v19 = vld [vmem:[#allocation3 + $0x88] sm:$0xff]  ;;  %528 = vst.msk [vmem:[#allocation2 + $0xd0] sm:$0xff] %vm40_vm0, %v496_v43  ;;  %529 = vst.msk [vmem:[#allocation2 + $0xd8] sm:$0xff] %vm40_vm0, %v497_v16 }
  0xa5   :  { %v5730_v56 = vld [vmem:[#allocation19_spill] sm:$0xff]  ;;  %v5731_v30 = vld [vmem:[#allocation20_spill] sm:$0xff]  ;;  %v553_v34 = vld [vmem:[#allocation3 + $0x98] sm:$0xff]  ;;  %530 = vst.msk [vmem:[#allocation2 + $0xe0] sm:$0xff] %vm40_vm0, %v498_v46  ;;  %v500_v22 = vadd.f32 %v468_v8, %v3607_v9  ;;  %v501_v18 = vadd.f32 %v469_v50, %v3611_v32 }
  0xa6   :  { %v566_v15 = vadd.f32 %v534_v11, %v5730_v56  ;;  %v567_v35 = vadd.f32 %v535_v47, %v5731_v30  ;;  %v552_v7 = vld [vmem:[#allocation3 + $0x90] sm:$0xff]  ;;  %v554_v44 = vld [vmem:[#allocation3 + $0xa0] sm:$0xff]  ;;  %v555_v41 = vld [vmem:[#allocation3 + $0xa8] sm:$0xff]  ;;  %531 = vst.msk [vmem:[#allocation2 + $0xe8] sm:$0xff] %vm40_vm0, %v499_v53 }
  0xa7   :  { %v5732_v43 = vld [vmem:[#allocation23_spill] sm:$0xff]  ;;  %v5733_v16 = vld [vmem:[#allocation24_spill] sm:$0xff]  ;;  %v557_v36 = vld [vmem:[#allocation3 + $0xb8] sm:$0xff]  ;;  %600 = vst.msk [vmem:[#allocation3 + $0x10] sm:$0xff] %vm40_vm0, %v568_v21 }
  0xa8   :  { %v570_v11 = vadd.f32 %v538_v24, %v5732_v43  ;;  %v571_v47 = vadd.f32 %v539_v51, %v5733_v16  ;;  %v556_v56 = vld [vmem:[#allocation3 + $0xb0] sm:$0xff]  ;;  %v558_v30 = vld [vmem:[#allocation3 + $0xc0] sm:$0xff]  ;;  %v559_v25 = vld [vmem:[#allocation3 + $0xc8] sm:$0xff]  ;;  %598 = vst.msk [vmem:[#allocation3] sm:$0xff] %vm40_vm0, %v566_v15 }
  0xa9   :  { %599 = vst.msk [vmem:[#allocation3 + $0x8] sm:$0xff] %vm40_vm0, %v567_v35  ;;  %601 = vst.msk [vmem:[#allocation3 + $0x18] sm:$0xff] %vm40_vm0, %v569_v62  ;;  %v5734_v46 = vld [vmem:[#allocation25_spill] sm:$0xff]  ;;  %v5735_v53 = vld [vmem:[#allocation26_spill] sm:$0xff] }
  0xaa   :  { %v572_v8 = vadd.f32 %v540_v14, %v5734_v46  ;;  %v573_v50 = vadd.f32 %v541_v27, %v5735_v53  ;;  %v5736_v48 = vld [vmem:[#allocation27_spill] sm:$0xff]  ;;  %v5737_v43 = vld [vmem:[#allocation28_spill] sm:$0xff]  ;;  %v561_v6 = vld [vmem:[#allocation3 + $0xd8] sm:$0xff]  ;;  %532 = vst.msk [vmem:[#allocation2 + $0xf0] sm:$0xff] %vm40_vm0, %v500_v22 }
  0xab   :  { %v574_v24 = vadd.f32 %v542_v31, %v5736_v48  ;;  %v575_v51 = vadd.f32 %v543_v63, %v5737_v43  ;;  %v560_v16 = vld [vmem:[#allocation3 + $0xd0] sm:$0xff]  ;;  %v562_v38 = vld [vmem:[#allocation3 + $0xe0] sm:$0xff]  ;;  %533 = vst.msk [vmem:[#allocation2 + $0xf8] sm:$0xff] %vm40_vm0, %v501_v18  ;;  %602 = vst.msk [vmem:[#allocation3 + $0x20] sm:$0xff] %vm40_vm0, %v570_v11 }
  0xac   :  { %603 = vst.msk [vmem:[#allocation3 + $0x28] sm:$0xff] %vm40_vm0, %v571_v47  ;;  %v5738_v62 = vld [vmem:[#allocation29_spill] sm:$0xff]  ;;  %v5739_v14 = vld [vmem:[#allocation30_spill] sm:$0xff]  ;;  %v5740_v27 = vld [vmem:[#allocation31_spill] sm:$0xff] }
  0xad   :  { %v576_v15 = vadd.f32 %v544_v59, %v5738_v62  ;;  %v577_v35 = vadd.f32 %v545_v60, %v5739_v14  ;;  %v578_v21 = vadd.f32 %v546_v5, %v5740_v27  ;;  %v5741_v31 = vld [vmem:[#allocation32_spill] sm:$0xff]  ;;  %v563_v63 = vld [vmem:[#allocation3 + $0xe8] sm:$0xff]  ;;  %v630_v43 = vld [vmem:[#allocation2] sm:$0xff]  ;;  %604 = vst.msk [vmem:[#allocation3 + $0x30] sm:$0xff] %vm40_vm0, %v572_v8 }
  0xae   :  { %v579_v48 = vadd.f32 %v547_v10, %v5741_v31  ;;  %v631_v53 = vld [vmem:[#allocation2 + $0x8] sm:$0xff]  ;;  %605 = vst.msk [vmem:[#allocation3 + $0x38] sm:$0xff] %vm40_vm0, %v573_v50  ;;  %606 = vst.msk [vmem:[#allocation3 + $0x40] sm:$0xff] %vm40_vm0, %v574_v24  ;;  %v5742_v22 = vld [vmem:[#allocation33_spill] sm:$0xff] }
  0xaf   :  { %607 = vst.msk [vmem:[#allocation3 + $0x48] sm:$0xff] %vm40_vm0, %v575_v51  ;;  %v580_v18 = vadd.f32 %v548_v49, %v5742_v22  ;;  %v5743_v59 = vld [vmem:[#allocation34_spill] sm:$0xff]  ;;  %v5744_v60 = vld [vmem:[#allocation35_spill] sm:$0xff]  ;;  %v5745_v5 = vld [vmem:[#allocation36_spill] sm:$0xff] }
  0xb0   :  { %v581_v11 = vadd.f32 %v549_v26, %v5743_v59  ;;  %v582_v47 = vadd.f32 %v550_v0, %v5744_v60  ;;  %v583_v27 = vadd.f32 %v551_v19, %v5745_v5  ;;  %v632_v10 = vld [vmem:[#allocation2 + $0x10] sm:$0xff]  ;;  %v633_v31 = vld [vmem:[#allocation2 + $0x18] sm:$0xff]  ;;  %v634_v14 = vld [vmem:[#allocation2 + $0x20] sm:$0xff]  ;;  %608 = vst.msk [vmem:[#allocation3 + $0x50] sm:$0xff] %vm40_vm0, %v576_v15 }
  0xb1   :  { %609 = vst.msk [vmem:[#allocation3 + $0x58] sm:$0xff] %vm40_vm0, %v577_v35  ;;  %610 = vst.msk [vmem:[#allocation3 + $0x60] sm:$0xff] %vm40_vm0, %v578_v21  ;;  %v5746_v8 = vld [vmem:[#allocation37_spill] sm:$0xff]  ;;  %v5747_v49 = vld [vmem:[#allocation38_spill] sm:$0xff] }
  0xb2   :  { %611 = vst.msk [vmem:[#allocation3 + $0x68] sm:$0xff] %vm40_vm0, %v579_v48  ;;  %v584_v50 = vadd.f32 %v552_v7, %v5746_v8  ;;  %v585_v24 = vadd.f32 %v553_v34, %v5747_v49  ;;  %v5748_v26 = vld [vmem:[#allocation39_spill] sm:$0xff]  ;;  %v5749_v0 = vld [vmem:[#allocation40_spill] sm:$0xff]  ;;  %v565_v5 = vld [vmem:[#allocation3 + $0xf8] sm:$0xff] }
  0xb3   :  { %v586_v51 = vadd.f32 %v554_v44, %v5748_v26  ;;  %v587_v60 = vadd.f32 %v555_v41, %v5749_v0  ;;  %v564_v19 = vld [vmem:[#allocation3 + $0xf0] sm:$0xff]  ;;  %v635_v59 = vld [vmem:[#allocation2 + $0x28] sm:$0xff]  ;;  %v637_v62 = vld [vmem:[#allocation2 + $0x38] sm:$0xff]  ;;  %612 = vst.msk [vmem:[#allocation3 + $0x70] sm:$0xff] %vm40_vm0, %v580_v18  ;;  %v591_v41 = vadd.f32 %v559_v25, %v3511_v13  ;;  %v595_v25 = vadd.f32 %v563_v63, %v3531_v29 }
  0xb4   :  { %v636_v22 = vld [vmem:[#allocation2 + $0x30] sm:$0xff]  ;;  %613 = vst.msk [vmem:[#allocation3 + $0x78] sm:$0xff] %vm40_vm0, %v581_v11  ;;  %614 = vst.msk [vmem:[#allocation3 + $0x80] sm:$0xff] %vm40_vm0, %v582_v47  ;;  %v5750_v48 = vld [vmem:[#allocation41_spill] sm:$0xff]  ;;  %v661_v63 = vadd.f32 %v631_v53, %v3197_v33  ;;  %v665_v33 = vadd.f32 %v635_v59, %v3213_v2 }
  0xb5   :  { %615 = vst.msk [vmem:[#allocation3 + $0x88] sm:$0xff] %vm40_vm0, %v583_v27  ;;  %v588_v7 = vadd.f32 %v556_v56, %v5750_v48  ;;  %v5751_v34 = vld [vmem:[#allocation42_spill] sm:$0xff]  ;;  %v5752_v44 = vld [vmem:[#allocation43_spill] sm:$0xff]  ;;  %v640_v26 = vld [vmem:[#allocation2 + $0x50] sm:$0xff]  ;;  %v592_v56 = vadd.f32 %v560_v16, %v3519_v45  ;;  %v3681_v16 = vmul.f32 %v3607_v9, %v3607_v9 }
  0xb6   :  { %v589_v15 = vadd.f32 %v557_v36, %v5751_v34  ;;  %v590_v35 = vadd.f32 %v558_v30, %v5752_v44  ;;  %v638_v21 = vld [vmem:[#allocation2 + $0x40] sm:$0xff]  ;;  %v639_v0 = vld [vmem:[#allocation2 + $0x48] sm:$0xff]  ;;  %v641_v49 = vld [vmem:[#allocation2 + $0x58] sm:$0xff]  ;;  %616 = vst.msk [vmem:[#allocation3 + $0x90] sm:$0xff] %vm40_vm0, %v584_v50  ;;  %v593_v36 = vadd.f32 %v561_v6, %v3523_v52  ;;  %v594_v30 = vadd.f32 %v562_v38, %v3527_v61 }
  0xb7   :  { %617 = vst.msk [vmem:[#allocation3 + $0x98] sm:$0xff] %vm40_vm0, %v585_v24  ;;  %618 = vst.msk [vmem:[#allocation3 + $0xa0] sm:$0xff] %vm40_vm0, %v586_v51  ;;  %v642_v27 = vld [vmem:[#allocation2 + $0x60] sm:$0xff]  ;;  %v643_v18 = vld [vmem:[#allocation2 + $0x68] sm:$0xff]  ;;  %v3685_v38 = vmul.f32 %v3611_v32, %v3611_v32  ;;  %v660_v6 = vadd.f32 %v630_v43, %v3189_v28  ;;  %v664_v28 = vadd.f32 %v634_v14, %v3209_v3 }
  0xb8   :  { %619 = vst.msk [vmem:[#allocation3 + $0xa8] sm:$0xff] %vm40_vm0, %v587_v60  ;;  %v644_v11 = vld [vmem:[#allocation2 + $0x70] sm:$0xff]  ;;  %v645_v47 = vld [vmem:[#allocation2 + $0x78] sm:$0xff]  ;;  %620 = vst.msk [vmem:[#allocation3 + $0xb0] sm:$0xff] %vm40_vm0, %v588_v7  ;;  %v662_v7 = vadd.f32 %v632_v10, %v3201_v40  ;;  %v666_v40 = vadd.f32 %v636_v22, %v3229_v54  ;;  %v668_v59 = vadd.f32 %v638_v21, %v3237_v57 }
  0xb9   :  { %621 = vst.msk [vmem:[#allocation3 + $0xb8] sm:$0xff] %vm40_vm0, %v589_v15  ;;  %622 = vst.msk [vmem:[#allocation3 + $0xc0] sm:$0xff] %vm40_vm0, %v590_v35  ;;  %v646_v60 = vld [vmem:[#allocation2 + $0x80] sm:$0xff]  ;;  %v647_v50 = vld [vmem:[#allocation2 + $0x88] sm:$0xff]  ;;  %v663_v15 = vadd.f32 %v633_v31, %v3205_v1  ;;  %v667_v1 = vadd.f32 %v637_v62, %v3233_v55  ;;  %v670_v54 = vadd.f32 %v640_v26, %v3249_v12 }
  0xba   :  { %623 = vst.msk [vmem:[#allocation3 + $0xc8] sm:$0xff] %vm40_vm0, %v591_v41  ;;  %v648_v24 = vld [vmem:[#allocation2 + $0x90] sm:$0xff]  ;;  %v649_v51 = vld [vmem:[#allocation2 + $0x98] sm:$0xff]  ;;  %624 = vst.msk [vmem:[#allocation3 + $0xd0] sm:$0xff] %vm40_vm0, %v592_v56  ;;  %v596_v56 = vadd.f32 %v564_v19, %v3681_v16  ;;  %v671_v55 = vadd.f32 %v641_v49, %v3253_v17  ;;  %v672_v19 = vadd.f32 %v642_v27, %v3257_v20 }
  0xbb   :  { %625 = vst.msk [vmem:[#allocation3 + $0xd8] sm:$0xff] %vm40_vm0, %v593_v36  ;;  %626 = vst.msk [vmem:[#allocation3 + $0xe0] sm:$0xff] %vm40_vm0, %v594_v30  ;;  %v650_v43 = vld [vmem:[#allocation2 + $0xa0] sm:$0xff]  ;;  %v651_v53 = vld [vmem:[#allocation2 + $0xa8] sm:$0xff]  ;;  %v597_v36 = vadd.f32 %v565_v5, %v3685_v38  ;;  %v669_v5 = vadd.f32 %v639_v0, %v3241_v58  ;;  %v673_v57 = vadd.f32 %v643_v18, %v3261_v23 }
  0xbc   :  { %627 = vst.msk [vmem:[#allocation3 + $0xe8] sm:$0xff] %vm40_vm0, %v595_v25  ;;  %v652_v35 = vld [vmem:[#allocation2 + $0xb0] sm:$0xff]  ;;  %v653_v41 = vld [vmem:[#allocation2 + $0xb8] sm:$0xff]  ;;  %690 = vst.msk [vmem:[#allocation2] sm:$0xff] %vm40_vm0, %v660_v6  ;;  %v674_v58 = vadd.f32 %v644_v11, %v3277_v37  ;;  %v675_v12 = vadd.f32 %v645_v47, %v3281_v39  ;;  %v676_v0 = vadd.f32 %v646_v60, %v3285_v4 }
  0xbd   :  { %691 = vst.msk [vmem:[#allocation2 + $0x8] sm:$0xff] %vm40_vm0, %v661_v63  ;;  %v654_v31 = vld [vmem:[#allocation2 + $0xc0] sm:$0xff]  ;;  %v655_v3 = vld [vmem:[#allocation2 + $0xc8] sm:$0xff]  ;;  %v656_v14 = vld [vmem:[#allocation2 + $0xd0] sm:$0xff]  ;;  %v677_v20 = vadd.f32 %v647_v50, %v3289_v42 }
  0xbe   :  { %v657_v2 = vld [vmem:[#allocation2 + $0xd8] sm:$0xff]  ;;  %692 = vst.msk [vmem:[#allocation2 + $0x10] sm:$0xff] %vm40_vm0, %v662_v7  ;;  %693 = vst.msk [vmem:[#allocation2 + $0x18] sm:$0xff] %vm40_vm0, %v663_v15  ;;  %v658_v62 = vld [vmem:[#allocation2 + $0xe0] sm:$0xff] }
  0xbf   :  { %694 = vst.msk [vmem:[#allocation2 + $0x20] sm:$0xff] %vm40_vm0, %v664_v28  ;;  %695 = vst.msk [vmem:[#allocation2 + $0x28] sm:$0xff] %vm40_vm0, %v665_v33  ;;  %v659_v22 = vld [vmem:[#allocation2 + $0xe8] sm:$0xff]  ;;  %v811_v10 = vld [vmem:[#allocation2 + $0xf0] sm:$0xff] }
  0xc0   :  { %628 = vst.msk [vmem:[#allocation3 + $0xf0] sm:$0xff] %vm40_vm0, %v596_v56  ;;  %629 = vst.msk [vmem:[#allocation3 + $0xf8] sm:$0xff] %vm40_vm0, %v597_v36  ;;  %v812_v17 = vld [vmem:[#allocation2 + $0xf8] sm:$0xff]  ;;  %v720_v49 = vld [vmem:[#allocation3] sm:$0xff] }
  0xc1   :  { %696 = vst.msk [vmem:[#allocation2 + $0x30] sm:$0xff] %vm40_vm0, %v666_v40  ;;  %697 = vst.msk [vmem:[#allocation2 + $0x38] sm:$0xff] %vm40_vm0, %v667_v1  ;;  %v721_v26 = vld [vmem:[#allocation3 + $0x8] sm:$0xff]  ;;  %v5753_v23 = vld [vmem:[#allocation9_spill] sm:$0xff]  ;;  %v688_v1 = vadd.f32 %v658_v62, %v3607_v9 }
  0xc2   :  { %698 = vst.msk [vmem:[#allocation2 + $0x40] sm:$0xff] %vm40_vm0, %v668_v59  ;;  %699 = vst.msk [vmem:[#allocation2 + $0x48] sm:$0xff] %vm40_vm0, %v669_v5  ;;  %v678_v21 = vadd.f32 %v648_v24, %v5753_v23  ;;  %v5754_v37 = vld [vmem:[#allocation10_spill] sm:$0xff]  ;;  %v722_v39 = vld [vmem:[#allocation3 + $0x10] sm:$0xff] }
  0xc3   :  { %700 = vst.msk [vmem:[#allocation2 + $0x50] sm:$0xff] %vm40_vm0, %v670_v54  ;;  %701 = vst.msk [vmem:[#allocation2 + $0x58] sm:$0xff] %vm40_vm0, %v671_v55  ;;  %v679_v30 = vadd.f32 %v649_v51, %v5754_v37  ;;  %v723_v25 = vld [vmem:[#allocation3 + $0x18] sm:$0xff]  ;;  %v724_v27 = vld [vmem:[#allocation3 + $0x20] sm:$0xff] }
  0xc4   :  { %702 = vst.msk [vmem:[#allocation2 + $0x60] sm:$0xff] %vm40_vm0, %v672_v19  ;;  %703 = vst.msk [vmem:[#allocation2 + $0x68] sm:$0xff] %vm40_vm0, %v673_v57  ;;  %v5755_v18 = vld [vmem:[#allocation11_spill] sm:$0xff]  ;;  %v5756_v4 = vld [vmem:[#allocation12_spill] sm:$0xff] }
  0xc5   :  { %704 = vst.msk [vmem:[#allocation2 + $0x70] sm:$0xff] %vm40_vm0, %v674_v58  ;;  %705 = vst.msk [vmem:[#allocation2 + $0x78] sm:$0xff] %vm40_vm0, %v675_v12  ;;  %v680_v11 = vadd.f32 %v650_v43, %v5755_v18  ;;  %v681_v47 = vadd.f32 %v651_v53, %v5756_v4  ;;  %v5757_v42 = vld [vmem:[#allocation13_spill] sm:$0xff]  ;;  %v5758_v63 = vld [vmem:[#allocation14_spill] sm:$0xff] }
  0xc6   :  { %v682_v6 = vadd.f32 %v652_v35, %v5757_v42  ;;  %v683_v60 = vadd.f32 %v653_v41, %v5758_v63  ;;  %v725_v50 = vld [vmem:[#allocation3 + $0x28] sm:$0xff]  ;;  %v726_v24 = vld [vmem:[#allocation3 + $0x30] sm:$0xff]  ;;  %v727_v51 = vld [vmem:[#allocation3 + $0x38] sm:$0xff]  ;;  %706 = vst.msk [vmem:[#allocation2 + $0x80] sm:$0xff] %vm40_vm0, %v676_v0 }
  0xc7   :  { %707 = vst.msk [vmem:[#allocation2 + $0x88] sm:$0xff] %vm40_vm0, %v677_v20  ;;  %708 = vst.msk [vmem:[#allocation2 + $0x90] sm:$0xff] %vm40_vm0, %v678_v21  ;;  %v5759_v7 = vld [vmem:[#allocation15_spill] sm:$0xff]  ;;  %v5760_v28 = vld [vmem:[#allocation16_spill] sm:$0xff] }
  0xc8   :  { %709 = vst.msk [vmem:[#allocation2 + $0x98] sm:$0xff] %vm40_vm0, %v679_v30  ;;  %v684_v15 = vadd.f32 %v654_v31, %v5759_v7  ;;  %v685_v33 = vadd.f32 %v655_v3, %v5760_v28  ;;  %v5761_v43 = vld [vmem:[#allocation17_spill] sm:$0xff]  ;;  %v5762_v35 = vld [vmem:[#allocation18_spill] sm:$0xff]  ;;  %v729_v36 = vld [vmem:[#allocation3 + $0x48] sm:$0xff]  ;;  %v689_v31 = vadd.f32 %v659_v22, %v3611_v32 }
  0xc9   :  { %v686_v53 = vadd.f32 %v656_v14, %v5761_v43  ;;  %v687_v56 = vadd.f32 %v657_v2, %v5762_v35  ;;  %v728_v41 = vld [vmem:[#allocation3 + $0x40] sm:$0xff]  ;;  %v730_v40 = vld [vmem:[#allocation3 + $0x50] sm:$0xff]  ;;  %710 = vst.msk [vmem:[#allocation2 + $0xa0] sm:$0xff] %vm40_vm0, %v680_v11  ;;  %711 = vst.msk [vmem:[#allocation2 + $0xa8] sm:$0xff] %vm40_vm0, %v681_v47  ;;  %v813_v3 = vadd.f32 %v811_v10, %v5761_v43 }
  0xca   :  { %712 = vst.msk [vmem:[#allocation2 + $0xb0] sm:$0xff] %vm40_vm0, %v682_v6  ;;  %713 = vst.msk [vmem:[#allocation2 + $0xb8] sm:$0xff] %vm40_vm0, %v683_v60  ;;  %v814_v14 = vadd.f32 %v812_v17, %v5762_v35  ;;  %v731_v2 = vld [vmem:[#allocation3 + $0x58] sm:$0xff]  ;;  %v732_v59 = vld [vmem:[#allocation3 + $0x60] sm:$0xff]  ;;  %v754_v17 = vadd.f32 %v724_v27, %v5734_v46 }
  0xcb   :  { %v733_v5 = vld [vmem:[#allocation3 + $0x68] sm:$0xff]  ;;  %714 = vst.msk [vmem:[#allocation2 + $0xc0] sm:$0xff] %vm40_vm0, %v684_v15  ;;  %715 = vst.msk [vmem:[#allocation2 + $0xc8] sm:$0xff] %vm40_vm0, %v685_v33  ;;  %v5763_v54 = vld [vmem:[#allocation21_spill] sm:$0xff] }
  0xcc   :  { %716 = vst.msk [vmem:[#allocation2 + $0xd0] sm:$0xff] %vm40_vm0, %v686_v53  ;;  %717 = vst.msk [vmem:[#allocation2 + $0xd8] sm:$0xff] %vm40_vm0, %v687_v56  ;;  %v750_v9 = vadd.f32 %v720_v49, %v5763_v54  ;;  %v5764_v55 = vld [vmem:[#allocation22_spill] sm:$0xff]  ;;  %v5765_v62 = vld [vmem:[#allocation23_spill] sm:$0xff] }
  0xcd   :  { %v751_v32 = vadd.f32 %v721_v26, %v5764_v55  ;;  %v752_v22 = vadd.f32 %v722_v39, %v5765_v62  ;;  %v5766_v10 = vld [vmem:[#allocation24_spill] sm:$0xff]  ;;  %v735_v58 = vld [vmem:[#allocation3 + $0x78] sm:$0xff]  ;;  %v736_v12 = vld [vmem:[#allocation3 + $0x80] sm:$0xff]  ;;  %718 = vst.msk [vmem:[#allocation2 + $0xe0] sm:$0xff] %vm40_vm0, %v688_v1 }
  0xce   :  { %v753_v19 = vadd.f32 %v723_v25, %v5766_v10  ;;  %v734_v57 = vld [vmem:[#allocation3 + $0x70] sm:$0xff]  ;;  %719 = vst.msk [vmem:[#allocation2 + $0xe8] sm:$0xff] %vm40_vm0, %v689_v31  ;;  %815 = vst.msk [vmem:[#allocation2 + $0xf0] sm:$0xff] %vm40_vm0, %v813_v3  ;;  %v5767_v49 = vld [vmem:[#allocation26_spill] sm:$0xff]  ;;  %v766_v31 = vadd.f32 %v736_v12, %v5746_v8 }
  0xcf   :  { %816 = vst.msk [vmem:[#allocation2 + $0xf8] sm:$0xff] %vm40_vm0, %v814_v14  ;;  %v755_v0 = vadd.f32 %v725_v50, %v5767_v49  ;;  %v5768_v26 = vld [vmem:[#allocation27_spill] sm:$0xff]  ;;  %v5769_v23 = vld [vmem:[#allocation28_spill] sm:$0xff]  ;;  %v739_v39 = vld [vmem:[#allocation3 + $0x98] sm:$0xff] }
  0xd0   :  { %v756_v20 = vadd.f32 %v726_v24, %v5768_v26  ;;  %v757_v21 = vadd.f32 %v727_v51, %v5769_v23  ;;  %v737_v37 = vld [vmem:[#allocation3 + $0x88] sm:$0xff]  ;;  %v738_v30 = vld [vmem:[#allocation3 + $0x90] sm:$0xff]  ;;  %780 = vst.msk [vmem:[#allocation3] sm:$0xff] %vm40_vm0, %v750_v9  ;;  %781 = vst.msk [vmem:[#allocation3 + $0x8] sm:$0xff] %vm40_vm0, %v751_v32 }
  0xd1   :  { %782 = vst.msk [vmem:[#allocation3 + $0x10] sm:$0xff] %vm40_vm0, %v752_v22  ;;  %783 = vst.msk [vmem:[#allocation3 + $0x18] sm:$0xff] %vm40_vm0, %v753_v19  ;;  %v5770_v25 = vld [vmem:[#allocation29_spill] sm:$0xff]  ;;  %v5771_v46 = vld [vmem:[#allocation30_spill] sm:$0xff] }
  0xd2   :  { %v758_v18 = vadd.f32 %v728_v41, %v5770_v25  ;;  %v759_v27 = vadd.f32 %v729_v36, %v5771_v46  ;;  %v5772_v11 = vld [vmem:[#allocation31_spill] sm:$0xff]  ;;  %v5773_v47 = vld [vmem:[#allocation32_spill] sm:$0xff]  ;;  %v740_v6 = vld [vmem:[#allocation3 + $0xa0] sm:$0xff]  ;;  %784 = vst.msk [vmem:[#allocation3 + $0x20] sm:$0xff] %vm40_vm0, %v754_v17 }
  0xd3   :  { %v760_v4 = vadd.f32 %v730_v40, %v5772_v11  ;;  %v761_v42 = vadd.f32 %v731_v2, %v5773_v47  ;;  %v741_v63 = vld [vmem:[#allocation3 + $0xa8] sm:$0xff]  ;;  %v742_v60 = vld [vmem:[#allocation3 + $0xb0] sm:$0xff]  ;;  %785 = vst.msk [vmem:[#allocation3 + $0x28] sm:$0xff] %vm40_vm0, %v755_v0  ;;  %786 = vst.msk [vmem:[#allocation3 + $0x30] sm:$0xff] %vm40_vm0, %v756_v20  ;;  %v770_v8 = vadd.f32 %v740_v6, %v5750_v48 }
  0xd4   :  { %787 = vst.msk [vmem:[#allocation3 + $0x38] sm:$0xff] %vm40_vm0, %v757_v21  ;;  %v5774_v50 = vld [vmem:[#allocation33_spill] sm:$0xff]  ;;  %v5775_v51 = vld [vmem:[#allocation34_spill] sm:$0xff]  ;;  %v5776_v15 = vld [vmem:[#allocation35_spill] sm:$0xff] }
  0xd5   :  { %v762_v24 = vadd.f32 %v732_v59, %v5774_v50  ;;  %v763_v7 = vadd.f32 %v733_v5, %v5775_v51  ;;  %v764_v28 = vadd.f32 %v734_v57, %v5776_v15  ;;  %v5777_v33 = vld [vmem:[#allocation36_spill] sm:$0xff]  ;;  %v743_v53 = vld [vmem:[#allocation3 + $0xb8] sm:$0xff]  ;;  %v744_v35 = vld [vmem:[#allocation3 + $0xc0] sm:$0xff]  ;;  %788 = vst.msk [vmem:[#allocation3 + $0x40] sm:$0xff] %vm40_vm0, %v758_v18  ;;  %v771_v57 = vadd.f32 %v741_v63, %v5751_v34 }
  0xd6   :  { %v765_v43 = vadd.f32 %v735_v58, %v5777_v33  ;;  %v745_v56 = vld [vmem:[#allocation3 + $0xc8] sm:$0xff]  ;;  %v3787_v40 = vld [vmem:[#allocation4 + $0x11] sm:$0xff]  ;;  %v3789_v1 = vld [vmem:[#allocation4 + $0x19] sm:$0x7f]  ;;  %789 = vst.msk [vmem:[#allocation3 + $0x48] sm:$0xff] %vm40_vm0, %v759_v27  ;;  %v772_v58 = vadd.f32 %v742_v60, %v5752_v44  ;;  %v773_v12 = vadd.f32 %v743_v53, %v3511_v13  ;;  %v774_v13 = vadd.f32 %v744_v35, %v3519_v45 }
  0xd7   :  { %v3783_v41 = vld [vmem:[#allocation4 + $0x1] sm:$0xff]  ;;  %v3785_v36 = vld [vmem:[#allocation4 + $0x9] sm:$0x7f]  ;;  %790 = vst.msk [vmem:[#allocation3 + $0x50] sm:$0xff] %vm40_vm0, %v760_v4  ;;  %791 = vst.msk [vmem:[#allocation3 + $0x58] sm:$0xff] %vm40_vm0, %v761_v42  ;;  %v775_v48 = vadd.f32 %v745_v56, %v3523_v52 }
  0xd8   :  { %v5778_v3 = vld [vmem:[#allocation38_spill] sm:$0xff]  ;;  %v5779_v2 = vld [vmem:[#allocation39_spill] sm:$0xff]  ;;  %v5780_v5 = vld [vmem:[#allocation40_spill] sm:$0xff]  ;;  %792 = vst.msk [vmem:[#allocation3 + $0x60] sm:$0xff] %vm40_vm0, %v762_v24 }
  0xd9   :  { %v767_v14 = vadd.f32 %v737_v37, %v5778_v3  ;;  %v768_v59 = vadd.f32 %v738_v30, %v5779_v2  ;;  %v769_v54 = vadd.f32 %v739_v39, %v5780_v5  ;;  %v746_v9 = vld [vmem:[#allocation3 + $0xd0] sm:$0xff]  ;;  %v747_v55 = vld [vmem:[#allocation3 + $0xd8] sm:$0xff]  ;;  %v748_v32 = vld [vmem:[#allocation3 + $0xe0] sm:$0xff]  ;;  %793 = vst.msk [vmem:[#allocation3 + $0x68] sm:$0xff] %vm40_vm0, %v763_v7 }
  0xda   :  { %v3799_v62 = vld [vmem:[#allocation4 + $0x21] sm:$0xff]  ;;  %v3801_v22 = vld [vmem:[#allocation4 + $0x29] sm:$0x7f]  ;;  %v3803_v10 = vld [vmem:[#allocation4 + $0x31] sm:$0xff]  ;;  %794 = vst.msk [vmem:[#allocation3 + $0x70] sm:$0xff] %vm40_vm0, %v764_v28  ;;  %v776_v34 = vadd.f32 %v746_v9, %v3527_v61  ;;  %v777_v44 = vadd.f32 %v747_v55, %v3531_v29  ;;  %v778_v45 = vadd.f32 %v748_v32, %v3681_v16 }
  0xdb   :  { %v3805_v19 = vld [vmem:[#allocation4 + $0x39] sm:$0x7f]  ;;  %795 = vst.msk [vmem:[#allocation3 + $0x78] sm:$0xff] %vm40_vm0, %v765_v43  ;;  %v749_v17 = vld [vmem:[#allocation3 + $0xe8] sm:$0xff]  ;;  %v818_v49 = vld [vmem:[#allocation3 + $0xf0] sm:$0xff] }
  0xdc   :  { %v819_v0 = vld [vmem:[#allocation3 + $0xf8] sm:$0xff]  ;;  %v3815_v26 = vld [vmem:[#allocation4 + $0x41] sm:$0xff]  ;;  %v3817_v20 = vld [vmem:[#allocation4 + $0x49] sm:$0x7f]  ;;  %796 = vst.msk [vmem:[#allocation3 + $0x80] sm:$0xff] %vm40_vm0, %v766_v31  ;;  %v779_v52 = vadd.f32 %v749_v17, %v3685_v38  ;;  %v820_v27 = vadd.f32 %v818_v49, %v3527_v61 }
  0xdd   :  { %v3819_v23 = vld [vmem:[#allocation4 + $0x51] sm:$0xff]  ;;  %v3821_v21 = vld [vmem:[#allocation4 + $0x59] sm:$0x7f]  ;;  %797 = vst.msk [vmem:[#allocation3 + $0x88] sm:$0xff] %vm40_vm0, %v767_v14  ;;  %798 = vst.msk [vmem:[#allocation3 + $0x90] sm:$0xff] %vm40_vm0, %v768_v59  ;;  %v821_v11 = vadd.f32 %v819_v0, %v3531_v29 }
  0xde   :  { %799 = vst.msk [vmem:[#allocation3 + $0x98] sm:$0xff] %vm40_vm0, %v769_v54  ;;  %v3831_v37 = vld [vmem:[#allocation2] sm:$0xff]  ;;  %v3833_v30 = vld [vmem:[#allocation2 + $0x8] sm:$0xff]  ;;  %v3835_v39 = vld [vmem:[#allocation2 + $0x10] sm:$0xff] }
  0xdf   :  { %5781 = vst [vmem:[#allocation6_spill] sm:$0xff] %v3831_v37  ;;  %5782 = vst [vmem:[#allocation7_spill] sm:$0xff] %v3835_v39  ;;  %v3837_v25 = vld [vmem:[#allocation4 + $0x61] sm:$0xff]  ;;  %v3839_v18 = vld [vmem:[#allocation4 + $0x69] sm:$0x7f]  ;;  %v984_v61 = vadd.f32 %v3783_v41, %v3831_v37  ;;  %v985_v29 = vadd.f32 %v3785_v36, %v3833_v30  ;;  %v986_v16 = vadd.f32 %v3787_v40, %v3835_v39 }
  0xe0   :  { %v3841_v46 = vld [vmem:[#allocation4 + $0x71] sm:$0xff]  ;;  %800 = vst.msk [vmem:[#allocation3 + $0xa0] sm:$0xff] %vm40_vm0, %v770_v8  ;;  %801 = vst.msk [vmem:[#allocation3 + $0xa8] sm:$0xff] %vm40_vm0, %v771_v57  ;;  %v3853_v47 = vld [vmem:[#allocation2 + $0x20] sm:$0xff] }
  0xe1   :  { %802 = vst.msk [vmem:[#allocation3 + $0xb0] sm:$0xff] %vm40_vm0, %v772_v58  ;;  %803 = vst.msk [vmem:[#allocation3 + $0xb8] sm:$0xff] %vm40_vm0, %v773_v12  ;;  %v3851_v4 = vld [vmem:[#allocation2 + $0x18] sm:$0xff]  ;;  %v3855_v42 = vld [vmem:[#allocation2 + $0x28] sm:$0xff]  ;;  %v988_v43 = vadd.f32 %v3799_v62, %v3853_v47 }
  0xe2   :  { %5783 = vst [vmem:[#allocation19_spill] sm:$0xff] %v3853_v47  ;;  %v3857_v6 = vld [vmem:[#allocation4 + $0x79] sm:$0x7f]  ;;  %v3859_v63 = vld [vmem:[#allocation4 + $0x81] sm:$0xff]  ;;  %v3861_v60 = vld [vmem:[#allocation4 + $0x89] sm:$0x7f]  ;;  %v987_v38 = vadd.f32 %v3789_v1, %v3851_v4  ;;  %v989_v53 = vadd.f32 %v3801_v22, %v3855_v42 }
  0xe3   :  { %804 = vst.msk [vmem:[#allocation3 + $0xc0] sm:$0xff] %vm40_vm0, %v774_v13  ;;  %805 = vst.msk [vmem:[#allocation3 + $0xc8] sm:$0xff] %vm40_vm0, %v775_v48  ;;  %v3875_v50 = vld [vmem:[#allocation2 + $0x30] sm:$0xff]  ;;  %v3877_v24 = vld [vmem:[#allocation2 + $0x38] sm:$0xff] }
  0xe4   :  { %806 = vst.msk [vmem:[#allocation3 + $0xd0] sm:$0xff] %vm40_vm0, %v776_v34  ;;  %807 = vst.msk [vmem:[#allocation3 + $0xd8] sm:$0xff] %vm40_vm0, %v777_v44  ;;  %v3879_v51 = vld [vmem:[#allocation2 + $0x40] sm:$0xff]  ;;  %v3881_v7 = vld [vmem:[#allocation4 + $0x91] sm:$0xff]  ;;  %v990_v35 = vadd.f32 %v3803_v10, %v3875_v50  ;;  %v991_v56 = vadd.f32 %v3805_v19, %v3877_v24 }
  0xe5   :  { %5784 = vst [vmem:[#allocation20_spill] sm:$0xff] %v3875_v50  ;;  %5785 = vst [vmem:[#allocation25_spill] sm:$0xff] %v3879_v51  ;;  %v3883_v15 = vld [vmem:[#allocation4 + $0x99] sm:$0x7f]  ;;  %v3885_v28 = vld [vmem:[#allocation4 + $0xa1] sm:$0xff]  ;;  %v992_v2 = vadd.f32 %v3815_v26, %v3879_v51 }
  0xe6   :  { %v3887_v33 = vld [vmem:[#allocation4] sm:$0x1]  ;;  %808 = vst.msk [vmem:[#allocation3 + $0xe0] sm:$0xff] %vm40_vm0, %v778_v45  ;;  %809 = vst.msk [vmem:[#allocation3 + $0xe8] sm:$0xff] %vm40_vm0, %v779_v52  ;;  %v3901_v41 = vld [vmem:[#allocation2 + $0x48] sm:$0xff]  ;;  %v5598_v45 = vrot.slane %v3835_v39, 1 }
  0xe7   :  { %822 = vst.msk [vmem:[#allocation3 + $0xf0] sm:$0xff] %vm40_vm0, %v820_v27  ;;  %823 = vst.msk [vmem:[#allocation3 + $0xf8] sm:$0xff] %vm40_vm0, %v821_v11  ;;  %v3903_v36 = vld [vmem:[#allocation2 + $0x50] sm:$0xff]  ;;  %v3905_v40 = vld [vmem:[#allocation2 + $0x58] sm:$0xff]  ;;  %v993_v59 = vadd.f32 %v3817_v20, %v3901_v41  ;;  %v5599_v20 = vrot.slane %v3831_v37, 1 }
  0xe8   :  { %v3907_v1 = vld [vmem:[#allocation4 + $0xa9] sm:$0x7f]  ;;  %v3909_v31 = vld [vmem:[#allocation4 + $0xb1] sm:$0xff]  ;;  %v3911_v3 = vld [vmem:[#allocation4 + $0xb9] sm:$0x7f]  ;;  %1016 = vst.msk [vmem:[#allocation4 + $0x1] sm:$0xff] %vm40_vm0, %v984_v61  ;;  %v994_v5 = vadd.f32 %v3819_v23, %v3903_v36  ;;  %v995_v54 = vadd.f32 %v3821_v21, %v3905_v40 }
  0xe9   :  { %v3913_v14 = vld [vmem:[#allocation4 + $0x10] sm:$0x1]  ;;  %1018 = vst.msk [vmem:[#allocation4 + $0x9] sm:$0x7f] %vm1017_vm1, %v985_v29  ;;  %1020 = vst.msk [vmem:[#allocation4 + $0x19] sm:$0x7f] %vm1017_vm1, %v987_v38 }
  0xea   :  { %1019 = vst.msk [vmem:[#allocation4 + $0x11] sm:$0xff] %vm40_vm0, %v986_v16  ;;  %v3927_v9 = vld [vmem:[#allocation2 + $0x60] sm:$0xff]  ;;  %v3929_v55 = vld [vmem:[#allocation2 + $0x68] sm:$0xff]  ;;  %v3931_v32 = vld [vmem:[#allocation2 + $0x70] sm:$0xff] }
  0xeb   :  { %5786 = vst [vmem:[#allocation37_spill] sm:$0xff] %v3927_v9  ;;  %v976_v62 = vld [vmem:[#allocation4 + $0xc1] sm:$0xff]  ;;  %v977_v22 = vld [vmem:[#allocation4 + $0xc9] sm:$0x7f]  ;;  %v978_v10 = vld [vmem:[#allocation4 + $0xd1] sm:$0xff]  ;;  %v996_v19 = vadd.f32 %v3837_v25, %v3927_v9  ;;  %v997_v8 = vadd.f32 %v3839_v18, %v3929_v55  ;;  %v998_v57 = vadd.f32 %v3841_v46, %v3931_v32 }
  0xec   :  { %1021 = vst.msk [vmem:[#allocation4 + $0x21] sm:$0xff] %vm40_vm0, %v988_v43  ;;  %1023 = vst.msk [vmem:[#allocation4 + $0x31] sm:$0xff] %vm40_vm0, %v990_v35  ;;  %v3943_v58 = vld [vmem:[#allocation2 + $0x78] sm:$0xff]  ;;  %v3945_v12 = vld [vmem:[#allocation2 + $0x80] sm:$0xff] }
  0xed   :  { %1022 = vst.msk [vmem:[#allocation4 + $0x29] sm:$0x7f] %vm1017_vm1, %v989_v53  ;;  %1024 = vst.msk [vmem:[#allocation4 + $0x39] sm:$0x7f] %vm1017_vm1, %v991_v56  ;;  %v3947_v17 = vld [vmem:[#allocation2 + $0x88] sm:$0xff]  ;;  %v999_v23 = vadd.f32 %v3857_v6, %v3943_v58  ;;  %v1000_v21 = vadd.f32 %v3859_v63, %v3945_v12  ;;  %v3966_v48 = vld [vmem:[#allocation2 + $0x90] sm:$0xff] }
  0xee   :  { %v3949_v49 = vld [vmem:[#allocation4 + $0xd9] sm:$0x7f]  ;;  %v3951_v0 = vld [vmem:[#allocation4 + $0xe1] sm:$0xff]  ;;  %v3953_v26 = vld [vmem:[#allocation4 + $0xe9] sm:$0x7f]  ;;  %1025 = vst.msk [vmem:[#allocation4 + $0x41] sm:$0xff] %vm40_vm0, %v992_v2  ;;  %v1001_v13 = vadd.f32 %v3861_v60, %v3947_v17  ;;  %v1002_v27 = vadd.f32 %v3881_v7, %v3966_v48  ;;  %v1209_v7 = vadd.f32 %v5599_v20, %v3887_v33 }
  0xef   :  { %1026 = vst.msk [vmem:[#allocation4 + $0x49] sm:$0x7f] %vm1017_vm1, %v993_v59  ;;  %1028 = vst.msk [vmem:[#allocation4 + $0x59] sm:$0x7f] %vm1017_vm1, %v995_v54  ;;  %v3968_v34 = vld [vmem:[#allocation2 + $0x98] sm:$0xff]  ;;  %v3970_v44 = vld [vmem:[#allocation2 + $0xa0] sm:$0xff] }
  0xf0   :  { %1027 = vst.msk [vmem:[#allocation4 + $0x51] sm:$0xff] %vm40_vm0, %v994_v5  ;;  %v3972_v25 = vld [vmem:[#allocation4 + $0xf1] sm:$0xff]  ;;  %v3974_v18 = vld [vmem:[#allocation4 + $0xf9] sm:$0x7f]  ;;  %v3976_v46 = vld [vmem:[#allocation5 + $0x1] sm:$0xff]  ;;  %v1003_v11 = vadd.f32 %v3883_v15, %v3968_v34  ;;  %v1004_v6 = vadd.f32 %v3885_v28, %v3970_v44 }
  0xf1   :  { %v3979_v52 = vld [vmem:[#allocation4 + $0x20] sm:$0x1]  ;;  %1029 = vst.msk [vmem:[#allocation4 + $0x61] sm:$0xff] %vm40_vm0, %v996_v19  ;;  %1031 = vst.msk [vmem:[#allocation4 + $0x71] sm:$0xff] %vm40_vm0, %v998_v57  ;;  %v3990_v63 = vld [vmem:[#allocation2 + $0xa8] sm:$0xff] }
  0xf2   :  { %1030 = vst.msk [vmem:[#allocation4 + $0x69] sm:$0x7f] %vm1017_vm1, %v997_v8  ;;  %5787 = vst [vmem:[#allocation41_spill] sm:$0xff] %v3990_v63  ;;  %v3992_v60 = vld [vmem:[#allocation2 + $0xb0] sm:$0xff]  ;;  %v3994_v61 = vld [vmem:[#allocation2 + $0xb8] sm:$0xff]  ;;  %v1005_v28 = vadd.f32 %v3907_v1, %v3990_v63  ;;  %v1210_v1 = vadd.f32 %v5598_v45, %v3913_v14 }
  0xf3   :  { %5788 = vst [vmem:[#allocation42_spill] sm:$0xff] %v3994_v61  ;;  %v3996_v29 = vld [vmem:[#allocation5 + $0x9] sm:$0x7f]  ;;  %v3998_v16 = vld [vmem:[#allocation5 + $0x11] sm:$0xff]  ;;  %v4000_v38 = vld [vmem:[#allocation5 + $0x19] sm:$0x7f]  ;;  %v1006_v43 = vadd.f32 %v3909_v31, %v3992_v60  ;;  %v1007_v53 = vadd.f32 %v3911_v3, %v3994_v61 }
  0xf4   :  { %v4005_v15 = vld [vmem:[#allocation4 + $0x30] sm:$0x1]  ;;  %1032 = vst.msk [vmem:[#allocation4 + $0x79] sm:$0x7f] %vm1017_vm1, %v999_v23  ;;  %1034 = vst.msk [vmem:[#allocation4 + $0x89] sm:$0x7f] %vm1017_vm1, %v1001_v13 }
  0xf5   :  { %1033 = vst.msk [vmem:[#allocation4 + $0x81] sm:$0xff] %vm40_vm0, %v1000_v21  ;;  %v4016_v35 = vld [vmem:[#allocation2 + $0xc0] sm:$0xff]  ;;  %v4018_v33 = vld [vmem:[#allocation2 + $0xc8] sm:$0xff]  ;;  %v4020_v56 = vld [vmem:[#allocation2 + $0xd0] sm:$0xff] }
  0xf6   :  { %5789 = vst [vmem:[#allocation43_spill] sm:$0xff] %v4018_v33  ;;  %v4022_v2 = vld [vmem:[#allocation5 + $0x21] sm:$0xff]  ;;  %v4024_v59 = vld [vmem:[#allocation5 + $0x29] sm:$0x7f]  ;;  %v4026_v5 = vld [vmem:[#allocation5 + $0x31] sm:$0xff]  ;;  %v1008_v31 = vadd.f32 %v976_v62, %v4016_v35  ;;  %v1009_v3 = vadd.f32 %v977_v22, %v4018_v33  ;;  %v1010_v54 = vadd.f32 %v978_v10, %v4020_v56  ;;  %v5606_v62 = vrot.slane %v3853_v47, 1 }
  0xf7   :  { %1035 = vst.msk [vmem:[#allocation4 + $0x91] sm:$0xff] %vm40_vm0, %v1002_v27  ;;  %1037 = vst.msk [vmem:[#allocation4 + $0xa1] sm:$0xff] %vm40_vm0, %v1004_v6  ;;  %v4037_v19 = vld [vmem:[#allocation2 + $0xd8] sm:$0xff]  ;;  %v4039_v8 = vld [vmem:[#allocation2 + $0xe0] sm:$0xff] }
  0xf8   :  { %1036 = vst.msk [vmem:[#allocation4 + $0x99] sm:$0x7f] %vm1017_vm1, %v1003_v11  ;;  %5790 = vst [vmem:[#allocation9_spill] sm:$0xff] %v4037_v19  ;;  %v4041_v57 = vld [vmem:[#allocation2 + $0xe8] sm:$0xff]  ;;  %v4043_v23 = vld [vmem:[#allocation5 + $0x39] sm:$0x7f]  ;;  %v1011_v22 = vadd.f32 %v3949_v49, %v4037_v19  ;;  %v1012_v10 = vadd.f32 %v3951_v0, %v4039_v8 }
  0xf9   :  { %5791 = vst [vmem:[#allocation10_spill] sm:$0xff] %v4041_v57  ;;  %v4045_v14 = vld [vmem:[#allocation5 + $0x41] sm:$0xff]  ;;  %v4047_v21 = vld [vmem:[#allocation5 + $0x49] sm:$0x7f]  ;;  %1226 = vst.msk [vmem:[#allocation4] sm:$0x1] %vm1225_vm2, %v1209_v7  ;;  %v1013_v13 = vadd.f32 %v3953_v26, %v4041_v57 }
  0xfa   :  { %1038 = vst.msk [vmem:[#allocation4 + $0xa9] sm:$0x7f] %vm1017_vm1, %v1005_v28  ;;  %1040 = vst.msk [vmem:[#allocation4 + $0xb9] sm:$0x7f] %vm1017_vm1, %v1007_v53  ;;  %v4060_v27 = vld [vmem:[#allocation2 + $0xf0] sm:$0xff]  ;;  %v4062_v11 = vld [vmem:[#allocation2 + $0xf8] sm:$0xff] }
  0xfb   :  { %1039 = vst.msk [vmem:[#allocation4 + $0xb1] sm:$0xff] %vm40_vm0, %v1006_v43  ;;  %5792 = vst [vmem:[#allocation11_spill] sm:$0xff] %v4060_v27  ;;  %v4064_v6 = vld [vmem:[#allocation3] sm:$0xff]  ;;  %v4066_v7 = vld [vmem:[#allocation5 + $0x51] sm:$0xff]  ;;  %v1014_v26 = vadd.f32 %v3972_v25, %v4060_v27  ;;  %v1015_v53 = vadd.f32 %v3974_v18, %v4062_v11  ;;  %v1211_v25 = vadd.f32 %v5606_v62, %v3979_v52 }
  0xfc   :  { %5793 = vst [vmem:[#allocation12_spill] sm:$0xff] %v4062_v11  ;;  %v4068_v28 = vld [vmem:[#allocation5 + $0x59] sm:$0x7f]  ;;  %v4070_v43 = vld [vmem:[#allocation5 + $0x61] sm:$0xff]  ;;  %1227 = vst.msk [vmem:[#allocation4 + $0x10] sm:$0x1] %vm1225_vm2, %v1210_v1  ;;  %v1081_v45 = vadd.f32 %v3976_v46, %v4064_v6 }
  0xfd   :  { %v4074_v0 = vld [vmem:[#allocation4 + $0x40] sm:$0x1]  ;;  %1041 = vst.msk [vmem:[#allocation4 + $0xc1] sm:$0xff] %vm40_vm0, %v1008_v31  ;;  %1043 = vst.msk [vmem:[#allocation4 + $0xd1] sm:$0xff] %vm40_vm0, %v1010_v54  ;;  %v4085_v1 = vld [vmem:[#allocation3 + $0x8] sm:$0xff] }
  0xfe   :  { %1042 = vst.msk [vmem:[#allocation4 + $0xc9] sm:$0x7f] %vm1017_vm1, %v1009_v3  ;;  %5794 = vst [vmem:[#allocation13_spill] sm:$0xff] %v4085_v1  ;;  %v4087_v20 = vld [vmem:[#allocation3 + $0x10] sm:$0xff]  ;;  %v4089_v49 = vld [vmem:[#allocation3 + $0x18] sm:$0xff]  ;;  %v1082_v46 = vadd.f32 %v3996_v29, %v4085_v1  ;;  %v5799_v29 = vrot.slane %v3875_v50, 1 }
  0xff   :  { %5795 = vst [vmem:[#allocation14_spill] sm:$0xff] %v4089_v49  ;;  %v4091_v31 = vld [vmem:[#allocation5 + $0x69] sm:$0x7f]  ;;  %v4093_v3 = vld [vmem:[#allocation5 + $0x71] sm:$0xff]  ;;  %v4095_v54 = vld [vmem:[#allocation5 + $0x79] sm:$0x7f]  ;;  %v1083_v39 = vadd.f32 %v3998_v16, %v4087_v20  ;;  %v1084_v37 = vadd.f32 %v4000_v38, %v4089_v49 }
 0x100   :  { %v4100_v18 = vld [vmem:[#allocation4 + $0x50] sm:$0x1]  ;;  %1044 = vst.msk [vmem:[#allocation4 + $0xd9] sm:$0x7f] %vm1017_vm1, %v1011_v22  ;;  %1046 = vst.msk [vmem:[#allocation4 + $0xe9] sm:$0x7f] %vm1017_vm1, %v1013_v13  ;;  %v1212_v1 = vadd.f32 %v5799_v29, %v4005_v15 }
 0x101   :  { %1045 = vst.msk [vmem:[#allocation4 + $0xe1] sm:$0xff] %vm40_vm0, %v1012_v10  ;;  %v4111_v11 = vld [vmem:[#allocation3 + $0x20] sm:$0xff]  ;;  %v4113_v52 = vld [vmem:[#allocation3 + $0x28] sm:$0xff]  ;;  %v4115_v62 = vld [vmem:[#allocation3 + $0x30] sm:$0xff] }
 0x102   :  { %5796 = vst [vmem:[#allocation15_spill] sm:$0xff] %v4111_v11  ;;  %5797 = vst [vmem:[#allocation16_spill] sm:$0xff] %v4113_v52  ;;  %v4117_v22 = vld [vmem:[#allocation5 + $0x81] sm:$0xff]  ;;  %v4119_v10 = vld [vmem:[#allocation5 + $0x89] sm:$0x7f]  ;;  %v1085_v16 = vadd.f32 %v4022_v2, %v4111_v11  ;;  %v1086_v38 = vadd.f32 %v4024_v59, %v4113_v52  ;;  %v1087_v49 = vadd.f32 %v4026_v5, %v4115_v62 }
 0x103   :  { %5798 = vst [vmem:[#allocation17_spill] sm:$0xff] %v4115_v62  ;;  %v4121_v13 = vld [vmem:[#allocation5 + $0x91] sm:$0xff]  ;;  %1047 = vst.msk [vmem:[#allocation4 + $0xf1] sm:$0xff] %vm40_vm0, %v1014_v26  ;;  %v4137_v57 = vld [vmem:[#allocation3 + $0x40] sm:$0xff] }
 0x104   :  { %1048 = vst.msk [vmem:[#allocation4 + $0xf9] sm:$0x7f] %vm1017_vm1, %v1015_v53  ;;  %v4135_v47 = vld [vmem:[#allocation3 + $0x38] sm:$0xff]  ;;  %5801 = vst [vmem:[#allocation21_spill] sm:$0xff] %v4137_v57  ;;  %v4139_v15 = vld [vmem:[#allocation3 + $0x48] sm:$0xff]  ;;  %v1089_v59 = vadd.f32 %v4045_v14, %v4137_v57 }
 0x105   :  { %1113 = vst.msk [vmem:[#allocation5 + $0x1] sm:$0xff] %vm40_vm0, %v1081_v45  ;;  %5800 = vst [vmem:[#allocation18_spill] sm:$0xff] %v4135_v47  ;;  %v1068_v26 = vld [vmem:[#allocation5 + $0x99] sm:$0x7f]  ;;  %v1069_v29 = vld [vmem:[#allocation5 + $0xa1] sm:$0xff]  ;;  %v1088_v2 = vadd.f32 %v4043_v23, %v4135_v47  ;;  %v1090_v5 = vadd.f32 %v4047_v21, %v4139_v15 }
 0x106   :  { %5802 = vst [vmem:[#allocation22_spill] sm:$0xff] %v4139_v15  ;;  %v1070_v53 = vld [vmem:[#allocation5 + $0xa9] sm:$0x7f]  ;;  %1228 = vst.msk [vmem:[#allocation4 + $0x20] sm:$0x1] %vm1225_vm2, %v1211_v25  ;;  %v4152_v52 = vld [vmem:[#allocation3 + $0x50] sm:$0xff] }
 0x107   :  { %1114 = vst.msk [vmem:[#allocation5 + $0x9] sm:$0x7f] %vm1017_vm1, %v1082_v46  ;;  %1116 = vst.msk [vmem:[#allocation5 + $0x19] sm:$0x7f] %vm1017_vm1, %v1084_v37  ;;  %v4154_v25 = vld [vmem:[#allocation3 + $0x58] sm:$0xff]  ;;  %v4156_v45 = vld [vmem:[#allocation3 + $0x60] sm:$0xff]  ;;  %v1091_v14 = vadd.f32 %v4066_v7, %v4152_v52 }
 0x108   :  { %1115 = vst.msk [vmem:[#allocation5 + $0x11] sm:$0xff] %vm40_vm0, %v1083_v39  ;;  %5803 = vst [vmem:[#allocation23_spill] sm:$0xff] %v4152_v52  ;;  %v1071_v46 = vld [vmem:[#allocation5 + $0xb1] sm:$0xff]  ;;  %v1072_v50 = vld [vmem:[#allocation5 + $0xb9] sm:$0x7f]  ;;  %v1092_v21 = vadd.f32 %v4068_v28, %v4154_v25  ;;  %v1093_v15 = vadd.f32 %v4070_v43, %v4156_v45 }
 0x109   :  { %5804 = vst [vmem:[#allocation24_spill] sm:$0xff] %v4154_v25  ;;  %5805 = vst [vmem:[#allocation26_spill] sm:$0xff] %v4156_v45  ;;  %v1073_v39 = vld [vmem:[#allocation5 + $0xc1] sm:$0xff]  ;;  %v1151_v23 = vld [vmem:[#allocation4 + $0x60] sm:$0x1] }
 0x10a   :  { %1229 = vst.msk [vmem:[#allocation4 + $0x30] sm:$0x1] %vm1225_vm2, %v1212_v1  ;;  %v4169_v47 = vld [vmem:[#allocation3 + $0x68] sm:$0xff]  ;;  %v4171_v1 = vld [vmem:[#allocation3 + $0x70] sm:$0xff]  ;;  %v4173_v37 = vld [vmem:[#allocation3 + $0x78] sm:$0xff] }
 0x10b   :  { %1117 = vst.msk [vmem:[#allocation5 + $0x21] sm:$0xff] %vm40_vm0, %v1085_v16  ;;  %1119 = vst.msk [vmem:[#allocation5 + $0x31] sm:$0xff] %vm40_vm0, %v1087_v49  ;;  %v1074_v16 = vld [vmem:[#allocation5 + $0xc9] sm:$0x7f]  ;;  %v1075_v19 = vld [vmem:[#allocation5 + $0xd1] sm:$0xff]  ;;  %v5809_v49 = vrot.slane %v3879_v51, 1  ;;  %v1094_v28 = vadd.f32 %v4091_v31, %v4169_v47  ;;  %v1095_v43 = vadd.f32 %v4093_v3, %v4171_v1  ;;  %v1096_v25 = vadd.f32 %v4095_v54, %v4173_v37 }
 0x10c   :  { %1118 = vst.msk [vmem:[#allocation5 + $0x29] sm:$0x7f] %vm1017_vm1, %v1086_v38  ;;  %5806 = vst [vmem:[#allocation27_spill] sm:$0xff] %v4169_v47  ;;  %v1076_v38 = vld [vmem:[#allocation5 + $0xd9] sm:$0x7f]  ;;  %v4187_v61 = vld [vmem:[#allocation3 + $0x80] sm:$0xff] }
 0x10d   :  { %5807 = vst [vmem:[#allocation28_spill] sm:$0xff] %v4171_v1  ;;  %5808 = vst [vmem:[#allocation29_spill] sm:$0xff] %v4173_v37  ;;  %v1213_v33 = vadd.f32 %v5809_v49, %v4074_v0  ;;  %v1152_v7 = vld [vmem:[#allocation4 + $0x70] sm:$0x1]  ;;  %v4189_v51 = vld [vmem:[#allocation3 + $0x88] sm:$0xff]  ;;  %v1097_v31 = vadd.f32 %v4117_v22, %v4187_v61 }
 0x10e   :  { %1120 = vst.msk [vmem:[#allocation5 + $0x39] sm:$0x7f] %vm1017_vm1, %v1088_v2  ;;  %1122 = vst.msk [vmem:[#allocation5 + $0x49] sm:$0x7f] %vm1017_vm1, %v1090_v5  ;;  %v4191_v0 = vld [vmem:[#allocation3 + $0x90] sm:$0xff]  ;;  %v1077_v2 = vld [vmem:[#allocation5 + $0xe1] sm:$0xff]  ;;  %v1098_v3 = vadd.f32 %v4119_v10, %v4189_v51 }
 0x10f   :  { %1121 = vst.msk [vmem:[#allocation5 + $0x41] sm:$0xff] %vm40_vm0, %v1089_v59  ;;  %5810 = vst [vmem:[#allocation30_spill] sm:$0xff] %v4187_v61  ;;  %v1078_v49 = vld [vmem:[#allocation5 + $0xe9] sm:$0x7f]  ;;  %v1079_v59 = vld [vmem:[#allocation5 + $0xf1] sm:$0xff]  ;;  %v5813_v5 = vrot.slane %v3903_v36, 1  ;;  %v1099_v54 = vadd.f32 %v4121_v13, %v4191_v0 }
 0x110   :  { %5811 = vst [vmem:[#allocation31_spill] sm:$0xff] %v4189_v51  ;;  %5812 = vst [vmem:[#allocation32_spill] sm:$0xff] %v4191_v0  ;;  %v4205_v37 = vld [vmem:[#allocation3 + $0x98] sm:$0xff]  ;;  %v4207_v47 = vld [vmem:[#allocation3 + $0xa0] sm:$0xff] }
 0x111   :  { %v1214_v63 = vadd.f32 %v5813_v5, %v4100_v18  ;;  %1123 = vst.msk [vmem:[#allocation5 + $0x51] sm:$0xff] %vm40_vm0, %v1091_v14  ;;  %1125 = vst.msk [vmem:[#allocation5 + $0x61] sm:$0xff] %vm40_vm0, %v1093_v15  ;;  %v4209_v18 = vld [vmem:[#allocation3 + $0xa8] sm:$0xff]  ;;  %v1080_v14 = vld [vmem:[#allocation5 + $0xf9] sm:$0x7f]  ;;  %v5632_v15 = vrot.slane %v3927_v9, 1  ;;  %v1100_v22 = vadd.f32 %v1068_v26, %v4205_v37  ;;  %v1101_v10 = vadd.f32 %v1069_v29, %v4207_v47 }
 0x112   :  { %1124 = vst.msk [vmem:[#allocation5 + $0x59] sm:$0x7f] %vm1017_vm1, %v1092_v21  ;;  %5814 = vst [vmem:[#allocation33_spill] sm:$0xff] %v4205_v37  ;;  %v1102_v13 = vadd.f32 %v1070_v53, %v4209_v18  ;;  %v4219_v21 = vld [vmem:[#allocation3 + $0xb0] sm:$0xff]  ;;  %v4221_v5 = vld [vmem:[#allocation3 + $0xb8] sm:$0xff] }
 0x113   :  { %5815 = vst [vmem:[#allocation34_spill] sm:$0xff] %v4207_v47  ;;  %5816 = vst [vmem:[#allocation35_spill] sm:$0xff] %v4209_v18  ;;  %v4223_v51 = vld [vmem:[#allocation3 + $0xc0] sm:$0xff]  ;;  %v1103_v26 = vadd.f32 %v1071_v46, %v4219_v21  ;;  %v1104_v29 = vadd.f32 %v1072_v50, %v4221_v5  ;;  %v1158_v9 = vld [vmem:[#allocation4 + $0xd0] sm:$0x1] }
 0x114   :  { %1230 = vst.msk [vmem:[#allocation4 + $0x40] sm:$0x1] %vm1225_vm2, %v1213_v33  ;;  %5817 = vst [vmem:[#allocation36_spill] sm:$0xff] %v4219_v21  ;;  %v1105_v53 = vadd.f32 %v1073_v39, %v4223_v51  ;;  %v1215_v33 = vadd.f32 %v5632_v15, %v1151_v23  ;;  %v1155_v18 = vld [vmem:[#allocation4 + $0xa0] sm:$0x1]  ;;  %v4251_v23 = vld [vmem:[#allocation3 + $0xf0] sm:$0xff] }
 0x115   :  { %1126 = vst.msk [vmem:[#allocation5 + $0x69] sm:$0x7f] %vm1017_vm1, %v1094_v28  ;;  %1128 = vst.msk [vmem:[#allocation5 + $0x79] sm:$0x7f] %vm1017_vm1, %v1096_v25  ;;  %v1153_v28 = vld [vmem:[#allocation4 + $0x80] sm:$0x1] }
 0x116   :  { %1127 = vst.msk [vmem:[#allocation5 + $0x71] sm:$0xff] %vm40_vm0, %v1095_v43  ;;  %5818 = vst [vmem:[#allocation38_spill] sm:$0xff] %v4221_v5  ;;  %v4233_v25 = vld [vmem:[#allocation3 + $0xc8] sm:$0xff]  ;;  %v4235_v43 = vld [vmem:[#allocation3 + $0xd0] sm:$0xff]  ;;  %v5824_v15 = vrot.slane %v3931_v32, 1 }
 0x117   :  { %5819 = vst [vmem:[#allocation39_spill] sm:$0xff] %v4223_v51  ;;  %1231 = vst.msk [vmem:[#allocation4 + $0x50] sm:$0x1] %vm1225_vm2, %v1214_v63  ;;  %v4237_v63 = vld [vmem:[#allocation3 + $0xd8] sm:$0xff]  ;;  %v1106_v50 = vadd.f32 %v1074_v16, %v4233_v25  ;;  %v1107_v46 = vadd.f32 %v1075_v19, %v4235_v43  ;;  %v4249_v5 = vld [vmem:[#allocation3 + $0xe8] sm:$0xff] }
 0x118   :  { %1129 = vst.msk [vmem:[#allocation5 + $0x81] sm:$0xff] %vm40_vm0, %v1097_v31  ;;  %1131 = vst.msk [vmem:[#allocation5 + $0x91] sm:$0xff] %vm40_vm0, %v1099_v54  ;;  %v1154_v31 = vld [vmem:[#allocation4 + $0x90] sm:$0x1]  ;;  %v1108_v39 = vadd.f32 %v1076_v38, %v4237_v63  ;;  %v4247_v54 = vld [vmem:[#allocation3 + $0xe0] sm:$0xff]  ;;  %v1216_v37 = vadd.f32 %v5824_v15, %v1152_v7  ;;  %v1110_v16 = vadd.f32 %v1078_v49, %v4249_v5  ;;  %v5636_v7 = vrot.slane %v3945_v12, 1 }
 0x119   :  { %1130 = vst.msk [vmem:[#allocation5 + $0x89] sm:$0x7f] %vm1017_vm1, %v1098_v3  ;;  %5820 = vst [vmem:[#allocation40_spill] sm:$0xff] %v4235_v43  ;;  %v1156_v3 = vld [vmem:[#allocation4 + $0xb0] sm:$0x1]  ;;  %v1109_v19 = vadd.f32 %v1077_v2, %v4247_v54  ;;  %v1111_v38 = vadd.f32 %v1079_v59, %v4251_v23  ;;  %v5638_v49 = vrot.slane %v3966_v48, 1 }
 0x11a   :  { %1132 = vst.msk [vmem:[#allocation5 + $0x99] sm:$0x7f] %vm1017_vm1, %v1100_v22  ;;  %1134 = vst.msk [vmem:[#allocation5 + $0xa9] sm:$0x7f] %vm1017_vm1, %v1102_v13  ;;  %v1157_v22 = vld [vmem:[#allocation4 + $0xc0] sm:$0x1] }
 0x11b   :  { %1133 = vst.msk [vmem:[#allocation5 + $0xa1] sm:$0xff] %vm40_vm0, %v1101_v10  ;;  %5821 = vst [vmem:[#allocation44_spill] sm:$0xff] %v4247_v54  ;;  %v4261_v10 = vld [vmem:[#allocation3 + $0xf8] sm:$0xff]  ;;  %v1159_v15 = vld [vmem:[#allocation4 + $0xe0] sm:$0x1]  ;;  %v5639_v59 = vrot.slane %v3970_v44, 1 }
 0x11c   :  { %5822 = vst [vmem:[#allocation45_spill] sm:$0xff] %v4249_v5  ;;  %5823 = vst [vmem:[#allocation46_spill] sm:$0xff] %v4251_v23  ;;  %v1160_v13 = vld [vmem:[#allocation4 + $0xf0] sm:$0x1]  ;;  %v1112_v2 = vadd.f32 %v1080_v14, %v4261_v10  ;;  %v5643_v14 = vrot.slane %v4016_v35, 1 }
 0x11d   :  { %1135 = vst.msk [vmem:[#allocation5 + $0xb1] sm:$0xff] %vm40_vm0, %v1103_v26  ;;  %1137 = vst.msk [vmem:[#allocation5 + $0xc1] sm:$0xff] %vm40_vm0, %v1105_v53  ;;  %v1242_v26 = vld [vmem:[#allocation5] sm:$0x1]  ;;  %v1249_v5 = vld [vmem:[#allocation5 + $0x70] sm:$0x1] }
 0x11e   :  { %1136 = vst.msk [vmem:[#allocation5 + $0xb9] sm:$0x7f] %vm1017_vm1, %v1104_v29  ;;  %5825 = vst [vmem:[#allocation47_spill] sm:$0xff] %v4261_v10  ;;  %v1217_v29 = vadd.f32 %v5636_v7, %v1153_v28  ;;  %v1246_v7 = vld [vmem:[#allocation5 + $0x40] sm:$0x1]  ;;  %v1221_v53 = vadd.f32 %v5643_v14, %v1157_v22  ;;  %v5645_v22 = vrot.slane %v4087_v20, 1 }
 0x11f   :  { %1232 = vst.msk [vmem:[#allocation4 + $0x60] sm:$0x1] %vm1225_vm2, %v1215_v33  ;;  %1233 = vst.msk [vmem:[#allocation4 + $0x70] sm:$0x1] %vm1225_vm2, %v1216_v37  ;;  %v5644_v33 = vrot.slane %v3992_v60, 1 }
 0x120   :  { %1138 = vst.msk [vmem:[#allocation5 + $0xc9] sm:$0x7f] %vm1017_vm1, %v1106_v50  ;;  %1140 = vst.msk [vmem:[#allocation5 + $0xd9] sm:$0x7f] %vm1017_vm1, %v1108_v39  ;;  %v1243_v50 = vld [vmem:[#allocation5 + $0x10] sm:$0x1] }
 0x121   :  { %1139 = vst.msk [vmem:[#allocation5 + $0xd1] sm:$0xff] %vm40_vm0, %v1107_v46  ;;  %1141 = vst.msk [vmem:[#allocation5 + $0xe1] sm:$0xff] %vm40_vm0, %v1109_v19  ;;  %v1244_v46 = vld [vmem:[#allocation5 + $0x20] sm:$0x1]  ;;  %v1245_v39 = vld [vmem:[#allocation5 + $0x30] sm:$0x1]  ;;  %v1218_v19 = vadd.f32 %v5638_v49, %v1154_v31  ;;  %v1220_v28 = vadd.f32 %v5644_v33, %v1156_v3 }
 0x122   :  { %1142 = vst.msk [vmem:[#allocation5 + $0xe9] sm:$0x7f] %vm1017_vm1, %v1110_v16  ;;  %1144 = vst.msk [vmem:[#allocation5 + $0xf9] sm:$0x7f] %vm1017_vm1, %v1112_v2  ;;  %v1219_v16 = vadd.f32 %v5639_v59, %v1155_v18  ;;  %v1247_v37 = vld [vmem:[#allocation5 + $0x50] sm:$0x1] }
 0x123   :  { %1143 = vst.msk [vmem:[#allocation5 + $0xf1] sm:$0xff] %vm40_vm0, %v1111_v38  ;;  %v5641_v38 = vrot.slane %v4060_v27, 1  ;;  %v5826_v2 = vrot.slane %v4020_v56, 1  ;;  %v5827_v31 = vrot.slane %v4039_v8, 1  ;;  %v5642_v18 = vrot.slane %v4064_v6, 1 }
 0x124   :  { %1234 = vst.msk [vmem:[#allocation4 + $0x80] sm:$0x1] %vm1225_vm2, %v1217_v29  ;;  %v1248_v59 = vld [vmem:[#allocation5 + $0x60] sm:$0x1]  ;;  %1235 = vst.msk [vmem:[#allocation4 + $0x90] sm:$0x1] %vm1225_vm2, %v1218_v19 }
 0x125   :  { %v1222_v10 = vadd.f32 %v5826_v2, %v1158_v9  ;;  %v1223_v49 = vadd.f32 %v5827_v31, %v1159_v15  ;;  %1236 = vst.msk [vmem:[#allocation4 + $0xa0] sm:$0x1] %vm1225_vm2, %v1219_v16  ;;  %1237 = vst.msk [vmem:[#allocation4 + $0xb0] sm:$0x1] %vm1225_vm2, %v1220_v28  ;;  %v1224_v3 = vadd.f32 %v5641_v38, %v1160_v13  ;;  %v5646_v9 = vrot.slane %v4111_v11, 1  ;;  %v1339_v28 = vld [vmem:[#allocation4 + $0x8] sm:$0xff] }
 0x126   :  { %v5647_v29 = vrot.slane %v4115_v62, 1  ;;  %v1250_v15 = vld [vmem:[#allocation5 + $0x80] sm:$0x1]  ;;  %1238 = vst.msk [vmem:[#allocation4 + $0xc0] sm:$0x1] %vm1225_vm2, %v1221_v53  ;;  %v1306_v19 = vadd.f32 %v5642_v18, %v1242_v26  ;;  %v5651_v16 = vrot.slane %v4137_v57, 1  ;;  %v1307_v53 = vadd.f32 %v5645_v22, %v1243_v50 }
 0x127   :  { %1239 = vst.msk [vmem:[#allocation4 + $0xd0] sm:$0x1] %vm1225_vm2, %v1222_v10  ;;  %1240 = vst.msk [vmem:[#allocation4 + $0xe0] sm:$0x1] %vm1225_vm2, %v1223_v49  ;;  %v5650_v13 = vrot.slane %v4152_v52, 1  ;;  %v1308_v10 = vadd.f32 %v5646_v9, %v1244_v46  ;;  %v5828_v22 = vrot.slane %v4156_v45, 1 }
 0x128   :  { %v1251_v2 = vld [vmem:[#allocation5 + $0x90] sm:$0x1]  ;;  %v1252_v31 = vld [vmem:[#allocation5 + $0xa0] sm:$0x1]  ;;  %1241 = vst.msk [vmem:[#allocation4 + $0xf0] sm:$0x1] %vm1225_vm2, %v1224_v3  ;;  %v1309_v49 = vadd.f32 %v5647_v29, %v1245_v39  ;;  %v1310_v3 = vadd.f32 %v5651_v16, %v1246_v7 }
 0x129   :  { %v1253_v38 = vld [vmem:[#allocation5 + $0xb0] sm:$0x1]  ;;  %v1254_v18 = vld [vmem:[#allocation5 + $0xc0] sm:$0x1]  ;;  %1322 = vst.msk [vmem:[#allocation5] sm:$0x1] %vm1225_vm2, %v1306_v19  ;;  %v1311_v50 = vadd.f32 %v5650_v13, %v1247_v37  ;;  %v1312_v46 = vadd.f32 %v5828_v22, %v1248_v59 }
 0x12a   :  { %v1255_v14 = vld [vmem:[#allocation5 + $0xd0] sm:$0x1]  ;;  %v1256_v33 = vld [vmem:[#allocation5 + $0xe0] sm:$0x1]  ;;  %v1341_v29 = vld [vmem:[#allocation4 + $0x18] sm:$0xff]  ;;  %v5829_v7 = vrot.slane %v4171_v1, 1 }
 0x12b   :  { %v1257_v39 = vld [vmem:[#allocation5 + $0xf0] sm:$0x1]  ;;  %v1343_v26 = vld [vmem:[#allocation4 + $0x28] sm:$0xff]  ;;  %v1345_v62 = vld [vmem:[#allocation4 + $0x38] sm:$0xff]  ;;  %1323 = vst.msk [vmem:[#allocation5 + $0x10] sm:$0x1] %vm1225_vm2, %v1307_v53 }
 0x12c   :  { %1324 = vst.msk [vmem:[#allocation5 + $0x20] sm:$0x1] %vm1225_vm2, %v1308_v10  ;;  %1325 = vst.msk [vmem:[#allocation5 + $0x30] sm:$0x1] %vm1225_vm2, %v1309_v49  ;;  %v1313_v19 = vadd.f32 %v5829_v7, %v1249_v5  ;;  %v1347_v22 = vld [vmem:[#allocation4 + $0x48] sm:$0xff]  ;;  %v1349_v16 = vld [vmem:[#allocation4 + $0x58] sm:$0xff] }
 0x12d   :  { %v1351_v9 = vld [vmem:[#allocation4 + $0x68] sm:$0xff]  ;;  %v1353_v45 = vld [vmem:[#allocation4 + $0x78] sm:$0xff]  ;;  %1326 = vst.msk [vmem:[#allocation5 + $0x40] sm:$0x1] %vm1225_vm2, %v1310_v3  ;;  %1327 = vst.msk [vmem:[#allocation5 + $0x50] sm:$0x1] %vm1225_vm2, %v1311_v50 }
 0x12e   :  { %1328 = vst.msk [vmem:[#allocation5 + $0x60] sm:$0x1] %vm1225_vm2, %v1312_v46  ;;  %v5830_v53 = vrot.slane %v4187_v61, 1  ;;  %v1355_v59 = vld [vmem:[#allocation4 + $0x88] sm:$0xff]  ;;  %v1357_v13 = vld [vmem:[#allocation4 + $0x98] sm:$0xff]  ;;  %v5831_v3 = vrot.slane %v4191_v0, 1 }
 0x12f   :  { %v1359_v37 = vld [vmem:[#allocation4 + $0xa8] sm:$0xff]  ;;  %1329 = vst.msk [vmem:[#allocation5 + $0x70] sm:$0x1] %vm1225_vm2, %v1313_v19  ;;  %v5832_v50 = vrot.slane %v4207_v47, 1  ;;  %v5833_v61 = vrot.slane %v4219_v21, 1  ;;  %v1361_v5 = vld [vmem:[#allocation4 + $0xb8] sm:$0xff] }
 0x130   :  { %v1314_v10 = vadd.f32 %v5830_v53, %v1250_v15  ;;  %v1315_v1 = vadd.f32 %v5831_v3, %v1251_v2  ;;  %v5664_v53 = vrot.slane %v4251_v23, 1  ;;  %v1363_v49 = vld [vmem:[#allocation4 + $0xc8] sm:$0xff]  ;;  %v1365_v52 = vld [vmem:[#allocation4 + $0xd8] sm:$0xff]  ;;  %v5834_v7 = vrot.slane %v4223_v51, 1 }
 0x131   :  { %v1316_v46 = vadd.f32 %v5832_v50, %v1252_v31  ;;  %v1317_v15 = vadd.f32 %v5833_v61, %v1253_v38  ;;  %v5835_v19 = vrot.slane %v4235_v43, 1  ;;  %v5836_v2 = vrot.slane %v4247_v54, 1  ;;  %v1367_v50 = vld [vmem:[#allocation4 + $0xe8] sm:$0xff]  ;;  %v1369_v61 = vld [vmem:[#allocation4 + $0xf8] sm:$0xff]  ;;  %v1338_v38 = vld [vmem:[#allocation4] sm:$0xff] }
 0x132   :  { %1330 = vst.msk [vmem:[#allocation5 + $0x80] sm:$0x1] %vm1225_vm2, %v1314_v10  ;;  %v1318_v57 = vadd.f32 %v5834_v7, %v1254_v18  ;;  %v1371_v31 = vadd.f32 %v1339_v28, %v3833_v30  ;;  %1331 = vst.msk [vmem:[#allocation5 + $0x90] sm:$0x1] %vm1225_vm2, %v1315_v1  ;;  %v1321_v18 = vadd.f32 %v5664_v53, %v1257_v39  ;;  %v1340_v7 = vld [vmem:[#allocation4 + $0x10] sm:$0xff]  ;;  %v1342_v30 = vld [vmem:[#allocation4 + $0x20] sm:$0xff] }
 0x133   :  { %v1319_v0 = vadd.f32 %v5835_v19, %v1255_v14  ;;  %v1320_v3 = vadd.f32 %v5836_v2, %v1256_v33  ;;  %1332 = vst.msk [vmem:[#allocation5 + $0xa0] sm:$0x1] %vm1225_vm2, %v1316_v46  ;;  %1333 = vst.msk [vmem:[#allocation5 + $0xb0] sm:$0x1] %vm1225_vm2, %v1317_v15  ;;  %v1373_v10 = vadd.f32 %v1341_v29, %v3851_v4  ;;  %v1344_v28 = vld [vmem:[#allocation4 + $0x30] sm:$0xff]  ;;  %v1350_v29 = vld [vmem:[#allocation4 + $0x60] sm:$0xff] }
 0x134   :  { %v1375_v14 = vadd.f32 %v1343_v26, %v3855_v42  ;;  %v1377_v33 = vadd.f32 %v1345_v62, %v3877_v24  ;;  %1334 = vst.msk [vmem:[#allocation5 + $0xc0] sm:$0x1] %vm1225_vm2, %v1318_v57  ;;  %v1379_v1 = vadd.f32 %v1347_v22, %v3901_v41  ;;  %v1381_v39 = vadd.f32 %v1349_v16, %v3905_v40  ;;  %v1346_v24 = vld [vmem:[#allocation4 + $0x40] sm:$0xff]  ;;  %v1348_v62 = vld [vmem:[#allocation4 + $0x50] sm:$0xff]  ;;  %v5837_v40 = vld [vmem:[#allocation41_spill] sm:$0xff] }
 0x135   :  { %1335 = vst.msk [vmem:[#allocation5 + $0xd0] sm:$0x1] %vm1225_vm2, %v1319_v0  ;;  %1336 = vst.msk [vmem:[#allocation5 + $0xe0] sm:$0x1] %vm1225_vm2, %v1320_v3  ;;  %v1383_v4 = vadd.f32 %v1351_v9, %v3929_v55  ;;  %v1385_v42 = vadd.f32 %v1353_v45, %v3943_v58  ;;  %v1387_v57 = vadd.f32 %v1355_v59, %v3947_v17  ;;  %v5838_v55 = vld [vmem:[#allocation42_spill] sm:$0xff]  ;;  %v1352_v58 = vld [vmem:[#allocation4 + $0x70] sm:$0xff] }
 0x136   :  { %1403 = vst.msk [vmem:[#allocation4 + $0x8] sm:$0xff] %vm40_vm0, %v1371_v31  ;;  %1405 = vst.msk [vmem:[#allocation4 + $0x18] sm:$0xff] %vm40_vm0, %v1373_v10  ;;  %v1389_v41 = vadd.f32 %v1357_v13, %v3968_v34  ;;  %v1391_v0 = vadd.f32 %v1359_v37, %v5837_v40  ;;  %v1393_v9 = vadd.f32 %v1361_v5, %v5838_v55  ;;  %v1354_v45 = vld [vmem:[#allocation4 + $0x80] sm:$0xff]  ;;  %v1356_v16 = vld [vmem:[#allocation4 + $0x90] sm:$0xff] }
 0x137   :  { %1337 = vst.msk [vmem:[#allocation5 + $0xf0] sm:$0x1] %vm1225_vm2, %v1321_v18  ;;  %v5839_v26 = vld [vmem:[#allocation43_spill] sm:$0xff]  ;;  %v5840_v17 = vld [vmem:[#allocation9_spill] sm:$0xff]  ;;  %v5841_v34 = vld [vmem:[#allocation10_spill] sm:$0xff] }
 0x138   :  { %1407 = vst.msk [vmem:[#allocation4 + $0x28] sm:$0xff] %vm40_vm0, %v1375_v14  ;;  %1409 = vst.msk [vmem:[#allocation4 + $0x38] sm:$0xff] %vm40_vm0, %v1377_v33  ;;  %v1395_v22 = vadd.f32 %v1363_v49, %v5839_v26  ;;  %v1397_v59 = vadd.f32 %v1365_v52, %v5840_v17  ;;  %v1399_v13 = vadd.f32 %v1367_v50, %v5841_v34  ;;  %v5842_v37 = vld [vmem:[#allocation12_spill] sm:$0xff]  ;;  %v1358_v5 = vld [vmem:[#allocation4 + $0xa0] sm:$0xff] }
 0x139   :  { %1411 = vst.msk [vmem:[#allocation4 + $0x48] sm:$0xff] %vm40_vm0, %v1379_v1  ;;  %1413 = vst.msk [vmem:[#allocation4 + $0x58] sm:$0xff] %vm40_vm0, %v1381_v39  ;;  %v1401_v46 = vadd.f32 %v1369_v61, %v5842_v37  ;;  %v1360_v15 = vld [vmem:[#allocation4 + $0xb0] sm:$0xff]  ;;  %v1362_v19 = vld [vmem:[#allocation4 + $0xc0] sm:$0xff] }
 0x13a   :  { %1415 = vst.msk [vmem:[#allocation4 + $0x68] sm:$0xff] %vm40_vm0, %v1383_v4  ;;  %1417 = vst.msk [vmem:[#allocation4 + $0x78] sm:$0xff] %vm40_vm0, %v1385_v42  ;;  %v1435_v2 = vld [vmem:[#allocation5 + $0x8] sm:$0xff]  ;;  %v1437_v3 = vld [vmem:[#allocation5 + $0x18] sm:$0xff] }
 0x13b   :  { %v1439_v31 = vld [vmem:[#allocation5 + $0x28] sm:$0xff]  ;;  %v1441_v18 = vld [vmem:[#allocation5 + $0x38] sm:$0xff]  ;;  %1419 = vst.msk [vmem:[#allocation4 + $0x88] sm:$0xff] %vm40_vm0, %v1387_v57  ;;  %1421 = vst.msk [vmem:[#allocation4 + $0x98] sm:$0xff] %vm40_vm0, %v1389_v41 }
 0x13c   :  { %1423 = vst.msk [vmem:[#allocation4 + $0xa8] sm:$0xff] %vm40_vm0, %v1391_v0  ;;  %1425 = vst.msk [vmem:[#allocation4 + $0xb8] sm:$0xff] %vm40_vm0, %v1393_v9  ;;  %v5843_v52 = vld [vmem:[#allocation6_spill] sm:$0xff]  ;;  %v5844_v50 = vld [vmem:[#allocation7_spill] sm:$0xff]  ;;  %v1384_v0 = vadd.f32 %v1352_v58, %v3931_v32 }
 0x13d   :  { %v1370_v49 = vadd.f32 %v1338_v38, %v5843_v52  ;;  %v1372_v10 = vadd.f32 %v1340_v7, %v5844_v50  ;;  %v5845_v61 = vld [vmem:[#allocation19_spill] sm:$0xff]  ;;  %v5846_v33 = vld [vmem:[#allocation20_spill] sm:$0xff]  ;;  %v1366_v4 = vld [vmem:[#allocation4 + $0xe0] sm:$0xff]  ;;  %1427 = vst.msk [vmem:[#allocation4 + $0xc8] sm:$0xff] %vm40_vm0, %v1395_v22  ;;  %v1386_v22 = vadd.f32 %v1354_v45, %v3945_v12 }
 0x13e   :  { %v1374_v14 = vadd.f32 %v1342_v30, %v5845_v61  ;;  %v1376_v1 = vadd.f32 %v1344_v28, %v5846_v33  ;;  %v1364_v39 = vld [vmem:[#allocation4 + $0xd0] sm:$0xff]  ;;  %v1443_v40 = vld [vmem:[#allocation5 + $0x48] sm:$0xff]  ;;  %v1445_v55 = vld [vmem:[#allocation5 + $0x58] sm:$0xff]  ;;  %1429 = vst.msk [vmem:[#allocation4 + $0xd8] sm:$0xff] %vm40_vm0, %v1397_v59  ;;  %v1380_v30 = vadd.f32 %v1348_v62, %v3903_v36  ;;  %v1390_v62 = vadd.f32 %v1358_v5, %v3970_v44 }
 0x13f   :  { %v1368_v42 = vld [vmem:[#allocation4 + $0xf0] sm:$0xff]  ;;  %v1447_v57 = vld [vmem:[#allocation5 + $0x68] sm:$0xff]  ;;  %v1449_v53 = vld [vmem:[#allocation5 + $0x78] sm:$0xff]  ;;  %1431 = vst.msk [vmem:[#allocation4 + $0xe8] sm:$0xff] %vm40_vm0, %v1399_v13  ;;  %v1396_v45 = vadd.f32 %v1364_v39, %v4020_v56 }
 0x140   :  { %1433 = vst.msk [vmem:[#allocation4 + $0xf8] sm:$0xff] %vm40_vm0, %v1401_v46  ;;  %v5847_v38 = vld [vmem:[#allocation25_spill] sm:$0xff]  ;;  %v1451_v9 = vld [vmem:[#allocation5 + $0x88] sm:$0xff]  ;;  %1402 = vst.msk [vmem:[#allocation4] sm:$0xff] %vm40_vm0, %v1370_v49  ;;  %v1394_v46 = vadd.f32 %v1362_v19, %v4016_v35  ;;  %v1400_v5 = vadd.f32 %v1368_v42, %v4060_v27 }
 0x141   :  { %v1378_v7 = vadd.f32 %v1346_v24, %v5847_v38  ;;  %v5848_v28 = vld [vmem:[#allocation37_spill] sm:$0xff]  ;;  %v1455_v61 = vld [vmem:[#allocation5 + $0xa8] sm:$0xff]  ;;  %1404 = vst.msk [vmem:[#allocation4 + $0x10] sm:$0xff] %vm40_vm0, %v1372_v10  ;;  %1406 = vst.msk [vmem:[#allocation4 + $0x20] sm:$0xff] %vm40_vm0, %v1374_v14  ;;  %v1388_v24 = vadd.f32 %v1356_v16, %v3966_v48  ;;  %v1398_v16 = vadd.f32 %v1366_v4, %v4039_v8 }
 0x142   :  { %v1382_v41 = vadd.f32 %v1350_v29, %v5848_v28  ;;  %v1453_v33 = vld [vmem:[#allocation5 + $0x98] sm:$0xff]  ;;  %1408 = vst.msk [vmem:[#allocation4 + $0x30] sm:$0xff] %vm40_vm0, %v1376_v1  ;;  %v1392_v29 = vadd.f32 %v1360_v15, %v3992_v60  ;;  %v1459_v59 = vld [vmem:[#allocation5 + $0xc8] sm:$0xff]  ;;  %1412 = vst.msk [vmem:[#allocation4 + $0x50] sm:$0xff] %vm40_vm0, %v1380_v30 }
 0x143   :  { %v1457_v58 = vld [vmem:[#allocation5 + $0xb8] sm:$0xff]  ;;  %1410 = vst.msk [vmem:[#allocation4 + $0x40] sm:$0xff] %vm40_vm0, %v1378_v7  ;;  %1416 = vst.msk [vmem:[#allocation4 + $0x70] sm:$0xff] %vm40_vm0, %v1384_v0  ;;  %v1463_v15 = vld [vmem:[#allocation5 + $0xe8] sm:$0xff] }
 0x144   :  { %v1461_v13 = vld [vmem:[#allocation5 + $0xd8] sm:$0xff]  ;;  %1414 = vst.msk [vmem:[#allocation4 + $0x60] sm:$0xff] %vm40_vm0, %v1382_v41  ;;  %v1434_v10 = vld [vmem:[#allocation5] sm:$0xff]  ;;  %1418 = vst.msk [vmem:[#allocation4 + $0x80] sm:$0xff] %vm40_vm0, %v1386_v22 }
 0x145   :  { %v1465_v49 = vld [vmem:[#allocation5 + $0xf8] sm:$0xff]  ;;  %1420 = vst.msk [vmem:[#allocation4 + $0x90] sm:$0xff] %vm40_vm0, %v1388_v24  ;;  %1422 = vst.msk [vmem:[#allocation4 + $0xa0] sm:$0xff] %vm40_vm0, %v1390_v62  ;;  %v5850_v19 = vld [vmem:[#allocation14_spill] sm:$0xff] }
 0x146   :  { %1424 = vst.msk [vmem:[#allocation4 + $0xb0] sm:$0xff] %vm40_vm0, %v1392_v29  ;;  %v5849_v14 = vld [vmem:[#allocation13_spill] sm:$0xff]  ;;  %v1469_v7 = vadd.f32 %v1437_v3, %v5850_v19  ;;  %v5851_v39 = vld [vmem:[#allocation16_spill] sm:$0xff]  ;;  %v5852_v4 = vld [vmem:[#allocation18_spill] sm:$0xff] }
 0x147   :  { %v1467_v1 = vadd.f32 %v1435_v2, %v5849_v14  ;;  %v1471_v30 = vadd.f32 %v1439_v31, %v5851_v39  ;;  %v1473_v41 = vadd.f32 %v1441_v18, %v5852_v4  ;;  %v1436_v42 = vld [vmem:[#allocation5 + $0x10] sm:$0xff]  ;;  %v1438_v0 = vld [vmem:[#allocation5 + $0x20] sm:$0xff]  ;;  %1426 = vst.msk [vmem:[#allocation4 + $0xc0] sm:$0xff] %vm40_vm0, %v1394_v46  ;;  %1428 = vst.msk [vmem:[#allocation4 + $0xd0] sm:$0xff] %vm40_vm0, %v1396_v45 }
 0x148   :  { %v1440_v27 = vld [vmem:[#allocation5 + $0x30] sm:$0xff]  ;;  %1430 = vst.msk [vmem:[#allocation4 + $0xe0] sm:$0xff] %vm40_vm0, %v1398_v16  ;;  %1432 = vst.msk [vmem:[#allocation4 + $0xf0] sm:$0xff] %vm40_vm0, %v1400_v5  ;;  %v5853_v22 = vld [vmem:[#allocation22_spill] sm:$0xff] }
 0x149   :  { %v1475_v24 = vadd.f32 %v1443_v40, %v5853_v22  ;;  %v5854_v2 = vld [vmem:[#allocation24_spill] sm:$0xff]  ;;  %v5855_v3 = vld [vmem:[#allocation27_spill] sm:$0xff]  ;;  %v5856_v31 = vld [vmem:[#allocation29_spill] sm:$0xff]  ;;  %1499 = vst.msk [vmem:[#allocation5 + $0x8] sm:$0xff] %vm40_vm0, %v1467_v1  ;;  %v1491_v1 = vadd.f32 %v1459_v59, %v4233_v25  ;;  %v1468_v25 = vadd.f32 %v1436_v42, %v4087_v20 }
 0x14a   :  { %v1477_v62 = vadd.f32 %v1445_v55, %v5854_v2  ;;  %v1479_v29 = vadd.f32 %v1447_v57, %v5855_v3  ;;  %v1481_v14 = vadd.f32 %v1449_v53, %v5856_v31  ;;  %v1442_v18 = vld [vmem:[#allocation5 + $0x40] sm:$0xff]  ;;  %v1444_v19 = vld [vmem:[#allocation5 + $0x50] sm:$0xff]  ;;  %1501 = vst.msk [vmem:[#allocation5 + $0x18] sm:$0xff] %vm40_vm0, %v1469_v7  ;;  %1503 = vst.msk [vmem:[#allocation5 + $0x28] sm:$0xff] %vm40_vm0, %v1471_v30 }
 0x14b   :  { %v1446_v39 = vld [vmem:[#allocation5 + $0x60] sm:$0xff]  ;;  %1505 = vst.msk [vmem:[#allocation5 + $0x38] sm:$0xff] %vm40_vm0, %v1473_v41  ;;  %v5857_v46 = vld [vmem:[#allocation31_spill] sm:$0xff]  ;;  %v5858_v40 = vld [vmem:[#allocation33_spill] sm:$0xff] }
 0x14c   :  { %v1483_v45 = vadd.f32 %v1451_v9, %v5857_v46  ;;  %v1485_v16 = vadd.f32 %v1453_v33, %v5858_v40  ;;  %v5859_v55 = vld [vmem:[#allocation35_spill] sm:$0xff]  ;;  %v5860_v57 = vld [vmem:[#allocation38_spill] sm:$0xff]  ;;  %v1448_v53 = vld [vmem:[#allocation5 + $0x70] sm:$0xff]  ;;  %1507 = vst.msk [vmem:[#allocation5 + $0x48] sm:$0xff] %vm40_vm0, %v1475_v24  ;;  %v1493_v9 = vadd.f32 %v1461_v13, %v4237_v63  ;;  %v1466_v24 = vadd.f32 %v1434_v10, %v4064_v6 }
 0x14d   :  { %v1487_v5 = vadd.f32 %v1455_v61, %v5859_v55  ;;  %v1489_v4 = vadd.f32 %v1457_v58, %v5860_v57  ;;  %v1450_v22 = vld [vmem:[#allocation5 + $0x80] sm:$0xff]  ;;  %v1452_v2 = vld [vmem:[#allocation5 + $0x90] sm:$0xff]  ;;  %1509 = vst.msk [vmem:[#allocation5 + $0x58] sm:$0xff] %vm40_vm0, %v1477_v62  ;;  %1511 = vst.msk [vmem:[#allocation5 + $0x68] sm:$0xff] %vm40_vm0, %v1479_v29  ;;  %v1470_v63 = vadd.f32 %v1438_v0, %v4111_v11 }
 0x14e   :  { %1513 = vst.msk [vmem:[#allocation5 + $0x78] sm:$0xff] %vm40_vm0, %v1481_v14  ;;  %v5861_v33 = vld [vmem:[#allocation45_spill] sm:$0xff]  ;;  %v5862_v61 = vld [vmem:[#allocation47_spill] sm:$0xff]  ;;  %v1454_v58 = vld [vmem:[#allocation5 + $0xa0] sm:$0xff] }
 0x14f   :  { %v1495_v7 = vadd.f32 %v1463_v15, %v5861_v33  ;;  %v1497_v30 = vadd.f32 %v1465_v49, %v5862_v61  ;;  %v1456_v41 = vld [vmem:[#allocation5 + $0xb0] sm:$0xff]  ;;  %v1458_v3 = vld [vmem:[#allocation5 + $0xc0] sm:$0xff]  ;;  %1515 = vst.msk [vmem:[#allocation5 + $0x88] sm:$0xff] %vm40_vm0, %v1483_v45  ;;  %1517 = vst.msk [vmem:[#allocation5 + $0x98] sm:$0xff] %vm40_vm0, %v1485_v16 }
 0x150   :  { %1519 = vst.msk [vmem:[#allocation5 + $0xa8] sm:$0xff] %vm40_vm0, %v1487_v5  ;;  %1521 = vst.msk [vmem:[#allocation5 + $0xb8] sm:$0xff] %vm40_vm0, %v1489_v4  ;;  %v5863_v59 = vld [vmem:[#allocation17_spill] sm:$0xff]  ;;  %v1460_v15 = vld [vmem:[#allocation5 + $0xd0] sm:$0xff] }
 0x151   :  { %v1472_v13 = vadd.f32 %v1440_v27, %v5863_v59  ;;  %v1462_v49 = vld [vmem:[#allocation5 + $0xe0] sm:$0xff]  ;;  %v1464_v62 = vld [vmem:[#allocation5 + $0xf0] sm:$0xff]  ;;  %1523 = vst.msk [vmem:[#allocation5 + $0xc8] sm:$0xff] %vm40_vm0, %v1491_v1  ;;  %1525 = vst.msk [vmem:[#allocation5 + $0xd8] sm:$0xff] %vm40_vm0, %v1493_v9 }
 0x152   :  { %1527 = vst.msk [vmem:[#allocation5 + $0xe8] sm:$0xff] %vm40_vm0, %v1495_v7  ;;  %1529 = vst.msk [vmem:[#allocation5 + $0xf8] sm:$0xff] %vm40_vm0, %v1497_v30  ;;  %v5864_v29 = vld [vmem:[#allocation21_spill] sm:$0xff]  ;;  %v5865_v10 = vld [vmem:[#allocation23_spill] sm:$0xff]  ;;  %v1496_v1 = vadd.f32 %v1464_v62, %v4251_v23 }
 0x153   :  { %v1474_v31 = vadd.f32 %v1442_v18, %v5864_v29  ;;  %v1476_v14 = vadd.f32 %v1444_v19, %v5865_v10  ;;  %v5866_v42 = vld [vmem:[#allocation26_spill] sm:$0xff]  ;;  %v5867_v0 = vld [vmem:[#allocation28_spill] sm:$0xff]  ;;  %v1531_v27 = vld [vmem:[#allocation4 + $0x8] sm:$0x7f]  ;;  %1498 = vst.msk [vmem:[#allocation5] sm:$0xff] %vm40_vm0, %v1466_v24  ;;  %v1486_v18 = vadd.f32 %v1454_v58, %v4207_v47  ;;  %v1488_v19 = vadd.f32 %v1456_v41, %v4219_v21 }
 0x154   :  { %v1478_v46 = vadd.f32 %v1446_v39, %v5866_v42  ;;  %v1480_v45 = vadd.f32 %v1448_v53, %v5867_v0  ;;  %1500 = vst.msk [vmem:[#allocation5 + $0x10] sm:$0xff] %vm40_vm0, %v1468_v25  ;;  %1502 = vst.msk [vmem:[#allocation5 + $0x20] sm:$0xff] %vm40_vm0, %v1470_v63  ;;  %v5868_v40 = vld [vmem:[#allocation30_spill] sm:$0xff]  ;;  %v5869_v55 = vld [vmem:[#allocation32_spill] sm:$0xff]  ;;  %v1490_v53 = vadd.f32 %v1458_v3, %v4223_v51  ;;  %v5875_v51 = vrot.slane %v5840_v17, 1 }
 0x155   :  { %1504 = vst.msk [vmem:[#allocation5 + $0x30] sm:$0xff] %vm40_vm0, %v1472_v13  ;;  %v1482_v16 = vadd.f32 %v1450_v22, %v5868_v40  ;;  %v1484_v5 = vadd.f32 %v1452_v2, %v5869_v55  ;;  %v1533_v39 = vld [vmem:[#allocation4 + $0x18] sm:$0x7f]  ;;  %v1535_v57 = vld [vmem:[#allocation4 + $0x28] sm:$0x7f]  ;;  %1506 = vst.msk [vmem:[#allocation5 + $0x40] sm:$0xff] %vm40_vm0, %v1474_v31  ;;  %v1492_v22 = vadd.f32 %v1460_v15, %v4235_v43 }
 0x156   :  { %v1537_v4 = vld [vmem:[#allocation4 + $0x38] sm:$0x7f]  ;;  %1508 = vst.msk [vmem:[#allocation5 + $0x50] sm:$0xff] %vm40_vm0, %v1476_v14  ;;  %1510 = vst.msk [vmem:[#allocation5 + $0x60] sm:$0xff] %vm40_vm0, %v1478_v46  ;;  %v1494_v2 = vadd.f32 %v1462_v49, %v4247_v54  ;;  %v1539_v9 = vld [vmem:[#allocation4 + $0x48] sm:$0x7f] }
 0x157   :  { %1512 = vst.msk [vmem:[#allocation5 + $0x70] sm:$0xff] %vm40_vm0, %v1480_v45  ;;  %v1541_v33 = vld [vmem:[#allocation4 + $0x58] sm:$0x7f]  ;;  %v1543_v7 = vld [vmem:[#allocation4 + $0x68] sm:$0x7f]  ;;  %1514 = vst.msk [vmem:[#allocation5 + $0x80] sm:$0xff] %vm40_vm0, %v1482_v16 }
 0x158   :  { %1516 = vst.msk [vmem:[#allocation5 + $0x90] sm:$0xff] %vm40_vm0, %v1484_v5  ;;  %1518 = vst.msk [vmem:[#allocation5 + $0xa0] sm:$0xff] %vm40_vm0, %v1486_v18  ;;  %v4493_v61 = vld [vmem:[#allocation2 + $0x8] sm:$0xff]  ;;  %v4496_v58 = vld [vmem:[#allocation2 + $0x18] sm:$0xff] }
 0x159   :  { %1520 = vst.msk [vmem:[#allocation5 + $0xb0] sm:$0xff] %vm40_vm0, %v1488_v19  ;;  %v5667_v30 = vrot.slane %v4493_v61, 1  ;;  %v5668_v41 = vrot.slane %v4496_v58, 1  ;;  %v4499_v3 = vld [vmem:[#allocation2 + $0x28] sm:$0xff]  ;;  %v4502_v25 = vld [vmem:[#allocation2 + $0x38] sm:$0xff]  ;;  %1522 = vst.msk [vmem:[#allocation5 + $0xc0] sm:$0xff] %vm40_vm0, %v1490_v53 }
 0x15a   :  { %v5670_v24 = vrot.slane %v4499_v3, 1  ;;  %v5672_v63 = vrot.slane %v4502_v25, 1  ;;  %v1545_v13 = vld [vmem:[#allocation4 + $0x78] sm:$0x7f]  ;;  %1524 = vst.msk [vmem:[#allocation5 + $0xd0] sm:$0xff] %vm40_vm0, %v1492_v22  ;;  %1526 = vst.msk [vmem:[#allocation5 + $0xe0] sm:$0xff] %vm40_vm0, %v1494_v2 }
 0x15b   :  { %1528 = vst.msk [vmem:[#allocation5 + $0xf0] sm:$0xff] %vm40_vm0, %v1496_v1  ;;  %v4509_v15 = vld [vmem:[#allocation2 + $0x48] sm:$0xff]  ;;  %v4512_v62 = vld [vmem:[#allocation2 + $0x58] sm:$0xff]  ;;  %v1644_v18 = vadd.f32 %v5667_v30, %v1531_v27  ;;  %v1646_v19 = vadd.f32 %v5668_v41, %v1533_v39  ;;  %v1538_v11 = vld [vmem:[#allocation4 + $0x40] sm:$0xff] }
 0x15c   :  { %v5671_v49 = vrot.slane %v4509_v15, 1  ;;  %v4515_v14 = vld [vmem:[#allocation2 + $0x68] sm:$0xff]  ;;  %v4518_v45 = vld [vmem:[#allocation2 + $0x78] sm:$0xff]  ;;  %v1648_v53 = vadd.f32 %v5670_v24, %v1535_v57  ;;  %v1650_v22 = vadd.f32 %v5672_v63, %v1537_v4  ;;  %v5870_v16 = vrot.slane %v4512_v62, 1 }
 0x15d   :  { %v1547_v5 = vld [vmem:[#allocation4 + $0x88] sm:$0x7f]  ;;  %v1549_v2 = vld [vmem:[#allocation4 + $0x98] sm:$0x7f]  ;;  %v5871_v27 = vrot.slane %v4515_v14, 1  ;;  %v5872_v39 = vrot.slane %v4518_v45, 1 }
 0x15e   :  { %v1551_v1 = vld [vmem:[#allocation4 + $0xa8] sm:$0x7f]  ;;  %v1553_v46 = vld [vmem:[#allocation4 + $0xb8] sm:$0x7f]  ;;  %v1652_v31 = vadd.f32 %v5671_v49, %v1539_v9  ;;  %v1654_v23 = vadd.f32 %v5870_v16, %v1541_v33  ;;  %1676 = vst.msk [vmem:[#allocation4 + $0x8] sm:$0x7f] %vm1017_vm1, %v1644_v18 }
 0x15f   :  { %v1656_v30 = vadd.f32 %v5871_v27, %v1543_v7  ;;  %v1658_v41 = vadd.f32 %v5872_v39, %v1545_v13  ;;  %v1555_v54 = vld [vmem:[#allocation4 + $0xc8] sm:$0x7f]  ;;  %v1557_v57 = vld [vmem:[#allocation4 + $0xd8] sm:$0x7f]  ;;  %1678 = vst.msk [vmem:[#allocation4 + $0x18] sm:$0x7f] %vm1017_vm1, %v1646_v19 }
 0x160   :  { %v1559_v24 = vld [vmem:[#allocation4 + $0xe8] sm:$0x7f]  ;;  %1680 = vst.msk [vmem:[#allocation4 + $0x28] sm:$0x7f] %vm1017_vm1, %v1648_v53  ;;  %1682 = vst.msk [vmem:[#allocation4 + $0x38] sm:$0x7f] %vm1017_vm1, %v1650_v22  ;;  %v1670_v21 = vadd.f32 %v5875_v51, %v1557_v57 }
 0x161   :  { %v4541_v4 = vld [vmem:[#allocation2 + $0x88] sm:$0xff]  ;;  %v4544_v33 = vld [vmem:[#allocation2 + $0x98] sm:$0xff]  ;;  %1684 = vst.msk [vmem:[#allocation4 + $0x48] sm:$0x7f] %vm1017_vm1, %v1652_v31  ;;  %1686 = vst.msk [vmem:[#allocation4 + $0x58] sm:$0x7f] %vm1017_vm1, %v1654_v23 }
 0x162   :  { %v5676_v9 = vrot.slane %v4541_v4, 1  ;;  %v5677_v7 = vrot.slane %v4544_v33, 1  ;;  %v4547_v13 = vld [vmem:[#allocation2 + $0xa8] sm:$0xff]  ;;  %v4550_v27 = vld [vmem:[#allocation2 + $0xb8] sm:$0xff]  ;;  %1688 = vst.msk [vmem:[#allocation4 + $0x68] sm:$0x7f] %vm1017_vm1, %v1656_v30 }
 0x163   :  { %v5679_v16 = vrot.slane %v4547_v13, 1  ;;  %v1561_v19 = vld [vmem:[#allocation4 + $0xf8] sm:$0x7f]  ;;  %1690 = vst.msk [vmem:[#allocation4 + $0x78] sm:$0x7f] %vm1017_vm1, %v1658_v41  ;;  %v5873_v41 = vrot.slane %v4550_v27, 1 }
 0x164   :  { %v1883_v63 = vld [vmem:[#allocation4 + $0xf] sm:$0x1]  ;;  %v1660_v18 = vadd.f32 %v5676_v9, %v1547_v5  ;;  %v1662_v23 = vadd.f32 %v5677_v7, %v1549_v2  ;;  %v1884_v53 = vld [vmem:[#allocation4 + $0x1f] sm:$0x1]  ;;  %v5874_v39 = vrot.slane %v5839_v26, 1  ;;  %v5876_v5 = vrot.slane %v5841_v34, 1 }
 0x165   :  { %v1664_v30 = vadd.f32 %v5679_v16, %v1551_v1  ;;  %v1666_v31 = vadd.f32 %v5873_v41, %v1553_v46  ;;  %v1885_v22 = vld [vmem:[#allocation4 + $0x2f] sm:$0x1]  ;;  %v1886_v43 = vld [vmem:[#allocation4 + $0x3f] sm:$0x1]  ;;  %v5877_v2 = vrot.slane %v5842_v37, 1  ;;  %v1900_v51 = vrot.slane %v4496_v58, 6 }
 0x166   :  { %v1668_v49 = vadd.f32 %v5874_v39, %v1555_v54  ;;  %v1672_v9 = vadd.f32 %v5876_v5, %v1559_v24  ;;  %v1887_v47 = vld [vmem:[#allocation4 + $0x4f] sm:$0x1]  ;;  %v1888_v1 = vld [vmem:[#allocation4 + $0x5f] sm:$0x1]  ;;  %1692 = vst.msk [vmem:[#allocation4 + $0x88] sm:$0x7f] %vm1017_vm1, %v1660_v18 }
 0x167   :  { %v1674_v7 = vadd.f32 %v5877_v2, %v1561_v19  ;;  %v1889_v16 = vld [vmem:[#allocation4 + $0x6f] sm:$0x1]  ;;  %1694 = vst.msk [vmem:[#allocation4 + $0x98] sm:$0x7f] %vm1017_vm1, %v1662_v23  ;;  %1696 = vst.msk [vmem:[#allocation4 + $0xa8] sm:$0x7f] %vm1017_vm1, %v1664_v30 }
 0x168   :  { %1698 = vst.msk [vmem:[#allocation4 + $0xb8] sm:$0x7f] %vm1017_vm1, %v1666_v31  ;;  %v1899_v54 = vrot.slane %v4493_v61, 6  ;;  %v1901_v24 = vrot.slane %v4499_v3, 6  ;;  %v1902_v46 = vrot.slane %v4502_v25, 6  ;;  %v1903_v18 = vrot.slane %v4509_v15, 6 }
 0x169   :  { %v1890_v57 = vld [vmem:[#allocation4 + $0x7f] sm:$0x1]  ;;  %1700 = vst.msk [vmem:[#allocation4 + $0xc8] sm:$0x7f] %vm1017_vm1, %v1668_v49  ;;  %1702 = vst.msk [vmem:[#allocation4 + $0xd8] sm:$0x7f] %vm1017_vm1, %v1670_v21  ;;  %v1932_v31 = vadd.f32 %v1900_v51, %v1884_v53 }
 0x16a   :  { %1704 = vst.msk [vmem:[#allocation4 + $0xe8] sm:$0x7f] %vm1017_vm1, %v1672_v9  ;;  %1706 = vst.msk [vmem:[#allocation4 + $0xf8] sm:$0x7f] %vm1017_vm1, %v1674_v7  ;;  %v1904_v19 = vrot.slane %v4512_v62, 6  ;;  %v1905_v39 = vrot.slane %v4515_v14, 6  ;;  %v1931_v41 = vadd.f32 %v1899_v54, %v1883_v63  ;;  %v1933_v5 = vadd.f32 %v1901_v24, %v1885_v22 }
 0x16b   :  { %v1906_v23 = vrot.slane %v4518_v45, 6  ;;  %v1891_v30 = vld [vmem:[#allocation4 + $0x8f] sm:$0x1]  ;;  %v1934_v2 = vadd.f32 %v1902_v46, %v1886_v43  ;;  %v1892_v49 = vld [vmem:[#allocation4 + $0x9f] sm:$0x1]  ;;  %v1935_v40 = vadd.f32 %v1903_v18, %v1887_v47  ;;  %v1907_v43 = vrot.slane %v4541_v4, 6 }
 0x16c   :  { %v1893_v55 = vld [vmem:[#allocation4 + $0xaf] sm:$0x1]  ;;  %v1894_v21 = vld [vmem:[#allocation4 + $0xbf] sm:$0x1]  ;;  %v1936_v9 = vadd.f32 %v1904_v19, %v1888_v1  ;;  %v1937_v0 = vadd.f32 %v1905_v39, %v1889_v16  ;;  %1947 = vst.msk [vmem:[#allocation4 + $0xf] sm:$0x1] %vm1225_vm2, %v1931_v41 }
 0x16d   :  { %v1938_v7 = vadd.f32 %v1906_v23, %v1890_v57  ;;  %v1895_v42 = vld [vmem:[#allocation4 + $0xcf] sm:$0x1]  ;;  %v1896_v10 = vld [vmem:[#allocation4 + $0xdf] sm:$0x1]  ;;  %1948 = vst.msk [vmem:[#allocation4 + $0x1f] sm:$0x1] %vm1225_vm2, %v1932_v31  ;;  %v1939_v39 = vadd.f32 %v1907_v43, %v1891_v30 }
 0x16e   :  { %v1897_v29 = vld [vmem:[#allocation4 + $0xef] sm:$0x1]  ;;  %1949 = vst.msk [vmem:[#allocation4 + $0x2f] sm:$0x1] %vm1225_vm2, %v1933_v5  ;;  %1950 = vst.msk [vmem:[#allocation4 + $0x3f] sm:$0x1] %vm1225_vm2, %v1934_v2 }
 0x16f   :  { %v1908_v63 = vrot.slane %v4544_v33, 6  ;;  %v1909_v47 = vrot.slane %v4547_v13, 6  ;;  %v1910_v16 = vrot.slane %v4550_v27, 6  ;;  %v1898_v53 = vld [vmem:[#allocation4 + $0xff] sm:$0x1]  ;;  %v2668_v22 = vld [vmem:[#allocation2 + $0xc8] sm:$0xff] }
 0x170   :  { %1951 = vst.msk [vmem:[#allocation4 + $0x4f] sm:$0x1] %vm1225_vm2, %v1935_v40  ;;  %1952 = vst.msk [vmem:[#allocation4 + $0x5f] sm:$0x1] %vm1225_vm2, %v1936_v9  ;;  %v1911_v1 = vrot.slane %v2668_v22, 6  ;;  %v2669_v54 = vld [vmem:[#allocation2 + $0xd8] sm:$0xff] }
 0x171   :  { %1953 = vst.msk [vmem:[#allocation4 + $0x6f] sm:$0x1] %vm1225_vm2, %v1937_v0  ;;  %1954 = vst.msk [vmem:[#allocation4 + $0x7f] sm:$0x1] %vm1225_vm2, %v1938_v7  ;;  %v1912_v51 = vrot.slane %v2669_v54, 6  ;;  %v2670_v24 = vld [vmem:[#allocation2 + $0xe8] sm:$0xff]  ;;  %v1940_v23 = vadd.f32 %v1908_v63, %v1892_v49  ;;  %v1941_v41 = vadd.f32 %v1909_v47, %v1893_v55  ;;  %v1942_v31 = vadd.f32 %v1910_v16, %v1894_v21 }
 0x172   :  { %v1913_v46 = vrot.slane %v2670_v24, 6  ;;  %v2671_v57 = vld [vmem:[#allocation2 + $0xf8] sm:$0xff]  ;;  %v1530_v19 = vld [vmem:[#allocation4] sm:$0xff]  ;;  %v1532_v40 = vld [vmem:[#allocation4 + $0x10] sm:$0xff]  ;;  %v1943_v9 = vadd.f32 %v1911_v1, %v1895_v42  ;;  %1955 = vst.msk [vmem:[#allocation4 + $0x8f] sm:$0x1] %vm1225_vm2, %v1939_v39 }
 0x173   :  { %v1914_v18 = vrot.slane %v2671_v57, 6  ;;  %v1534_v5 = vld [vmem:[#allocation4 + $0x20] sm:$0xff]  ;;  %v1536_v2 = vld [vmem:[#allocation4 + $0x30] sm:$0xff]  ;;  %v1944_v0 = vadd.f32 %v1912_v51, %v1896_v10  ;;  %1956 = vst.msk [vmem:[#allocation4 + $0x9f] sm:$0x1] %vm1225_vm2, %v1940_v23  ;;  %v5878_v30 = vrot.slane %v4493_v61, 1 }
 0x174   :  { %v1945_v59 = vadd.f32 %v1913_v46, %v1897_v29  ;;  %1957 = vst.msk [vmem:[#allocation4 + $0xaf] sm:$0x1] %vm1225_vm2, %v1941_v41  ;;  %1958 = vst.msk [vmem:[#allocation4 + $0xbf] sm:$0x1] %vm1225_vm2, %v1942_v31  ;;  %v5879_v55 = vrot.slane %v5843_v52, 1  ;;  %v5880_v42 = vrot.slane %v4496_v58, 1 }
 0x175   :  { %v1946_v7 = vadd.f32 %v1914_v18, %v1898_v53  ;;  %v5881_v29 = vrot.slane %v5844_v50, 1  ;;  %v5882_v21 = vrot.slane %v4499_v3, 1  ;;  %v5883_v43 = vld [vmem:[#allocation19_spill] sm:$0xff]  ;;  %v5885_v16 = vrot.slane %v4502_v25, 1  ;;  %v5886_v53 = vld [vmem:[#allocation20_spill] sm:$0xff]  ;;  %v1542_v1 = vld [vmem:[#allocation4 + $0x60] sm:$0xff] }
 0x176   :  { %v1580_v49 = vsel %vm1578_vm3, %v5879_v55, %v5878_v30  ;;  %v5884_v63 = vrot.slane %v5883_v43, 1  ;;  %v5887_v61 = vrot.slane %v5886_v53, 1  ;;  %v1540_v22 = vld [vmem:[#allocation4 + $0x50] sm:$0xff]  ;;  %1959 = vst.msk [vmem:[#allocation4 + $0xcf] sm:$0x1] %vm1225_vm2, %v1943_v9  ;;  %v1546_v25 = vld [vmem:[#allocation4 + $0x80] sm:$0xff] }
 0x177   :  { %v1582_v10 = vsel %vm1578_vm3, %v5881_v29, %v5880_v42  ;;  %v1544_v54 = vld [vmem:[#allocation4 + $0x70] sm:$0xff]  ;;  %1960 = vst.msk [vmem:[#allocation4 + $0xdf] sm:$0x1] %vm1225_vm2, %v1944_v0  ;;  %1961 = vst.msk [vmem:[#allocation4 + $0xef] sm:$0x1] %vm1225_vm2, %v1945_v59  ;;  %v1643_v50 = vadd.f32 %v1580_v49, %v1530_v19  ;;  %v5888_v24 = vrot.slane %v4509_v15, 1 }
 0x178   :  { %v1584_v47 = vsel %vm1578_vm3, %v5884_v63, %v5882_v21  ;;  %v1586_v52 = vsel %vm1578_vm3, %v5887_v61, %v5885_v16  ;;  %1962 = vst.msk [vmem:[#allocation4 + $0xff] sm:$0x1] %vm1225_vm2, %v1946_v7  ;;  %v1645_v58 = vadd.f32 %v1582_v10, %v1532_v40  ;;  %v5889_v46 = vrot.slane %v5847_v38, 1  ;;  %v1548_v40 = vld [vmem:[#allocation4 + $0x90] sm:$0xff]  ;;  %v1558_v21 = vld [vmem:[#allocation4 + $0xe0] sm:$0xff] }
 0x179   :  { %v1647_v3 = vadd.f32 %v1584_v47, %v1534_v5  ;;  %v1649_v51 = vadd.f32 %v1586_v52, %v1536_v2  ;;  %v5890_v18 = vrot.slane %v4512_v62, 1  ;;  %v5891_v39 = vrot.slane %v3903_v36, 1  ;;  %v1550_v5 = vld [vmem:[#allocation4 + $0xa0] sm:$0xff]  ;;  %v1552_v2 = vld [vmem:[#allocation4 + $0xb0] sm:$0xff]  ;;  %1675 = vst.msk [vmem:[#allocation4] sm:$0xff] %vm40_vm0, %v1643_v50  ;;  %v5911_v50 = vld [vmem:[#allocation11_spill] sm:$0xff] }
 0x17a   :  { %v1588_v57 = vsel %vm1578_vm3, %v5889_v46, %v5888_v24  ;;  %v5892_v59 = vrot.slane %v4515_v14, 1  ;;  %v5893_v19 = vrot.slane %v5848_v28, 1  ;;  %v5894_v31 = vrot.slane %v4518_v45, 1  ;;  %1677 = vst.msk [vmem:[#allocation4 + $0x10] sm:$0xff] %vm40_vm0, %v1645_v58  ;;  %v1554_v45 = vld [vmem:[#allocation4 + $0xc0] sm:$0xff]  ;;  %v1556_v10 = vld [vmem:[#allocation4 + $0xd0] sm:$0xff] }
 0x17b   :  { %v1590_v23 = vsel %vm1578_vm3, %v5891_v39, %v5890_v18  ;;  %v5895_v15 = vrot.slane %v3931_v32, 1  ;;  %1679 = vst.msk [vmem:[#allocation4 + $0x20] sm:$0xff] %vm40_vm0, %v1647_v3  ;;  %1681 = vst.msk [vmem:[#allocation4 + $0x30] sm:$0xff] %vm40_vm0, %v1649_v51  ;;  %v1651_v36 = vadd.f32 %v1588_v57, %v1538_v11  ;;  %v5896_v32 = vrot.slane %v4541_v4, 1  ;;  %v1560_v43 = vld [vmem:[#allocation4 + $0xf0] sm:$0xff]  ;;  %v4705_v46 = vld [vmem:[#allocation3 + $0x8] sm:$0xff] }
 0x17c   :  { %v1592_v41 = vsel %vm1578_vm3, %v5893_v19, %v5892_v59  ;;  %v1653_v28 = vadd.f32 %v1590_v23, %v1540_v22  ;;  %v5897_v9 = vrot.slane %v3945_v12, 1  ;;  %v5898_v7 = vrot.slane %v4544_v33, 1  ;;  %v1710_v58 = vld [vmem:[#allocation5 + $0x18] sm:$0x7f]  ;;  %v1712_v3 = vld [vmem:[#allocation5 + $0x28] sm:$0x7f] }
 0x17d   :  { %v1594_v38 = vsel %vm1578_vm3, %v5895_v15, %v5894_v31  ;;  %v1655_v62 = vadd.f32 %v1592_v41, %v1542_v1  ;;  %v5899_v30 = vrot.slane %v3966_v48, 1  ;;  %v5900_v49 = vrot.slane %v4547_v13, 1  ;;  %1683 = vst.msk [vmem:[#allocation4 + $0x40] sm:$0xff] %vm40_vm0, %v1651_v36  ;;  %v1714_v51 = vld [vmem:[#allocation5 + $0x38] sm:$0x7f]  ;;  %v4711_v23 = vld [vmem:[#allocation3 + $0x28] sm:$0xff] }
 0x17e   :  { %v1657_v14 = vadd.f32 %v1594_v38, %v1544_v54  ;;  %v1596_v0 = vsel %vm1578_vm3, %v5897_v9, %v5896_v32  ;;  %v5901_v11 = vrot.slane %v3970_v44, 1  ;;  %v5902_v29 = vrot.slane %v4550_v27, 1  ;;  %1685 = vst.msk [vmem:[#allocation4 + $0x50] sm:$0xff] %vm40_vm0, %v1653_v28  ;;  %v1708_v27 = vld [vmem:[#allocation5 + $0x8] sm:$0x7f]  ;;  %v4708_v18 = vld [vmem:[#allocation3 + $0x18] sm:$0xff] }
 0x17f   :  { %v1598_v55 = vsel %vm1578_vm3, %v5899_v30, %v5898_v7  ;;  %v5903_v4 = vrot.slane %v3992_v60, 1  ;;  %1687 = vst.msk [vmem:[#allocation4 + $0x60] sm:$0xff] %vm40_vm0, %v1655_v62  ;;  %v1659_v48 = vadd.f32 %v1596_v0, %v1546_v25  ;;  %v5904_v60 = vrot.slane %v5839_v26, 1  ;;  %v1718_v25 = vld [vmem:[#allocation5 + $0x58] sm:$0x7f]  ;;  %v4721_v15 = vld [vmem:[#allocation3 + $0x48] sm:$0xff] }
 0x180   :  { %v1600_v42 = vsel %vm1578_vm3, %v5901_v11, %v5900_v49  ;;  %1689 = vst.msk [vmem:[#allocation4 + $0x70] sm:$0xff] %vm40_vm0, %v1657_v14  ;;  %v1661_v44 = vadd.f32 %v1598_v55, %v1548_v40  ;;  %v5905_v63 = vrot.slane %v4016_v35, 1  ;;  %v5906_v16 = vrot.slane %v5840_v17, 1  ;;  %v1720_v24 = vld [vmem:[#allocation5 + $0x68] sm:$0x7f]  ;;  %v4714_v19 = vld [vmem:[#allocation3 + $0x38] sm:$0xff] }
 0x181   :  { %v1602_v12 = vsel %vm1578_vm3, %v5903_v4, %v5902_v29  ;;  %v1663_v33 = vadd.f32 %v1600_v42, %v1550_v5  ;;  %v5907_v53 = vrot.slane %v4020_v56, 1  ;;  %v5908_v52 = vrot.slane %v5841_v34, 1  ;;  %1691 = vst.msk [vmem:[#allocation4 + $0x80] sm:$0xff] %vm40_vm0, %v1659_v48  ;;  %v1722_v31 = vld [vmem:[#allocation5 + $0x78] sm:$0x7f] }
 0x182   :  { %v1665_v13 = vadd.f32 %v1602_v12, %v1552_v2  ;;  %v1604_v47 = vsel %vm1578_vm3, %v5905_v63, %v5904_v60  ;;  %v5909_v22 = vrot.slane %v4039_v8, 1  ;;  %v5910_v54 = vrot.slane %v5842_v37, 1  ;;  %1693 = vst.msk [vmem:[#allocation4 + $0x90] sm:$0xff] %vm40_vm0, %v1661_v44  ;;  %v1716_v37 = vld [vmem:[#allocation5 + $0x48] sm:$0x7f]  ;;  %v4724_v40 = vld [vmem:[#allocation3 + $0x58] sm:$0xff] }
 0x183   :  { %v1606_v61 = vsel %vm1578_vm3, %v5907_v53, %v5906_v16  ;;  %v5912_v26 = vrot.slane %v5911_v50, 1  ;;  %1695 = vst.msk [vmem:[#allocation4 + $0xa0] sm:$0xff] %vm40_vm0, %v1663_v33  ;;  %v1667_v56 = vadd.f32 %v1604_v47, %v1554_v45  ;;  %v1755_v57 = vrot.slane %v4705_v46, 1  ;;  %v4727_v2 = vld [vmem:[#allocation3 + $0x68] sm:$0xff]  ;;  %v4730_v28 = vld [vmem:[#allocation3 + $0x78] sm:$0xff] }
 0x184   :  { %v1608_v1 = vsel %vm1578_vm3, %v5909_v22, %v5908_v52  ;;  %1697 = vst.msk [vmem:[#allocation4 + $0xb0] sm:$0xff] %vm40_vm0, %v1665_v13  ;;  %v1669_v8 = vadd.f32 %v1606_v61, %v1556_v10  ;;  %v1757_v39 = vrot.slane %v4708_v18, 1  ;;  %v1759_v59 = vrot.slane %v4711_v23, 1  ;;  %v1724_v14 = vld [vmem:[#allocation5 + $0x88] sm:$0x7f]  ;;  %v4756_v48 = vld [vmem:[#allocation3 + $0x98] sm:$0xff] }
 0x185   :  { %v1610_v35 = vsel %vm1578_vm3, %v5912_v26, %v5910_v54  ;;  %v1671_v17 = vadd.f32 %v1608_v1, %v1558_v21  ;;  %v1761_v41 = vrot.slane %v4714_v19, 1  ;;  %1699 = vst.msk [vmem:[#allocation4 + $0xc0] sm:$0xff] %vm40_vm0, %v1667_v56  ;;  %v1763_v38 = vrot.slane %v4721_v15, 1  ;;  %v1726_v7 = vld [vmem:[#allocation5 + $0x98] sm:$0x7f]  ;;  %v4753_v21 = vld [vmem:[#allocation3 + $0x88] sm:$0xff] }
 0x186   :  { %v1673_v34 = vadd.f32 %v1610_v35, %v1560_v43  ;;  %1701 = vst.msk [vmem:[#allocation4 + $0xd0] sm:$0xff] %vm40_vm0, %v1669_v8  ;;  %v1765_v5 = vrot.slane %v4724_v40, 1  ;;  %v1767_v36 = vrot.slane %v4727_v2, 1  ;;  %v1769_v62 = vrot.slane %v4730_v28, 1  ;;  %v1728_v30 = vld [vmem:[#allocation5 + $0xa8] sm:$0x7f] }
 0x187   :  { %1703 = vst.msk [vmem:[#allocation4 + $0xe0] sm:$0xff] %vm40_vm0, %v1671_v17  ;;  %v1820_v45 = vadd.f32 %v1755_v57, %v1708_v27  ;;  %v1822_v32 = vadd.f32 %v1757_v39, %v1710_v58  ;;  %v1824_v9 = vadd.f32 %v1759_v59, %v1712_v3  ;;  %v1826_v0 = vadd.f32 %v1761_v41, %v1714_v51  ;;  %v1730_v55 = vld [vmem:[#allocation5 + $0xb8] sm:$0x7f]  ;;  %v1732_v4 = vld [vmem:[#allocation5 + $0xc8] sm:$0x7f] }
 0x188   :  { %1705 = vst.msk [vmem:[#allocation4 + $0xf0] sm:$0xff] %vm40_vm0, %v1673_v34  ;;  %v1828_v49 = vadd.f32 %v1763_v38, %v1716_v37  ;;  %v1830_v11 = vadd.f32 %v1765_v5, %v1718_v25  ;;  %v1832_v42 = vadd.f32 %v1767_v36, %v1720_v24  ;;  %v1834_v29 = vadd.f32 %v1769_v62, %v1722_v31  ;;  %v1734_v12 = vld [vmem:[#allocation5 + $0xd8] sm:$0x7f]  ;;  %v1736_v10 = vld [vmem:[#allocation5 + $0xe8] sm:$0x7f] }
 0x189   :  { %1852 = vst.msk [vmem:[#allocation5 + $0x8] sm:$0x7f] %vm1017_vm1, %v1820_v45  ;;  %1854 = vst.msk [vmem:[#allocation5 + $0x18] sm:$0x7f] %vm1017_vm1, %v1822_v32  ;;  %v1771_v43 = vrot.slane %v4753_v21, 1  ;;  %v1773_v44 = vrot.slane %v4756_v48, 1 }
 0x18a   :  { %1856 = vst.msk [vmem:[#allocation5 + $0x28] sm:$0x7f] %vm1017_vm1, %v1824_v9  ;;  %1858 = vst.msk [vmem:[#allocation5 + $0x38] sm:$0x7f] %vm1017_vm1, %v1826_v0  ;;  %v4759_v33 = vld [vmem:[#allocation3 + $0xa8] sm:$0xff]  ;;  %v4762_v27 = vld [vmem:[#allocation3 + $0xb8] sm:$0xff] }
 0x18b   :  { %v1775_v13 = vrot.slane %v4759_v33, 1  ;;  %v1777_v60 = vrot.slane %v4762_v27, 1  ;;  %v1738_v63 = vld [vmem:[#allocation5 + $0xf8] sm:$0x7f]  ;;  %1860 = vst.msk [vmem:[#allocation5 + $0x48] sm:$0x7f] %vm1017_vm1, %v1828_v49  ;;  %v1836_v26 = vadd.f32 %v1771_v43, %v1724_v14  ;;  %v1838_v35 = vadd.f32 %v1773_v44, %v1726_v7 }
 0x18c   :  { %1862 = vst.msk [vmem:[#allocation5 + $0x58] sm:$0x7f] %vm1017_vm1, %v1830_v11  ;;  %1864 = vst.msk [vmem:[#allocation5 + $0x68] sm:$0x7f] %vm1017_vm1, %v1832_v42  ;;  %v4769_v47 = vld [vmem:[#allocation3 + $0xc8] sm:$0xff]  ;;  %v4772_v53 = vld [vmem:[#allocation3 + $0xd8] sm:$0xff] }
 0x18d   :  { %1866 = vst.msk [vmem:[#allocation5 + $0x78] sm:$0x7f] %vm1017_vm1, %v1834_v29  ;;  %v1779_v16 = vrot.slane %v4769_v47, 1  ;;  %v1781_v61 = vrot.slane %v4772_v53, 1  ;;  %v4775_v52 = vld [vmem:[#allocation3 + $0xe8] sm:$0xff]  ;;  %v4778_v1 = vld [vmem:[#allocation3 + $0xf8] sm:$0xff]  ;;  %v1840_v58 = vadd.f32 %v1775_v13, %v1728_v30  ;;  %v1842_v3 = vadd.f32 %v1777_v60, %v1730_v55 }
 0x18e   :  { %v1783_v22 = vrot.slane %v4775_v52, 1  ;;  %v5681_v54 = vrot.slane %v4778_v1, 1  ;;  %v1963_v50 = vld [vmem:[#allocation5 + $0xf] sm:$0x1]  ;;  %v1964_v51 = vld [vmem:[#allocation5 + $0x1f] sm:$0x1] }
 0x18f   :  { %v1965_v56 = vld [vmem:[#allocation5 + $0x2f] sm:$0x1]  ;;  %v1966_v8 = vld [vmem:[#allocation5 + $0x3f] sm:$0x1]  ;;  %v1844_v17 = vadd.f32 %v1779_v16, %v1732_v4  ;;  %v1846_v34 = vadd.f32 %v1781_v61, %v1734_v12  ;;  %1868 = vst.msk [vmem:[#allocation5 + $0x88] sm:$0x7f] %vm1017_vm1, %v1836_v26 }
 0x190   :  { %v1848_v37 = vadd.f32 %v1783_v22, %v1736_v10  ;;  %v1850_v25 = vadd.f32 %v5681_v54, %v1738_v63  ;;  %v1967_v24 = vld [vmem:[#allocation5 + $0x4f] sm:$0x1]  ;;  %v1968_v31 = vld [vmem:[#allocation5 + $0x5f] sm:$0x1]  ;;  %1870 = vst.msk [vmem:[#allocation5 + $0x98] sm:$0x7f] %vm1017_vm1, %v1838_v35 }
 0x191   :  { %v1969_v14 = vld [vmem:[#allocation5 + $0x6f] sm:$0x1]  ;;  %1872 = vst.msk [vmem:[#allocation5 + $0xa8] sm:$0x7f] %vm1017_vm1, %v1840_v58  ;;  %1874 = vst.msk [vmem:[#allocation5 + $0xb8] sm:$0x7f] %vm1017_vm1, %v1842_v3 }
 0x192   :  { %v1979_v45 = vrot.slane %v4705_v46, 6  ;;  %v1980_v32 = vrot.slane %v4708_v18, 6  ;;  %v1981_v9 = vrot.slane %v4711_v23, 6  ;;  %v1982_v0 = vrot.slane %v4714_v19, 6  ;;  %v1970_v7 = vld [vmem:[#allocation5 + $0x7f] sm:$0x1] }
 0x193   :  { %1876 = vst.msk [vmem:[#allocation5 + $0xc8] sm:$0x7f] %vm1017_vm1, %v1844_v17  ;;  %1878 = vst.msk [vmem:[#allocation5 + $0xd8] sm:$0x7f] %vm1017_vm1, %v1846_v34  ;;  %v1983_v30 = vrot.slane %v4721_v15, 6  ;;  %v1984_v55 = vrot.slane %v4724_v40, 6 }
 0x194   :  { %1880 = vst.msk [vmem:[#allocation5 + $0xe8] sm:$0x7f] %vm1017_vm1, %v1848_v37  ;;  %1882 = vst.msk [vmem:[#allocation5 + $0xf8] sm:$0x7f] %vm1017_vm1, %v1850_v25  ;;  %v1985_v49 = vrot.slane %v4727_v2, 6  ;;  %v1986_v11 = vrot.slane %v4730_v28, 6  ;;  %v2011_v29 = vadd.f32 %v1979_v45, %v1963_v50  ;;  %v2012_v4 = vadd.f32 %v1980_v32, %v1964_v51 }
 0x195   :  { %v1971_v42 = vld [vmem:[#allocation5 + $0x8f] sm:$0x1]  ;;  %v2013_v12 = vadd.f32 %v1981_v9, %v1965_v56  ;;  %v2014_v10 = vadd.f32 %v1982_v0, %v1966_v8  ;;  %v1972_v63 = vld [vmem:[#allocation5 + $0x9f] sm:$0x1]  ;;  %v2015_v58 = vadd.f32 %v1983_v30, %v1967_v24  ;;  %v2016_v3 = vadd.f32 %v1984_v55, %v1968_v31  ;;  %v1707_v9 = vld [vmem:[#allocation5] sm:$0xff] }
 0x196   :  { %v1973_v26 = vld [vmem:[#allocation5 + $0xaf] sm:$0x1]  ;;  %v1974_v35 = vld [vmem:[#allocation5 + $0xbf] sm:$0x1]  ;;  %v2017_v17 = vadd.f32 %v1985_v49, %v1969_v14  ;;  %v2018_v34 = vadd.f32 %v1986_v11, %v1970_v7  ;;  %2027 = vst.msk [vmem:[#allocation5 + $0xf] sm:$0x1] %vm1225_vm2, %v2011_v29 }
 0x197   :  { %v1975_v37 = vld [vmem:[#allocation5 + $0xcf] sm:$0x1]  ;;  %v1976_v25 = vld [vmem:[#allocation5 + $0xdf] sm:$0x1]  ;;  %2028 = vst.msk [vmem:[#allocation5 + $0x1f] sm:$0x1] %vm1225_vm2, %v2012_v4 }
 0x198   :  { %v1977_v54 = vld [vmem:[#allocation5 + $0xef] sm:$0x1]  ;;  %2029 = vst.msk [vmem:[#allocation5 + $0x2f] sm:$0x1] %vm1225_vm2, %v2013_v12  ;;  %2030 = vst.msk [vmem:[#allocation5 + $0x3f] sm:$0x1] %vm1225_vm2, %v2014_v10 }
 0x199   :  { %v1987_v50 = vrot.slane %v4753_v21, 6  ;;  %v1988_v51 = vrot.slane %v4756_v48, 6  ;;  %v1989_v56 = vrot.slane %v4759_v33, 6  ;;  %v1990_v8 = vrot.slane %v4762_v27, 6  ;;  %v1978_v24 = vld [vmem:[#allocation5 + $0xff] sm:$0x1] }
 0x19a   :  { %2031 = vst.msk [vmem:[#allocation5 + $0x4f] sm:$0x1] %vm1225_vm2, %v2015_v58  ;;  %2032 = vst.msk [vmem:[#allocation5 + $0x5f] sm:$0x1] %vm1225_vm2, %v2016_v3  ;;  %v1991_v31 = vrot.slane %v4769_v47, 6  ;;  %v1992_v14 = vrot.slane %v4772_v53, 6 }
 0x19b   :  { %2033 = vst.msk [vmem:[#allocation5 + $0x6f] sm:$0x1] %vm1225_vm2, %v2017_v17  ;;  %2034 = vst.msk [vmem:[#allocation5 + $0x7f] sm:$0x1] %vm1225_vm2, %v2018_v34  ;;  %v1993_v45 = vrot.slane %v4775_v52, 6  ;;  %v1994_v32 = vrot.slane %v4778_v1, 6  ;;  %v2019_v0 = vadd.f32 %v1987_v50, %v1971_v42  ;;  %v2020_v7 = vadd.f32 %v1988_v51, %v1972_v63 }
 0x19c   :  { %v2021_v30 = vadd.f32 %v1989_v56, %v1973_v26  ;;  %v2022_v55 = vadd.f32 %v1990_v8, %v1974_v35  ;;  %v1709_v49 = vld [vmem:[#allocation5 + $0x10] sm:$0xff]  ;;  %v1711_v11 = vld [vmem:[#allocation5 + $0x20] sm:$0xff]  ;;  %v2023_v4 = vadd.f32 %v1991_v31, %v1975_v37  ;;  %v2024_v12 = vadd.f32 %v1992_v14, %v1976_v25  ;;  %v5915_v35 = vld [vmem:[#allocation15_spill] sm:$0xff] }
 0x19d   :  { %v1713_v29 = vld [vmem:[#allocation5 + $0x30] sm:$0xff]  ;;  %v2025_v10 = vadd.f32 %v1993_v45, %v1977_v54  ;;  %v2026_v58 = vadd.f32 %v1994_v32, %v1978_v24  ;;  %v1715_v3 = vld [vmem:[#allocation5 + $0x40] sm:$0xff]  ;;  %2035 = vst.msk [vmem:[#allocation5 + $0x8f] sm:$0x1] %vm1225_vm2, %v2019_v0  ;;  %2036 = vst.msk [vmem:[#allocation5 + $0x9f] sm:$0x1] %vm1225_vm2, %v2020_v7 }
 0x19e   :  { %2037 = vst.msk [vmem:[#allocation5 + $0xaf] sm:$0x1] %vm1225_vm2, %v2021_v30  ;;  %2038 = vst.msk [vmem:[#allocation5 + $0xbf] sm:$0x1] %vm1225_vm2, %v2022_v55  ;;  %v5913_v42 = vrot.slane %v4064_v6, 1  ;;  %v5914_v54 = vrot.slane %v4087_v20, 1 }
 0x19f   :  { %v5916_v17 = vrot.slane %v5915_v35, 1  ;;  %v5917_v37 = vld [vmem:[#allocation17_spill] sm:$0xff]  ;;  %v1717_v25 = vld [vmem:[#allocation5 + $0x50] sm:$0xff]  ;;  %2039 = vst.msk [vmem:[#allocation5 + $0xcf] sm:$0x1] %vm1225_vm2, %v2023_v4  ;;  %v5921_v56 = vld [vmem:[#allocation23_spill] sm:$0xff] }
 0x1a0   :  { %v1756_v63 = vsel %vm1578_vm3, %v5913_v42, %v1755_v57  ;;  %v1758_v26 = vsel %vm1578_vm3, %v5914_v54, %v1757_v39  ;;  %v5918_v46 = vrot.slane %v5917_v37, 1  ;;  %v1719_v57 = vld [vmem:[#allocation5 + $0x60] sm:$0xff]  ;;  %v1721_v50 = vld [vmem:[#allocation5 + $0x70] sm:$0xff]  ;;  %2040 = vst.msk [vmem:[#allocation5 + $0xdf] sm:$0x1] %vm1225_vm2, %v2024_v12  ;;  %v5919_v19 = vld [vmem:[#allocation21_spill] sm:$0xff] }
 0x1a1   :  { %v1760_v34 = vsel %vm1578_vm3, %v5916_v17, %v1759_v59  ;;  %2041 = vst.msk [vmem:[#allocation5 + $0xef] sm:$0x1] %vm1225_vm2, %v2025_v10  ;;  %2042 = vst.msk [vmem:[#allocation5 + $0xff] sm:$0x1] %vm1225_vm2, %v2026_v58  ;;  %v1819_v20 = vadd.f32 %v1756_v63, %v1707_v9  ;;  %v1821_v18 = vadd.f32 %v1758_v26, %v1709_v49  ;;  %v1723_v59 = vld [vmem:[#allocation5 + $0x80] sm:$0xff]  ;;  %v5922_v8 = vrot.slane %v5921_v56, 1 }
 0x1a2   :  { %v1762_v6 = vsel %vm1578_vm3, %v5918_v46, %v1761_v41  ;;  %v1823_v39 = vadd.f32 %v1760_v34, %v1711_v11  ;;  %v5920_v41 = vrot.slane %v5919_v19, 1  ;;  %v5923_v31 = vld [vmem:[#allocation26_spill] sm:$0xff]  ;;  %v5925_v32 = vld [vmem:[#allocation28_spill] sm:$0xff]  ;;  %v2044_v27 = vld [vmem:[#allocation4 + $0x8] sm:$0xff] }
 0x1a3   :  { %v1825_v23 = vadd.f32 %v1762_v6, %v1713_v29  ;;  %v1766_v24 = vsel %vm1578_vm3, %v5922_v8, %v1765_v5  ;;  %v5924_v14 = vrot.slane %v5923_v31, 1  ;;  %v5926_v15 = vrot.slane %v5925_v32, 1  ;;  %v1725_v0 = vld [vmem:[#allocation5 + $0x90] sm:$0xff]  ;;  %1851 = vst.msk [vmem:[#allocation5] sm:$0xff] %vm40_vm0, %v1819_v20  ;;  %1853 = vst.msk [vmem:[#allocation5 + $0x10] sm:$0xff] %vm40_vm0, %v1821_v18  ;;  %v1731_v28 = vld [vmem:[#allocation5 + $0xc0] sm:$0xff] }
 0x1a4   :  { %v1764_v51 = vsel %vm1578_vm3, %v5920_v41, %v1763_v38  ;;  %v1727_v38 = vld [vmem:[#allocation5 + $0xa0] sm:$0xff]  ;;  %v1729_v7 = vld [vmem:[#allocation5 + $0xb0] sm:$0xff]  ;;  %1855 = vst.msk [vmem:[#allocation5 + $0x20] sm:$0xff] %vm40_vm0, %v1823_v39  ;;  %v1829_v5 = vadd.f32 %v1766_v24, %v1717_v25  ;;  %v2046_v54 = vld [vmem:[#allocation4 + $0x18] sm:$0xff] }
 0x1a5   :  { %v1768_v45 = vsel %vm1578_vm3, %v5924_v14, %v1767_v36  ;;  %v1770_v9 = vsel %vm1578_vm3, %v5926_v15, %v1769_v62  ;;  %1857 = vst.msk [vmem:[#allocation5 + $0x30] sm:$0xff] %vm40_vm0, %v1825_v23  ;;  %v1827_v40 = vadd.f32 %v1764_v51, %v1715_v3  ;;  %v5927_v30 = vld [vmem:[#allocation30_spill] sm:$0xff]  ;;  %v5929_v49 = vld [vmem:[#allocation32_spill] sm:$0xff]  ;;  %v2048_v26 = vld [vmem:[#allocation4 + $0x28] sm:$0xff] }
 0x1a6   :  { %v1831_v2 = vadd.f32 %v1768_v45, %v1719_v57  ;;  %v1833_v36 = vadd.f32 %v1770_v9, %v1721_v50  ;;  %v5928_v62 = vrot.slane %v5927_v30, 1  ;;  %v5930_v11 = vrot.slane %v5929_v49, 1  ;;  %v5931_v4 = vld [vmem:[#allocation34_spill] sm:$0xff]  ;;  %v5933_v58 = vld [vmem:[#allocation36_spill] sm:$0xff]  ;;  %1861 = vst.msk [vmem:[#allocation5 + $0x50] sm:$0xff] %vm40_vm0, %v1829_v5  ;;  %v2050_v39 = vld [vmem:[#allocation4 + $0x38] sm:$0xff] }
 0x1a7   :  { %v5932_v12 = vrot.slane %v5931_v4, 1  ;;  %v5934_v21 = vrot.slane %v5933_v58, 1  ;;  %v1733_v42 = vld [vmem:[#allocation5 + $0xd0] sm:$0xff]  ;;  %1859 = vst.msk [vmem:[#allocation5 + $0x40] sm:$0xff] %vm40_vm0, %v1827_v40  ;;  %v5941_v50 = vrot.slane %v4778_v1, 1  ;;  %v5942_v20 = vld [vmem:[#allocation46_spill] sm:$0xff] }
 0x1a8   :  { %v1772_v55 = vsel %vm1578_vm3, %v5928_v62, %v1771_v43  ;;  %v1774_v29 = vsel %vm1578_vm3, %v5930_v11, %v1773_v44  ;;  %v1735_v43 = vld [vmem:[#allocation5 + $0xe0] sm:$0xff]  ;;  %v1737_v63 = vld [vmem:[#allocation5 + $0xf0] sm:$0xff]  ;;  %1863 = vst.msk [vmem:[#allocation5 + $0x60] sm:$0xff] %vm40_vm0, %v1831_v2  ;;  %1865 = vst.msk [vmem:[#allocation5 + $0x70] sm:$0xff] %vm40_vm0, %v1833_v36  ;;  %v5943_v47 = vrot.slane %v5942_v20, 1 }
 0x1a9   :  { %v1776_v10 = vsel %vm1578_vm3, %v5932_v12, %v1775_v13  ;;  %v1778_v3 = vsel %vm1578_vm3, %v5934_v21, %v1777_v60  ;;  %v1835_v48 = vadd.f32 %v1772_v55, %v1723_v59  ;;  %v1837_v44 = vadd.f32 %v1774_v29, %v1725_v0  ;;  %v5935_v60 = vld [vmem:[#allocation39_spill] sm:$0xff]  ;;  %v5937_v34 = vld [vmem:[#allocation40_spill] sm:$0xff]  ;;  %v2054_v23 = vld [vmem:[#allocation4 + $0x58] sm:$0xff] }
 0x1aa   :  { %v1839_v33 = vadd.f32 %v1776_v10, %v1727_v38  ;;  %v1841_v13 = vadd.f32 %v1778_v3, %v1729_v7  ;;  %v5936_v35 = vrot.slane %v5935_v60, 1  ;;  %v5938_v37 = vrot.slane %v5937_v34, 1  ;;  %v5939_v6 = vld [vmem:[#allocation44_spill] sm:$0xff]  ;;  %v2076_v31 = vld [vmem:[#allocation5 + $0x8] sm:$0xff]  ;;  %v2078_v14 = vld [vmem:[#allocation5 + $0x18] sm:$0xff] }
 0x1ab   :  { %v5940_v25 = vrot.slane %v5939_v6, 1  ;;  %v1786_v18 = vsel %vm1578_vm3, %v5943_v47, %v5941_v50  ;;  %1867 = vst.msk [vmem:[#allocation5 + $0x80] sm:$0xff] %vm40_vm0, %v1835_v48  ;;  %1869 = vst.msk [vmem:[#allocation5 + $0x90] sm:$0xff] %vm40_vm0, %v1837_v44  ;;  %v2108_v1 = vmul.f32 0.11111111, %v2044_v27  ;;  %v2056_v15 = vld [vmem:[#allocation4 + $0x68] sm:$0xff] }
 0x1ac   :  { %v1780_v17 = vsel %vm1578_vm3, %v5936_v35, %v1779_v16  ;;  %v1782_v46 = vsel %vm1578_vm3, %v5938_v37, %v1781_v61  ;;  %v2052_v16 = vld [vmem:[#allocation4 + $0x48] sm:$0xff]  ;;  %1871 = vst.msk [vmem:[#allocation5 + $0xa0] sm:$0xff] %vm40_vm0, %v1839_v33  ;;  %1873 = vst.msk [vmem:[#allocation5 + $0xb0] sm:$0xff] %vm40_vm0, %v1841_v13  ;;  %v2110_v59 = vmul.f32 0.11111111, %v2046_v54  ;;  %v2082_v7 = vld [vmem:[#allocation5 + $0x38] sm:$0xff] }
 0x1ad   :  { %v1784_v57 = vsel %vm1578_vm3, %v5940_v25, %v1783_v22  ;;  %v1843_v53 = vadd.f32 %v1780_v17, %v1731_v28  ;;  %v1845_v61 = vadd.f32 %v1782_v46, %v1733_v42  ;;  %v1849_v22 = vadd.f32 %v1786_v18, %v1737_v63  ;;  %v2080_v38 = vld [vmem:[#allocation5 + $0x28] sm:$0xff]  ;;  %v2086_v49 = vld [vmem:[#allocation5 + $0x58] sm:$0xff]  ;;  %v5944_v33 = vld [vmem:[#allocation8_spill] sm:$0xff] }
 0x1ae   :  { %v1847_v52 = vadd.f32 %v1784_v57, %v1735_v43  ;;  %v2112_v19 = vmul.f32 0.11111111, %v2048_v26  ;;  %v2114_v41 = vmul.f32 0.11111111, %v2050_v39  ;;  %v2116_v51 = vmul.f32 0.11111111, %v2052_v16 }
 0x1af   :  { %1875 = vst.msk [vmem:[#allocation5 + $0xc0] sm:$0xff] %vm40_vm0, %v1843_v53  ;;  %1877 = vst.msk [vmem:[#allocation5 + $0xd0] sm:$0xff] %vm40_vm0, %v1845_v61  ;;  %v2118_v56 = vmul.f32 0.11111111, %v2054_v23  ;;  %v2140_v8 = vmul.f32 %v2108_v1, %v2044_v27  ;;  %v2142_v24 = vmul.f32 %v2110_v59, %v2046_v54  ;;  %v2084_v36 = vld [vmem:[#allocation5 + $0x48] sm:$0xff]  ;;  %v2058_v29 = vld [vmem:[#allocation4 + $0x78] sm:$0xff]  ;;  %v4949_v13 = vadd.f32 %v2108_v1, %v5944_v33 }
 0x1b0   :  { %1879 = vst.msk [vmem:[#allocation5 + $0xe0] sm:$0xff] %vm40_vm0, %v1847_v52  ;;  %1881 = vst.msk [vmem:[#allocation5 + $0xf0] sm:$0xff] %vm40_vm0, %v1849_v22  ;;  %v2144_v45 = vmul.f32 %v2112_v19, %v2048_v26  ;;  %v2146_v32 = vmul.f32 %v2114_v41, %v2050_v39  ;;  %v2148_v40 = vmul.f32 %v2116_v51, %v2052_v16  ;;  %v4933_v11 = vmul.f32 0.11111111, %v2056_v15  ;;  %v2060_v54 = vld [vmem:[#allocation4 + $0x88] sm:$0xff]  ;;  %v2062_v26 = vld [vmem:[#allocation4 + $0x98] sm:$0xff] }
 0x1b1   :  { %v2172_v9 = vsub.f32 %v2076_v31, %v2140_v8  ;;  %v2174_v0 = vsub.f32 %v2078_v14, %v2142_v24  ;;  %v2150_v28 = vmul.f32 %v2118_v56, %v2054_v23  ;;  %v4943_v43 = vmul.f32 0.11111111, %v2058_v29  ;;  %v2064_v60 = vld [vmem:[#allocation4 + $0xa8] sm:$0xff]  ;;  %v2090_v23 = vld [vmem:[#allocation5 + $0x78] sm:$0xff] }
 0x1b2   :  { %v2176_v5 = vsub.f32 %v2080_v38, %v2144_v45  ;;  %v2178_v2 = vsub.f32 %v2082_v7, %v2146_v32  ;;  %v2180_v55 = vsub.f32 %v2084_v36, %v2148_v40  ;;  %v2152_v44 = vmul.f32 %v4933_v11, %v2056_v15  ;;  %v2088_v37 = vld [vmem:[#allocation5 + $0x68] sm:$0xff]  ;;  %v2094_v15 = vld [vmem:[#allocation5 + $0x98] sm:$0xff] }
 0x1b3   :  { %v2204_v30 = vmax.f32 %v2172_v9, 0.0  ;;  %v2206_v62 = vmax.f32 %v2174_v0, 0.0  ;;  %v2182_v10 = vsub.f32 %v2086_v49, %v2150_v28  ;;  %v4952_v27 = vadd.f32 %v2110_v59, %v5944_v33  ;;  %v2092_v1 = vld [vmem:[#allocation5 + $0x88] sm:$0xff] }
 0x1b4   :  { %v2208_v4 = vmax.f32 %v2176_v5, 0.0  ;;  %v2210_v12 = vmax.f32 %v2178_v2, 0.0  ;;  %v2212_v63 = vmax.f32 %v2180_v55, 0.0  ;;  %v4956_v35 = vadd.f32 %v2112_v19, %v5944_v33  ;;  %v2096_v7 = vld [vmem:[#allocation5 + $0xa8] sm:$0xff] }
 0x1b5   :  { %v4935_v58 = vmul.f32 0.125, %v2204_v30  ;;  %v4937_v21 = vmul.f32 0.125, %v2206_v62  ;;  %v2214_v48 = vmax.f32 %v2182_v10, 0.0  ;;  %v4959_v17 = vadd.f32 %v2114_v41, %v5944_v33  ;;  %v2066_v41 = vld [vmem:[#allocation4 + $0xb8] sm:$0xff] }
 0x1b6   :  { %v4939_v3 = vmul.f32 0.125, %v2208_v4  ;;  %v4941_v42 = vmul.f32 0.125, %v2210_v12  ;;  %v4963_v34 = vadd.f32 %v2116_v51, %v5944_v33  ;;  %v4966_v46 = vmul.f32 0.125, %v2212_v63 }
 0x1b7   :  { %2592 = vrsqrt.f32 %v4935_v58  ;;  %vm2308_vm4 = vcmp.eq.f32.partialorder %v4935_v58, inf  ;;  %v4968_v6 = vmul.f32 0.125, %v2214_v48  ;;  %v2184_v25 = vsub.f32 %v2088_v37, %v2152_v44 }
 0x1b8   :  { %2594 = vrsqrt.f32 %v4937_v21  ;;  %v2154_v57 = vmul.f32 %v4943_v43, %v2058_v29  ;;  %vm2310_vm5 = vcmp.eq.f32.partialorder %v4935_v58, 0.0  ;;  %v4973_v50 = vadd.f32 %v2118_v56, %v5944_v33 }
 0x1b9   :  { %2596 = vrsqrt.f32 %v4939_v3  ;;  %v4975_v20 = vmul.f32 0.11111111, %v2060_v54  ;;  %v4977_v47 = vmul.f32 0.11111111, %v2062_v26  ;;  %v4979_v18 = vmul.f32 0.11111111, %v2064_v60 }
 0x1ba   :  { %2598 = vrsqrt.f32 %v4941_v42  ;;  %v2311_v39 = vand.u32 2147483648, %v4935_v58  ;;  %vm2322_vm6 = vcmp.eq.f32.partialorder %v4937_v21, inf  ;;  %vm2324_vm7 = vcmp.eq.f32.partialorder %v4937_v21, 0.0 }
 0x1bb   :  { %2600 = vrsqrt.f32 %v4966_v46  ;;  %v2325_v16 = vand.u32 2147483648, %v4937_v21  ;;  %vm2336_vm8 = vcmp.eq.f32.partialorder %v4939_v3, inf  ;;  %vm2338_vm9 = vcmp.eq.f32.partialorder %v4939_v3, 0.0 }
 0x1bc   :  { %2602 = vrsqrt.f32 %v4968_v6  ;;  %v2339_v53 = vand.u32 2147483648, %v4939_v3  ;;  %v2216_v61 = vmax.f32 %v2184_v25, 0.0  ;;  %v2186_v52 = vsub.f32 %v2090_v23, %v2154_v57 }
 0x1bd   :  { %v2156_v22 = vmul.f32 %v4975_v20, %v2060_v54  ;;  %vm2350_vm10 = vcmp.eq.f32.partialorder %v4941_v42, inf  ;;  %vm2352_vm11 = vcmp.eq.f32.partialorder %v4941_v42, 0.0  ;;  %v2158_v59 = vmul.f32 %v4977_v47, %v2062_v26 }
 0x1be   :  { %v2160_v19 = vmul.f32 %v4979_v18, %v2064_v60  ;;  %v2353_v56 = vand.u32 2147483648, %v4941_v42  ;;  %v4996_v8 = vmul.f32 0.125, %v2216_v61  ;;  %v2218_v24 = vmax.f32 %v2186_v52, 0.0 }
 0x1bf   :  { %v2188_v31 = vsub.f32 %v2092_v1, %v2156_v22  ;;  %vm2364_vm12 = vcmp.eq.f32.partialorder %v4966_v46, inf  ;;  %vm2366_vm13 = vcmp.eq.f32.partialorder %v4966_v46, 0.0  ;;  %v2367_v32 = vand.u32 2147483648, %v4966_v46  ;;  %v2098_v1 = vld [vmem:[#allocation5 + $0xb8] sm:$0xff] }
 0x1c0   :  { %2604 = vrsqrt.f32 %v4996_v8  ;;  %v2190_v38 = vsub.f32 %v2094_v15, %v2158_v59  ;;  %v5004_v40 = vmul.f32 0.11111111, %v2066_v41  ;;  %v5010_v28 = vmul.f32 0.125, %v2218_v24 }
 0x1c1   :  { %v2593_v51 = vpop.eup %2592  ;;  %v2192_v30 = vsub.f32 %v2096_v7, %v2160_v19  ;;  %v2220_v29 = vmax.f32 %v2188_v31, 0.0  ;;  %vm2378_vm14 = vcmp.eq.f32.partialorder %v4968_v6, inf  ;;  %v2381_v26 = vand.u32 2147483648, %v4968_v6  ;;  %v2072_v31 = vld [vmem:[#allocation4 + $0xe8] sm:$0xff] }
 0x1c2   :  { %v2595_v14 = vpop.eup %2594  ;;  %v2307_v45 = vmul.f32 %v2593_v51, %v4935_v58  ;;  %2606 = vrsqrt.f32 %v5010_v28  ;;  %vm2380_vm15 = vcmp.eq.f32.partialorder %v4968_v6, 0.0  ;;  %v2280_v52 = vadd.f32 %v4933_v11, %v5944_v33 }
 0x1c3   :  { %v2597_v9 = vpop.eup %2596  ;;  %v2321_v0 = vmul.f32 %v2595_v14, %v4937_v21  ;;  %v5047_v25 = vmul.f32 0.125, %v2220_v29  ;;  %v2282_v22 = vadd.f32 %v4943_v43, %v5944_v33  ;;  %v5087_v11 = vadd.f32 %v4975_v20, %v5944_v33  ;;  %v2074_v14 = vld [vmem:[#allocation4 + $0xf8] sm:$0xff] }
 0x1c4   :  { %v2599_v5 = vpop.eup %2598  ;;  %v2309_v2 = vsel %vm2308_vm4, %v4935_v58, %v2307_v45  ;;  %v2335_v36 = vmul.f32 %v2597_v9, %v4939_v3  ;;  %v2068_v58 = vld [vmem:[#allocation4 + $0xc8] sm:$0xff]  ;;  %v5091_v43 = vadd.f32 %v4977_v47, %v5944_v33  ;;  %vm2392_vm1 = vcmp.eq.f32.partialorder %v4996_v8, inf }
 0x1c5   :  { %v2312_v62 = vsel %vm2310_vm5, %v2311_v39, %v2309_v2  ;;  %v2323_v55 = vsel %vm2322_vm6, %v4937_v21, %v2321_v0  ;;  %v2349_v49 = vmul.f32 %v2599_v5, %v4941_v42  ;;  %v2601_v63 = vpop.eup %2600  ;;  %v5049_v57 = vmul.f32 0.11111111, %v2068_v58 }
 0x1c6   :  { %v2524_v4 = vsub.f32 %v4949_v13, %v2312_v62  ;;  %v2326_v12 = vsel %vm2324_vm7, %v2325_v16, %v2323_v55  ;;  %v2337_v10 = vsel %vm2336_vm8, %v4939_v3, %v2335_v36  ;;  %v2603_v21 = vpop.eup %2602  ;;  %v2363_v3 = vmul.f32 %v2601_v63, %v4966_v46 }
 0x1c7   :  { %v2526_v48 = vsub.f32 %v4952_v27, %v2326_v12  ;;  %v2340_v44 = vsel %vm2338_vm9, %v2339_v53, %v2337_v10  ;;  %v2351_v13 = vsel %vm2350_vm10, %v4941_v42, %v2349_v49  ;;  %v2377_v37 = vmul.f32 %v2603_v21, %v4968_v6  ;;  %v2102_v12 = vld [vmem:[#allocation5 + $0xd8] sm:$0xff] }
 0x1c8   :  { %2556 = vst.msk [vmem:[%s5529_s1 + $0x8] sm:$0xff] %vm40_vm0, %v2524_v4  ;;  %v2528_v54 = vsub.f32 %v4956_v35, %v2340_v44  ;;  %v2354_v27 = vsel %vm2352_vm11, %v2353_v56, %v2351_v13  ;;  %v2365_v42 = vsel %vm2364_vm12, %v4966_v46, %v2363_v3  ;;  %v2222_v35 = vmax.f32 %v2190_v38, 0.0  ;;  %v2070_v56 = vld [vmem:[#allocation4 + $0xd8] sm:$0xff]  ;;  %v2104_v3 = vld [vmem:[#allocation5 + $0xe8] sm:$0xff] }
 0x1c9   :  { %2558 = vst.msk [vmem:[%s5529_s1 + $0x18] sm:$0xff] %vm40_vm0, %v2526_v48  ;;  %v2530_v60 = vsub.f32 %v4959_v17, %v2354_v27  ;;  %v2224_v39 = vmax.f32 %v2192_v30, 0.0  ;;  %v2162_v16 = vmul.f32 %v5004_v40, %v2066_v41  ;;  %v2368_v17 = vsel %vm2366_vm13, %v2367_v32, %v2365_v42  ;;  %v2043_v30 = vld [vmem:[#allocation4] sm:$0xff]  ;;  %v2106_v42 = vld [vmem:[#allocation5 + $0xf8] sm:$0xff] }
 0x1ca   :  { %2560 = vst.msk [vmem:[%s5529_s1 + $0x28] sm:$0xff] %vm40_vm0, %v2528_v54  ;;  %v2379_v23 = vsel %vm2378_vm14, %v4968_v6, %v2377_v37  ;;  %2608 = vrsqrt.f32 %v5047_v25  ;;  %v2532_v53 = vsub.f32 %v4963_v34, %v2368_v17  ;;  %v2605_v46 = vpop.eup %2604  ;;  %v5076_v19 = vmul.f32 0.125, %v2222_v35  ;;  %v2045_v35 = vld [vmem:[#allocation4 + $0x10] sm:$0xff] }
 0x1cb   :  { %2562 = vst.msk [vmem:[%s5529_s1 + $0x38] sm:$0xff] %vm40_vm0, %v2530_v60  ;;  %v2382_v61 = vsel %vm2380_vm15, %v2381_v26, %v2379_v23  ;;  %v5078_v41 = vmul.f32 0.125, %v2224_v39  ;;  %v2194_v6 = vsub.f32 %v2098_v1, %v2162_v16  ;;  %v2391_v34 = vmul.f32 %v2605_v46, %v4996_v8  ;;  %v2075_v1 = vld [vmem:[#allocation5] sm:$0xff] }
 0x1cc   :  { %v2534_v59 = vsub.f32 %v4973_v50, %v2382_v61  ;;  %2564 = vst.msk [vmem:[%s5529_s1 + $0x48] sm:$0xff] %vm40_vm0, %v2532_v53  ;;  %v2164_v50 = vmul.f32 %v5049_v57, %v2068_v58  ;;  %v2395_v51 = vand.u32 2147483648, %v4996_v8  ;;  %2610 = vrsqrt.f32 %v5076_v19  ;;  %v2607_v47 = vpop.eup %2606 }
 0x1cd   :  { %v5103_v20 = vadd.f32 %v4979_v18, %v5944_v33  ;;  %v2393_v24 = vsel %vm2392_vm1, %v4996_v8, %v2391_v34  ;;  %vm2394_vm2 = vcmp.eq.f32.partialorder %v4996_v8, 0.0  ;;  %vm2406_vm3 = vcmp.eq.f32.partialorder %v5010_v28, inf  ;;  %v2100_v18 = vld [vmem:[#allocation5 + $0xc8] sm:$0xff] }
 0x1ce   :  { %2566 = vst.msk [vmem:[%s5529_s1 + $0x58] sm:$0xff] %vm40_vm0, %v2534_v59  ;;  %2612 = vrsqrt.f32 %v5078_v41  ;;  %v2396_v45 = vsel %vm2394_vm2, %v2395_v51, %v2393_v24  ;;  %v2405_v32 = vmul.f32 %v2607_v47, %v5010_v28  ;;  %vm2408_vm4 = vcmp.eq.f32.partialorder %v5010_v28, 0.0  ;;  %v2047_v51 = vld [vmem:[#allocation4 + $0x20] sm:$0xff] }
 0x1cf   :  { %v2226_v15 = vmax.f32 %v2194_v6, 0.0  ;;  %v2536_v9 = vsub.f32 %v2280_v52, %v2396_v45  ;;  %v2409_v0 = vand.u32 2147483648, %v5010_v28  ;;  %v2196_v38 = vsub.f32 %v2100_v18, %v2164_v50 }
 0x1d0   :  { %v2134_v7 = vmul.f32 0.11111111, %v2070_v56  ;;  %v2407_v8 = vsel %vm2406_vm3, %v5010_v28, %v2405_v32  ;;  %v5115_v2 = vmul.f32 0.11111111, %v2072_v31  ;;  %v5117_v36 = vmul.f32 0.11111111, %v2074_v14 }
 0x1d1   :  { %v5113_v5 = vmul.f32 0.125, %v2226_v15  ;;  %2568 = vst.msk [vmem:[%s5529_s1 + $0x68] sm:$0xff] %vm40_vm0, %v2536_v9  ;;  %v2410_v62 = vsel %vm2408_vm4, %v2409_v0, %v2407_v8  ;;  %vm2420_vm5 = vcmp.eq.f32.partialorder %v5047_v25, inf  ;;  %v2228_v55 = vmax.f32 %v2196_v38, 0.0 }
 0x1d2   :  { %v2166_v49 = vmul.f32 %v2134_v7, %v2070_v56  ;;  %v2538_v4 = vsub.f32 %v2282_v22, %v2410_v62  ;;  %vm2422_vm6 = vcmp.eq.f32.partialorder %v5047_v25, 0.0  ;;  %v2423_v28 = vand.u32 2147483648, %v5047_v25 }
 0x1d3   :  { %2614 = vrsqrt.f32 %v5113_v5  ;;  %v5128_v58 = vmul.f32 0.125, %v2228_v55  ;;  %v5130_v48 = vmul.f32 0.11111111, %v2043_v30  ;;  %vm2434_vm7 = vcmp.eq.f32.partialorder %v5076_v19, inf }
 0x1d4   :  { %v2609_v29 = vpop.eup %2608  ;;  %v2198_v63 = vsub.f32 %v2102_v12, %v2166_v49  ;;  %2570 = vst.msk [vmem:[%s5529_s1 + $0x78] sm:$0xff] %vm40_vm0, %v2538_v4  ;;  %v5139_v44 = vadd.f32 %v5004_v40, %v5944_v33  ;;  %v2168_v13 = vmul.f32 %v5115_v2, %v2072_v31  ;;  %v2170_v21 = vmul.f32 %v5117_v36, %v2074_v14  ;;  %v2079_v12 = vld [vmem:[#allocation5 + $0x20] sm:$0xff] }
 0x1d5   :  { %v2419_v10 = vmul.f32 %v2609_v29, %v5047_v25  ;;  %vm2436_vm8 = vcmp.eq.f32.partialorder %v5076_v19, 0.0  ;;  %v2437_v27 = vand.u32 2147483648, %v5076_v19  ;;  %2616 = vrsqrt.f32 %v5128_v58  ;;  %v2049_v29 = vld [vmem:[#allocation4 + $0x30] sm:$0xff] }
 0x1d6   :  { %v2611_v26 = vpop.eup %2610  ;;  %vm2448_vm9 = vcmp.eq.f32.partialorder %v5078_v41, inf  ;;  %v2230_v60 = vmax.f32 %v2198_v63, 0.0  ;;  %v2200_v37 = vsub.f32 %v2104_v3, %v2168_v13  ;;  %v2202_v23 = vsub.f32 %v2106_v42, %v2170_v21 }
 0x1d7   :  { %v2421_v54 = vsel %vm2420_vm5, %v5047_v25, %v2419_v10  ;;  %v2433_v17 = vmul.f32 %v2611_v26, %v5076_v19  ;;  %v2139_v53 = vmul.f32 %v5130_v48, %v2043_v30  ;;  %v2451_v52 = vand.u32 2147483648, %v5078_v41  ;;  %v2077_v30 = vld [vmem:[#allocation5 + $0x10] sm:$0xff] }
 0x1d8   :  { %v2424_v40 = vsel %vm2422_vm6, %v2423_v28, %v2421_v54  ;;  %v2613_v39 = vpop.eup %2612  ;;  %v5157_v25 = vmul.f32 0.125, %v2230_v60  ;;  %v2232_v22 = vmax.f32 %v2200_v37, 0.0  ;;  %v2234_v59 = vmax.f32 %v2202_v23, 0.0  ;;  %v2053_v10 = vld [vmem:[#allocation4 + $0x50] sm:$0xff] }
 0x1d9   :  { %v2540_v16 = vsub.f32 %v5087_v11, %v2424_v40  ;;  %v2447_v61 = vmul.f32 %v2613_v39, %v5078_v41  ;;  %v2435_v46 = vsel %vm2434_vm7, %v5076_v19, %v2433_v17  ;;  %v2171_v6 = vsub.f32 %v2075_v1, %v2139_v53  ;;  %v2055_v17 = vld [vmem:[#allocation4 + $0x60] sm:$0xff] }
 0x1da   :  { %v5166_v34 = vmul.f32 0.11111111, %v2045_v35  ;;  %v2438_v11 = vsel %vm2436_vm8, %v2437_v27, %v2435_v46  ;;  %vm2450_vm10 = vcmp.eq.f32.partialorder %v5078_v41, 0.0  ;;  %2618 = vrsqrt.f32 %v5157_v25 }
 0x1db   :  { %2572 = vst.msk [vmem:[%s5529_s1 + $0x88] sm:$0xff] %vm40_vm0, %v2540_v16  ;;  %v2449_v50 = vsel %vm2448_vm9, %v5078_v41, %v2447_v61  ;;  %v2542_v56 = vsub.f32 %v5091_v43, %v2438_v11  ;;  %v2292_v24 = vadd.f32 %v5049_v57, %v5944_v33  ;;  %v5179_v31 = vadd.f32 %v2134_v7, %v5944_v33  ;;  %v2081_v16 = vld [vmem:[#allocation5 + $0x30] sm:$0xff] }
 0x1dc   :  { %v2452_v47 = vsel %vm2450_vm10, %v2451_v52, %v2449_v50  ;;  %v5182_v45 = vmul.f32 0.125, %v2232_v22  ;;  %v5184_v32 = vmul.f32 0.125, %v2234_v59  ;;  %v2203_v41 = vmax.f32 %v2171_v6, 0.0  ;;  %v2083_v22 = vld [vmem:[#allocation5 + $0x40] sm:$0xff] }
 0x1dd   :  { %v2615_v19 = vpop.eup %2614  ;;  %v2544_v14 = vsub.f32 %v5103_v20, %v2452_v47  ;;  %2574 = vst.msk [vmem:[%s5529_s1 + $0x98] sm:$0xff] %vm40_vm0, %v2542_v56  ;;  %vm2462_vm11 = vcmp.eq.f32.partialorder %v5113_v5, inf  ;;  %v2141_v57 = vmul.f32 %v5166_v34, %v2045_v35  ;;  %v5193_v15 = vmul.f32 0.11111111, %v2047_v51 }
 0x1de   :  { %v2461_v43 = vmul.f32 %v2615_v19, %v5113_v5  ;;  %vm2464_vm12 = vcmp.eq.f32.partialorder %v5113_v5, 0.0  ;;  %v2465_v20 = vand.u32 2147483648, %v5113_v5  ;;  %v5203_v18 = vadd.f32 %v5115_v2, %v5944_v33 }
 0x1df   :  { %2576 = vst.msk [vmem:[%s5529_s1 + $0xa8] sm:$0xff] %vm40_vm0, %v2544_v14  ;;  %2620 = vrsqrt.f32 %v5182_v45  ;;  %v2617_v9 = vpop.eup %2616  ;;  %vm2476_vm13 = vcmp.eq.f32.partialorder %v5128_v58, inf  ;;  %v5210_v38 = vadd.f32 %v5117_v36, %v5944_v33  ;;  %vm2478_vm14 = vcmp.eq.f32.partialorder %v5128_v58, 0.0  ;;  %v2051_v36 = vld [vmem:[#allocation4 + $0x40] sm:$0xff] }
 0x1e0   :  { %v2463_v0 = vsel %vm2462_vm11, %v5113_v5, %v2461_v43  ;;  %2622 = vrsqrt.f32 %v5184_v32  ;;  %v2475_v8 = vmul.f32 %v2617_v9, %v5128_v58  ;;  %v5215_v2 = vmul.f32 0.125, %v2203_v41 }
 0x1e1   :  { %v2466_v7 = vsel %vm2464_vm12, %v2465_v20, %v2463_v0  ;;  %v2479_v5 = vand.u32 2147483648, %v5128_v58  ;;  %v2173_v55 = vsub.f32 %v2077_v30, %v2141_v57  ;;  %v2143_v49 = vmul.f32 %v5193_v15, %v2047_v51 }
 0x1e2   :  { %v2546_v62 = vsub.f32 %v5139_v44, %v2466_v7  ;;  %v2477_v4 = vsel %vm2476_vm13, %v5128_v58, %v2475_v8  ;;  %vm2490_vm15 = vcmp.eq.f32.partialorder %v5157_v25, inf  ;;  %v5224_v28 = vadd.f32 %v5130_v48, %v5944_v33 }
 0x1e3   :  { %2624 = vrsqrt.f32 %v5215_v2  ;;  %v2480_v63 = vsel %vm2478_vm14, %v2479_v5, %v2477_v4  ;;  %vm2492_vm1 = vcmp.eq.f32.partialorder %v5157_v25, 0.0  ;;  %v2205_v44 = vmax.f32 %v2173_v55, 0.0  ;;  %v2087_v4 = vld [vmem:[#allocation5 + $0x60] sm:$0xff] }
 0x1e4   :  { %2578 = vst.msk [vmem:[%s5529_s1 + $0xb8] sm:$0xff] %vm40_vm0, %v2546_v62  ;;  %v2175_v13 = vsub.f32 %v2079_v12, %v2143_v49  ;;  %v2619_v21 = vpop.eup %2618  ;;  %v2548_v54 = vsub.f32 %v2292_v24, %v2480_v63  ;;  %v2493_v48 = vand.u32 2147483648, %v5157_v25  ;;  %v2113_v27 = vmul.f32 0.11111111, %v2049_v29  ;;  %v2059_v63 = vld [vmem:[#allocation4 + $0x80] sm:$0xff] }
 0x1e5   :  { %v5235_v3 = vmul.f32 0.11111111, %v2051_v36  ;;  %v2489_v26 = vmul.f32 %v2619_v21, %v5157_v25  ;;  %v5238_v40 = vmul.f32 0.125, %v2205_v44  ;;  %v5240_v37 = vmul.f32 0.11111111, %v2053_v10  ;;  %v2061_v44 = vld [vmem:[#allocation4 + $0x90] sm:$0xff] }
 0x1e6   :  { %v2207_v60 = vmax.f32 %v2175_v13, 0.0  ;;  %2580 = vst.msk [vmem:[%s5529_s1 + $0xc8] sm:$0xff] %vm40_vm0, %v2548_v54  ;;  %vm2504_vm2 = vcmp.eq.f32.partialorder %v5182_v45, inf  ;;  %vm2506_vm3 = vcmp.eq.f32.partialorder %v5182_v45, 0.0  ;;  %v2145_v58 = vmul.f32 %v2113_v27, %v2049_v29  ;;  %v2063_v13 = vld [vmem:[#allocation4 + $0xa0] sm:$0xff] }
 0x1e7   :  { %v2147_v42 = vmul.f32 %v5235_v3, %v2051_v36  ;;  %v2491_v35 = vsel %vm2490_vm15, %v5157_v25, %v2489_v26  ;;  %v2507_v39 = vand.u32 2147483648, %v5182_v45  ;;  %vm2518_vm4 = vcmp.eq.f32.partialorder %v5184_v32, inf }
 0x1e8   :  { %2626 = vrsqrt.f32 %v5238_v40  ;;  %v2494_v53 = vsel %vm2492_vm1, %v2493_v48, %v2491_v35  ;;  %vm2520_vm5 = vcmp.eq.f32.partialorder %v5184_v32, 0.0  ;;  %v5258_v61 = vmul.f32 0.125, %v2207_v60 }
 0x1e9   :  { %v2621_v23 = vpop.eup %2620  ;;  %v2177_v52 = vsub.f32 %v2081_v16, %v2145_v58  ;;  %v2550_v46 = vsub.f32 %v5179_v31, %v2494_v53  ;;  %v2179_v6 = vsub.f32 %v2083_v22, %v2147_v42  ;;  %v2149_v11 = vmul.f32 %v5240_v37, %v2053_v10  ;;  %v2085_v31 = vld [vmem:[#allocation5 + $0x50] sm:$0xff] }
 0x1ea   :  { %v2623_v1 = vpop.eup %2622  ;;  %v2503_v59 = vmul.f32 %v2621_v23, %v5182_v45  ;;  %v2521_v51 = vand.u32 2147483648, %v5184_v32  ;;  %2628 = vrsqrt.f32 %v5258_v61  ;;  %v5266_v25 = vmul.f32 0.11111111, %v2055_v17  ;;  %v2089_v58 = vld [vmem:[#allocation5 + $0x70] sm:$0xff] }
 0x1eb   :  { %v2517_v50 = vmul.f32 %v2623_v1, %v5184_v32  ;;  %2582 = vst.msk [vmem:[%s5529_s1 + $0xd8] sm:$0xff] %vm40_vm0, %v2550_v46  ;;  %vm2301_vm6 = vcmp.eq.f32.partialorder %v5215_v2, inf  ;;  %v2209_v47 = vmax.f32 %v2177_v52, 0.0  ;;  %v2211_v24 = vmax.f32 %v2179_v6, 0.0 }
 0x1ec   :  { %v2505_v56 = vsel %vm2504_vm2, %v5182_v45, %v2503_v59  ;;  %v2304_v43 = vand.u32 2147483648, %v5215_v2  ;;  %v2181_v57 = vsub.f32 %v2085_v31, %v2149_v11  ;;  %v2151_v62 = vmul.f32 %v5266_v25, %v2055_v17 }
 0x1ed   :  { %v2625_v19 = vpop.eup %2624  ;;  %v2508_v14 = vsel %vm2506_vm3, %v2507_v39, %v2505_v56  ;;  %v2519_v41 = vsel %vm2518_vm4, %v5184_v32, %v2517_v50  ;;  %v5286_v7 = vmul.f32 0.125, %v2209_v47  ;;  %v5289_v45 = vmul.f32 0.125, %v2211_v24  ;;  %v2065_v56 = vld [vmem:[#allocation4 + $0xb0] sm:$0xff] }
 0x1ee   :  { %v2552_v20 = vsub.f32 %v5203_v18, %v2508_v14  ;;  %v2522_v9 = vsel %vm2520_vm5, %v2521_v51, %v2519_v41  ;;  %v2300_v0 = vmul.f32 %v2625_v19, %v5215_v2  ;;  %v2213_v30 = vmax.f32 %v2181_v57, 0.0  ;;  %v2093_v51 = vld [vmem:[#allocation5 + $0x90] sm:$0xff]  ;;  %v2095_v57 = vld [vmem:[#allocation5 + $0xa0] sm:$0xff] }
 0x1ef   :  { %v2554_v8 = vsub.f32 %v5210_v38, %v2522_v9  ;;  %vm2303_vm7 = vcmp.eq.f32.partialorder %v5215_v2, 0.0  ;;  %v2269_v18 = vadd.f32 %v5166_v34, %v5944_v33  ;;  %2630 = vrsqrt.f32 %v5286_v7  ;;  %v2057_v38 = vld [vmem:[#allocation4 + $0x70] sm:$0xff] }
 0x1f0   :  { %2584 = vst.msk [vmem:[%s5529_s1 + $0xe8] sm:$0xff] %vm40_vm0, %v2552_v20  ;;  %v2302_v32 = vsel %vm2301_vm6, %v5215_v2, %v2300_v0  ;;  %v2271_v55 = vadd.f32 %v5193_v15, %v5944_v33  ;;  %v5310_v49 = vadd.f32 %v2113_v27, %v5944_v33  ;;  %2632 = vrsqrt.f32 %v5289_v45 }
 0x1f1   :  { %2586 = vst.msk [vmem:[%s5529_s1 + $0xf8] sm:$0xff] %vm40_vm0, %v2554_v8  ;;  %v2305_v5 = vsel %vm2303_vm7, %v2304_v43, %v2302_v32  ;;  %vm2315_vm8 = vcmp.eq.f32.partialorder %v5238_v40, inf  ;;  %v5317_v29 = vadd.f32 %v5235_v3, %v5944_v33  ;;  %v5319_v36 = vmul.f32 0.125, %v2213_v30 }
 0x1f2   :  { %v2627_v2 = vpop.eup %2626  ;;  %v2523_v34 = vsub.f32 %v5224_v28, %v2305_v5  ;;  %vm2317_vm9 = vcmp.eq.f32.partialorder %v5238_v40, 0.0  ;;  %v2183_v15 = vsub.f32 %v2087_v4, %v2151_v62  ;;  %v5323_v10 = vmul.f32 0.11111111, %v2057_v38 }
 0x1f3   :  { %v2314_v12 = vmul.f32 %v2627_v2, %v5238_v40  ;;  %v2318_v28 = vand.u32 2147483648, %v5238_v40  ;;  %vm2329_vm10 = vcmp.eq.f32.partialorder %v5258_v61, inf  ;;  %vm2331_vm11 = vcmp.eq.f32.partialorder %v5258_v61, 0.0 }
 0x1f4   :  { %2555 = vst.msk [vmem:[%s5529_s1] sm:$0xff] %vm40_vm0, %v2523_v34  ;;  %2634 = vrsqrt.f32 %v5319_v36  ;;  %v2629_v21 = vpop.eup %2628  ;;  %v2332_v48 = vand.u32 2147483648, %v5258_v61  ;;  %v2215_v27 = vmax.f32 %v2183_v15, 0.0  ;;  %v2153_v3 = vmul.f32 %v5323_v10, %v2057_v38  ;;  %v2069_v15 = vld [vmem:[#allocation4 + $0xd0] sm:$0xff] }
 0x1f5   :  { %v2316_v54 = vsel %vm2315_vm8, %v5238_v40, %v2314_v12  ;;  %v2328_v60 = vmul.f32 %v2629_v21, %v5258_v61  ;;  %v5341_v42 = vmul.f32 0.11111111, %v2059_v63  ;;  %v5343_v35 = vmul.f32 0.11111111, %v2061_v44  ;;  %v2067_v12 = vld [vmem:[#allocation4 + $0xc0] sm:$0xff] }
 0x1f6   :  { %v2319_v26 = vsel %vm2317_vm9, %v2318_v28, %v2316_v54  ;;  %v5345_v16 = vmul.f32 0.125, %v2215_v27  ;;  %v2185_v17 = vsub.f32 %v2089_v58, %v2153_v3  ;;  %v5347_v23 = vmul.f32 0.11111111, %v2063_v13 }
 0x1f7   :  { %v2525_v39 = vsub.f32 %v2269_v18, %v2319_v26  ;;  %v2330_v53 = vsel %vm2329_vm10, %v5258_v61, %v2328_v60  ;;  %v5354_v40 = vadd.f32 %v5240_v37, %v5944_v33  ;;  %v2155_v52 = vmul.f32 %v5341_v42, %v2059_v63  ;;  %v2091_v37 = vld [vmem:[#allocation5 + $0x80] sm:$0xff] }
 0x1f8   :  { %v2157_v22 = vmul.f32 %v5343_v35, %v2061_v44  ;;  %v2333_v1 = vsel %vm2331_vm11, %v2332_v48, %v2330_v53  ;;  %vm2343_vm12 = vcmp.eq.f32.partialorder %v5286_v7, inf  ;;  %vm2345_vm13 = vcmp.eq.f32.partialorder %v5286_v7, 0.0  ;;  %v2071_v63 = vld [vmem:[#allocation4 + $0xe0] sm:$0xff]  ;;  %v2097_v48 = vld [vmem:[#allocation5 + $0xb0] sm:$0xff] }
 0x1f9   :  { %2557 = vst.msk [vmem:[%s5529_s1 + $0x10] sm:$0xff] %vm40_vm0, %v2525_v39  ;;  %2636 = vrsqrt.f32 %v5345_v16  ;;  %v2631_v46 = vpop.eup %2630  ;;  %v2527_v59 = vsub.f32 %v2271_v55, %v2333_v1  ;;  %v2346_v6 = vand.u32 2147483648, %v5286_v7  ;;  %v2217_v11 = vmax.f32 %v2185_v17, 0.0 }
 0x1fa   :  { %v2187_v50 = vsub.f32 %v2091_v37, %v2155_v52  ;;  %v2633_v47 = vpop.eup %2632  ;;  %v2342_v24 = vmul.f32 %v2631_v46, %v5286_v7  ;;  %vm2357_vm14 = vcmp.eq.f32.partialorder %v5289_v45, inf  ;;  %v2189_v61 = vsub.f32 %v2093_v51, %v2157_v22  ;;  %v2073_v52 = vld [vmem:[#allocation4 + $0xf0] sm:$0xff]  ;;  %v2099_v37 = vld [vmem:[#allocation5 + $0xc0] sm:$0xff] }
 0x1fb   :  { %v2159_v31 = vmul.f32 %v5347_v23, %v2063_v13  ;;  %2559 = vst.msk [vmem:[%s5529_s1 + $0x20] sm:$0xff] %vm40_vm0, %v2527_v59  ;;  %v2356_v19 = vmul.f32 %v2633_v47, %v5289_v45  ;;  %v2360_v14 = vand.u32 2147483648, %v5289_v45  ;;  %v5377_v41 = vmul.f32 0.125, %v2217_v11 }
 0x1fc   :  { %v2219_v43 = vmax.f32 %v2187_v50, 0.0  ;;  %v2344_v20 = vsel %vm2343_vm12, %v5286_v7, %v2342_v24  ;;  %v2221_v9 = vmax.f32 %v2189_v61, 0.0  ;;  %v5382_v8 = vmul.f32 0.11111111, %v2065_v56 }
 0x1fd   :  { %v2191_v0 = vsub.f32 %v2095_v57, %v2159_v31  ;;  %v2347_v62 = vsel %vm2345_vm13, %v2346_v6, %v2344_v20  ;;  %v2358_v32 = vsel %vm2357_vm14, %v5289_v45, %v2356_v19  ;;  %vm2359_vm15 = vcmp.eq.f32.partialorder %v5289_v45, 0.0 }
 0x1fe   :  { %v2635_v30 = vpop.eup %2634  ;;  %2638 = vrsqrt.f32 %v5377_v41  ;;  %v2529_v18 = vsub.f32 %v5310_v49, %v2347_v62  ;;  %v2361_v38 = vsel %vm2359_vm15, %v2360_v14, %v2358_v32  ;;  %vm2371_vm1 = vcmp.eq.f32.partialorder %v5319_v36, inf  ;;  %v2103_v14 = vld [vmem:[#allocation5 + $0xe0] sm:$0xff] }
 0x1ff   :  { %v2370_v5 = vmul.f32 %v2635_v30, %v5319_v36  ;;  %v2531_v55 = vsub.f32 %v5317_v29, %v2361_v38  ;;  %v2374_v2 = vand.u32 2147483648, %v5319_v36  ;;  %v5394_v34 = vmul.f32 0.125, %v2219_v43 }
 0x200   :  { %v5396_v7 = vmul.f32 0.125, %v2221_v9  ;;  %2561 = vst.msk [vmem:[%s5529_s1 + $0x30] sm:$0xff] %vm40_vm0, %v2529_v18  ;;  %vm2373_vm2 = vcmp.eq.f32.partialorder %v5319_v36, 0.0  ;;  %v2223_v49 = vmax.f32 %v2191_v0, 0.0  ;;  %v2161_v4 = vmul.f32 %v5382_v8, %v2065_v56 }
 0x201   :  { %v2372_v45 = vsel %vm2371_vm1, %v5319_v36, %v2370_v5  ;;  %2563 = vst.msk [vmem:[%s5529_s1 + $0x40] sm:$0xff] %vm40_vm0, %v2531_v55  ;;  %2640 = vrsqrt.f32 %v5394_v34  ;;  %v2279_v36 = vadd.f32 %v5266_v25, %v5944_v33  ;;  %vm2385_vm3 = vcmp.eq.f32.partialorder %v5345_v16, inf  ;;  %v2105_v5 = vld [vmem:[#allocation5 + $0xf0] sm:$0xff] }
 0x202   :  { %v2375_v29 = vsel %vm2373_vm2, %v2374_v2, %v2372_v45  ;;  %2642 = vrsqrt.f32 %v5396_v7  ;;  %v2388_v21 = vand.u32 2147483648, %v5345_v16  ;;  %v5417_v54 = vmul.f32 0.125, %v2223_v49 }
 0x203   :  { %v2637_v44 = vpop.eup %2636  ;;  %v2533_v28 = vsub.f32 %v5354_v40, %v2375_v29  ;;  %v2193_v27 = vsub.f32 %v2097_v48, %v2161_v4  ;;  %v5423_v3 = vmul.f32 0.11111111, %v2067_v12  ;;  %v5425_v25 = vmul.f32 0.11111111, %v2069_v15 }
 0x204   :  { %v2384_v13 = vmul.f32 %v2637_v44, %v5345_v16  ;;  %v5427_v26 = vmul.f32 0.11111111, %v2071_v63  ;;  %vm2387_vm4 = vcmp.eq.f32.partialorder %v5345_v16, 0.0  ;;  %v2281_v58 = vadd.f32 %v5323_v10, %v5944_v33 }
 0x205   :  { %2565 = vst.msk [vmem:[%s5529_s1 + $0x50] sm:$0xff] %vm40_vm0, %v2533_v28  ;;  %2644 = vrsqrt.f32 %v5417_v54  ;;  %v2283_v17 = vadd.f32 %v5341_v42, %v5944_v33  ;;  %v2225_v53 = vmax.f32 %v2193_v27, 0.0  ;;  %v2163_v40 = vmul.f32 %v5423_v3, %v2067_v12  ;;  %v2101_v42 = vld [vmem:[#allocation5 + $0xd0] sm:$0xff] }
 0x206   :  { %v2386_v60 = vsel %vm2385_vm3, %v5345_v16, %v2384_v13  ;;  %vm2399_vm5 = vcmp.eq.f32.partialorder %v5377_v41, inf  ;;  %v2285_v16 = vadd.f32 %v5343_v35, %v5944_v33  ;;  %v2165_v10 = vmul.f32 %v5425_v25, %v2069_v15 }
 0x207   :  { %v2389_v39 = vsel %vm2387_vm4, %v2388_v21, %v2386_v60  ;;  %v5442_v59 = vmul.f32 0.125, %v2225_v53  ;;  %v2195_v6 = vsub.f32 %v2099_v37, %v2163_v40  ;;  %v2167_v11 = vmul.f32 %v5427_v26, %v2071_v63 }
 0x208   :  { %v2639_v22 = vpop.eup %2638  ;;  %v2535_v1 = vsub.f32 %v2279_v36, %v2389_v39  ;;  %vm2401_vm6 = vcmp.eq.f32.partialorder %v5377_v41, 0.0  ;;  %v2402_v35 = vand.u32 2147483648, %v5377_v41  ;;  %v2197_v50 = vsub.f32 %v2101_v42, %v2165_v10 }
 0x209   :  { %v2398_v46 = vmul.f32 %v2639_v22, %v5377_v41  ;;  %v5451_v51 = vmul.f32 0.11111111, %v2073_v52  ;;  %vm2413_vm7 = vcmp.eq.f32.partialorder %v5394_v34, inf  ;;  %vm2415_vm8 = vcmp.eq.f32.partialorder %v5394_v34, 0.0 }
 0x20a   :  { %2567 = vst.msk [vmem:[%s5529_s1 + $0x60] sm:$0xff] %vm40_vm0, %v2535_v1  ;;  %2646 = vrsqrt.f32 %v5442_v59  ;;  %v2416_v61 = vand.u32 2147483648, %v5394_v34  ;;  %v2227_v31 = vmax.f32 %v2195_v6, 0.0  ;;  %v2229_v19 = vmax.f32 %v2197_v50, 0.0 }
 0x20b   :  { %v2400_v56 = vsel %vm2399_vm5, %v5377_v41, %v2398_v46  ;;  %v2641_v47 = vpop.eup %2640  ;;  %v2199_v9 = vsub.f32 %v2103_v14, %v2167_v11  ;;  %v2169_v41 = vmul.f32 %v5451_v51, %v2073_v52  ;;  %vm2427_vm9 = vcmp.eq.f32.partialorder %v5396_v7, inf }
 0x20c   :  { %v2403_v24 = vsel %vm2401_vm6, %v2402_v35, %v2400_v56  ;;  %v2643_v43 = vpop.eup %2642  ;;  %v2412_v20 = vmul.f32 %v2641_v47, %v5394_v34  ;;  %v2259_v30 = vmul.f32 0.125, %v2227_v31  ;;  %v2261_v62 = vmul.f32 0.125, %v2229_v19 }
 0x20d   :  { %v2537_v57 = vsub.f32 %v2281_v58, %v2403_v24  ;;  %v2426_v0 = vmul.f32 %v2643_v43, %v5396_v7  ;;  %vm2429_vm10 = vcmp.eq.f32.partialorder %v5396_v7, 0.0  ;;  %v2430_v18 = vand.u32 2147483648, %v5396_v7 }
 0x20e   :  { %v2414_v32 = vsel %vm2413_vm7, %v5394_v34, %v2412_v20  ;;  %v2231_v38 = vmax.f32 %v2199_v9, 0.0  ;;  %2648 = vrsqrt.f32 %v2259_v30  ;;  %v2201_v49 = vsub.f32 %v2105_v5, %v2169_v41 }
 0x20f   :  { %2569 = vst.msk [vmem:[%s5529_s1 + $0x70] sm:$0xff] %vm40_vm0, %v2537_v57  ;;  %v2645_v55 = vpop.eup %2644  ;;  %v2417_v2 = vsel %vm2415_vm8, %v2416_v61, %v2414_v32  ;;  %v2428_v45 = vsel %vm2427_vm9, %v5396_v7, %v2426_v0  ;;  %vm2441_vm11 = vcmp.eq.f32.partialorder %v5417_v54, inf  ;;  %v2444_v63 = vand.u32 2147483648, %v5417_v54 }
 0x210   :  { %v2539_v4 = vsub.f32 %v2283_v17, %v2417_v2  ;;  %v2431_v29 = vsel %vm2429_vm10, %v2430_v18, %v2428_v45  ;;  %v2440_v12 = vmul.f32 %v2645_v55, %v5417_v54  ;;  %2650 = vrsqrt.f32 %v2261_v62 }
 0x211   :  { %v2541_v15 = vsub.f32 %v2285_v16, %v2431_v29  ;;  %v2287_v34 = vadd.f32 %v5347_v23, %v5944_v33  ;;  %vm2443_vm12 = vcmp.eq.f32.partialorder %v5417_v54, 0.0  ;;  %v2263_v44 = vmul.f32 0.125, %v2231_v38 }
 0x212   :  { %2571 = vst.msk [vmem:[%s5529_s1 + $0x80] sm:$0xff] %vm40_vm0, %v2539_v4  ;;  %v2442_v7 = vsel %vm2441_vm11, %v5417_v54, %v2440_v12  ;;  %v2233_v36 = vmax.f32 %v2201_v49, 0.0  ;;  %vm2455_vm13 = vcmp.eq.f32.partialorder %v5442_v59, inf  ;;  %v2458_v23 = vand.u32 2147483648, %v5442_v59 }
 0x213   :  { %2573 = vst.msk [vmem:[%s5529_s1 + $0x90] sm:$0xff] %vm40_vm0, %v2541_v15  ;;  %v2445_v28 = vsel %vm2443_vm12, %v2444_v63, %v2442_v7  ;;  %2652 = vrsqrt.f32 %v2263_v44  ;;  %v2289_v54 = vadd.f32 %v5382_v8, %v5944_v33  ;;  %vm2457_vm14 = vcmp.eq.f32.partialorder %v5442_v59, 0.0 }
 0x214   :  { %v2647_v13 = vpop.eup %2646  ;;  %v2543_v21 = vsub.f32 %v2287_v34, %v2445_v28  ;;  %v2265_v27 = vmul.f32 0.125, %v2233_v36  ;;  %vm2469_vm15 = vcmp.eq.f32.partialorder %v2259_v30, inf  ;;  %v2472_v52 = vand.u32 2147483648, %v2259_v30 }
 0x215   :  { %v2454_v48 = vmul.f32 %v2647_v13, %v5442_v59  ;;  %v2291_v8 = vadd.f32 %v5423_v3, %v5944_v33  ;;  %vm2471_vm1 = vcmp.eq.f32.partialorder %v2259_v30, 0.0  ;;  %vm2483_vm2 = vcmp.eq.f32.partialorder %v2261_v62, inf }
 0x216   :  { %2575 = vst.msk [vmem:[%s5529_s1 + $0xa0] sm:$0xff] %vm40_vm0, %v2543_v21  ;;  %2654 = vrsqrt.f32 %v2265_v27  ;;  %v2486_v37 = vand.u32 2147483648, %v2261_v62  ;;  %vm2485_vm3 = vcmp.eq.f32.partialorder %v2261_v62, 0.0  ;;  %vm2497_vm4 = vcmp.eq.f32.partialorder %v2263_v44, inf }
 0x217   :  { %v2456_v60 = vsel %vm2455_vm13, %v5442_v59, %v2454_v48  ;;  %v2293_v59 = vadd.f32 %v5425_v25, %v5944_v33  ;;  %v2500_v35 = vand.u32 2147483648, %v2263_v44  ;;  %v2295_v56 = vadd.f32 %v5427_v26, %v5944_v33 }
 0x218   :  { %v2459_v58 = vsel %vm2457_vm14, %v2458_v23, %v2456_v60  ;;  %v2649_v39 = vpop.eup %2648  ;;  %vm2499_vm5 = vcmp.eq.f32.partialorder %v2263_v44, 0.0  ;;  %vm2511_vm6 = vcmp.eq.f32.partialorder %v2265_v27, inf  ;;  %v2514_v31 = vand.u32 2147483648, %v2265_v27 }
 0x219   :  { %v2545_v17 = vsub.f32 %v2289_v54, %v2459_v58  ;;  %v2468_v53 = vmul.f32 %v2649_v39, %v2259_v30  ;;  %v2297_v19 = vadd.f32 %v5451_v51, %v5944_v33  ;;  %vm2513_vm7 = vcmp.eq.f32.partialorder %v2265_v27, 0.0 }
 0x21a   :  { %v2651_v40 = vpop.eup %2650 }
 0x21b   :  { %2577 = vst.msk [vmem:[%s5529_s1 + $0xb0] sm:$0xff] %vm40_vm0, %v2545_v17  ;;  %v2470_v22 = vsel %vm2469_vm15, %v2259_v30, %v2468_v53  ;;  %v2482_v1 = vmul.f32 %v2651_v40, %v2261_v62 }
 0x21c   :  { %v2473_v16 = vsel %vm2471_vm1, %v2472_v52, %v2470_v22 }
 0x21d   :  { %v2653_v10 = vpop.eup %2652  ;;  %v2547_v46 = vsub.f32 %v2291_v8, %v2473_v16  ;;  %v2484_v6 = vsel %vm2483_vm2, %v2261_v62, %v2482_v1 }
 0x21e   :  { %v2487_v42 = vsel %vm2485_vm3, %v2486_v37, %v2484_v6  ;;  %v2496_v11 = vmul.f32 %v2653_v10, %v2263_v44 }
 0x21f   :  { %2579 = vst.msk [vmem:[%s5529_s1 + $0xc0] sm:$0xff] %vm40_vm0, %v2547_v46  ;;  %v2549_v3 = vsub.f32 %v2293_v59, %v2487_v42 }
 0x220   :  { %v2655_v50 = vpop.eup %2654  ;;  %v2498_v47 = vsel %vm2497_vm4, %v2263_v44, %v2496_v11 }
 0x221   :  { %2581 = vst.msk [vmem:[%s5529_s1 + $0xd0] sm:$0xff] %vm40_vm0, %v2549_v3  ;;  %v2501_v25 = vsel %vm2499_vm5, %v2500_v35, %v2498_v47  ;;  %v2510_v24 = vmul.f32 %v2655_v50, %v2265_v27 }
 0x222   :  { %v2551_v61 = vsub.f32 %v2295_v56, %v2501_v25 }
 0x223   :  { %v2512_v14 = vsel %vm2511_vm6, %v2265_v27, %v2510_v24 }
 0x224   :  { %2583 = vst.msk [vmem:[%s5529_s1 + $0xe0] sm:$0xff] %vm40_vm0, %v2551_v61  ;;  %v2515_v26 = vsel %vm2513_vm7, %v2514_v31, %v2512_v14 }
 0x225   :  { %v2553_v43 = vsub.f32 %v2297_v19, %v2515_v26 }
 0x227   :  { %2585 = vst.msk [vmem:[%s5529_s1 + $0xf0] sm:$0xff] %vm40_vm0, %v2553_v43 }

</bundles_post_ra>
